<compile_context>
chip_gen: v7x
topology: tpu7x:2x2x1
jax: 0.10.0
libtpu: 0.0.40
codegen_flags: <defaults>
</compile_context>

<pallas_src>
import math

import jax
import jax.numpy as jnp
from jax.experimental import pallas as pl

# -------------------- small, structure-consistent hyper-params --------------
B = 4            # batch (number of windows)
S = 8            # seq_length (30 in the original)
DIN = 5          # input_dim (Open/High/Low/Close/Volume)
M = 64           # model_dim
H = 8            # n_heads
HD = M // H      # head dim = 8
F = 128          # dim_feedforward (512 in the original; scaled down)
NLAYERS = 2      # n_layers (4 in the original; scaled down)
SB = S * B       # flattened token count (s-major rows: r = s*B + b)
LN_EPS = 1e-5
NEG_INF = -1e30  # additive attention-mask value


# ------------------------------ kernel helpers -------------------------------
def _dot(a, b):
    return jnp.dot(a, b, preferred_element_type=jnp.float32)


def _dot_nt(a, b):  # a @ b.T (contract the last dim of both operands)
    return jax.lax.dot_general(a, b, (((1,), (1,)), ((), ())),
                               preferred_element_type=jnp.float32)


def _layer_norm(x, g, b):
    mu = jnp.mean(x, axis=-1, keepdims=True)
    var = jnp.mean(jnp.square(x - mu), axis=-1, keepdims=True)
    return (x - mu) * jax.lax.rsqrt(var + LN_EPS) * g + b


# ------------------------------ fused kernel ---------------------------------
def fused_forward_kernel(x_ref, bias_ref, w_in_ref, b_in_ref, pe_ref,
                         wqkv_ref, bqkv_ref, wo_ref, bo_ref,
                         g1_ref, be1_ref, w1_ref, b1_ref,
                         w2_ref, b2_ref, g2_ref, be2_ref,
                         w_out_ref, b_out_ref, o_ref):
    # ---- input projection + positional encoding (s-major rows) --------------
    # x_ref: (SB, DIN); pe_ref is pre-expanded to (SB, M) in the same order.
    h = _dot(x_ref[...], w_in_ref[...]) + b_in_ref[...] + pe_ref[...]   # (SB, M)

    bias = bias_ref[...]          # (SB, SB): 0 where same time step, else -1e30
    scale = 1.0 / math.sqrt(HD)

    # ---- NLAYERS post-norm transformer encoder layers (eval mode) -----------
    for l in range(NLAYERS):                                            # unrolled
        # packed QKV projection: one (SB, M) @ (M, 3M) matmul
        qkv = _dot(h, wqkv_ref[l]) + bqkv_ref[l]                        # (SB, 3M)
        q = qkv[:, :M] * scale                                          # PyTorch scales q
        k = qkv[:, M:2 * M]
        v = qkv[:, 2 * M:]

        heads = []
        for hh in range(H):                                             # unrolled
            sl = slice(hh * HD, (hh + 1) * HD)
            s = _dot_nt(q[:, sl], k[:, sl]) + bias                      # (SB, SB)
            s = s - jnp.max(s, axis=-1, keepdims=True)                  # stable softmax
            p = jnp.exp(s)                                              # masked -> exact 0
            p = p * pl.reciprocal(jnp.sum(p, axis=-1, keepdims=True),
                                  approx=True)
            heads.append(_dot(p, v[:, sl]))                             # (SB, HD)
        attn = _dot(jnp.concatenate(heads, axis=-1), wo_ref[l]) + bo_ref[l]

        # residual + LayerNorm 1
        y = _layer_norm(h + attn, g1_ref[l], be1_ref[l])

        # feed-forward (linear -> relu -> linear)
        f = jnp.maximum(_dot(y, w1_ref[l]) + b1_ref[l], 0.0)
        f = _dot(f, w2_ref[l]) + b2_ref[l]

        # residual + LayerNorm 2
        h = _layer_norm(y + f, g2_ref[l], be2_ref[l])

    # ---- output projection on the last time step (rows with s = S-1) --------
    h_last = h[(S - 1) * B:, :]                                         # (B, M)
    o_ref[...] = _dot(h_last, w_out_ref[...]) + b_out_ref[...]          # (B, DIN)


# ------------------------------ wrapper ---------------------------------------
@jax.jit
def forward(x, params):
    # Tiny (640-byte) re-layout of the raw (B, S, DIN) input to s-major rows;
    # everything else happens inside the single fused kernel.
    x_sm = jnp.transpose(x, (1, 0, 2)).reshape(SB, DIN)
    return pl.pallas_call(
        fused_forward_kernel,
        out_shape=jax.ShapeDtypeStruct((B, DIN), jnp.float32),
    )(x_sm, params["attn_bias"], params["w_in"], params["b_in"], params["pe"],
      params["wqkv"], params["bqkv"], params["wo"], params["bo"],
      params["g1"], params["be1"], params["w1"], params["b1"],
      params["w2"], params["b2"], params["g2"], params["be2"],
      params["w_out"], params["b_out"])


# ------------------------- parameters (deterministic) -------------------------
def _rnd(key, shape, scale=0.05):
    return (scale * jax.random.normal(key, shape)).astype(jnp.float32)


def _make_layer(key):
    kk = jax.random.split(key, 8)
    in_w = _rnd(kk[0], (3 * M, M))     # nn.MultiheadAttention.in_proj_weight
    in_b = _rnd(kk[1], (3 * M,))       # in_proj_bias
    w_out = _rnd(kk[2], (M, M))        # out_proj.weight
    return dict(
        wqkv=in_w.T,                   # (M, 3M): x @ wqkv = [q | k | v]
        bqkv=in_b.reshape(1, 3 * M),
        wo=w_out.T,                    # (M, M): concat_heads @ wo
        bo=_rnd(kk[3], (1, M)),
        g1=jnp.ones((1, M), jnp.float32), be1=jnp.zeros((1, M), jnp.float32),
        w1=_rnd(kk[4], (F, M)).T,      # linear1.weight -> (M, F)
        b1=_rnd(kk[5], (1, F)),
        w2=_rnd(kk[6], (M, F)).T,      # linear2.weight -> (F, M)
        b2=_rnd(kk[7], (1, M)),
        g2=jnp.ones((1, M), jnp.float32), be2=jnp.zeros((1, M), jnp.float32),
    )


def init_params(key):
    keys = jax.random.split(key, 4 + NLAYERS)
    layers = [_make_layer(keys[4 + i]) for i in range(NLAYERS)]
    stacked = {name: jnp.stack([lp[name] for lp in layers], axis=0)
               for name in layers[0]}                      # leading layer axis
    # positional_encoding parameter (init zeros, like the module), pre-expanded
    # once at init to the s-major (S*B, M) row layout used inside the kernel.
    pe = jnp.zeros((S, M), jnp.float32)
    pe_sm = jnp.repeat(pe, B, axis=0)
    # Additive attention mask: row r may attend to row c iff same time step
    # (the batch_first=False quirk: attention runs over the B axis per s).
    grp = jnp.arange(SB) // B
    attn_bias = jnp.where(grp[:, None] == grp[None, :],
                          0.0, NEG_INF).astype(jnp.float32)
    return dict(
        w_in=_rnd(keys[0], (DIN, M)),          # input_layer.weight^T
        b_in=_rnd(keys[1], (1, M)),
        pe=pe_sm,
        attn_bias=attn_bias,
        w_out=_rnd(keys[2], (M, DIN)),         # output_layer.weight^T
        b_out=_rnd(keys[3], (1, DIN)),
        **stacked,
    )


# ------------------------------ main -------------------------------------------
if __name__ == "__main__":
    key = jax.random.PRNGKey(0)
    kx, kp = jax.random.split(key)
    x = jax.random.normal(kx, (B, S, DIN), dtype=jnp.float32)
    params = init_params(kp)
    out = forward(x, params)
    jax.block_until_ready(out)
    assert out.shape == (B, DIN) and out.dtype == jnp.float32
    assert bool(jnp.all(jnp.isfinite(out)))
    print("KERNEL_OK")
</pallas_src>

<mosaic_0001>
module attributes {stable_mosaic.version = 11 : i64} {
  func.func @fused_forward_kernel(%arg0: memref<32x5xf32, #tpu.memory_space<vmem>>, %arg1: memref<32x32xf32, #tpu.memory_space<vmem>>, %arg2: memref<5x64xf32, #tpu.memory_space<vmem>>, %arg3: memref<1x64xf32, #tpu.memory_space<vmem>>, %arg4: memref<32x64xf32, #tpu.memory_space<vmem>>, %arg5: memref<2x64x192xf32, #tpu.memory_space<vmem>>, %arg6: memref<2x1x192xf32, #tpu.memory_space<vmem>>, %arg7: memref<2x64x64xf32, #tpu.memory_space<vmem>>, %arg8: memref<2x1x64xf32, #tpu.memory_space<vmem>>, %arg9: memref<2x1x64xf32, #tpu.memory_space<vmem>>, %arg10: memref<2x1x64xf32, #tpu.memory_space<vmem>>, %arg11: memref<2x64x128xf32, #tpu.memory_space<vmem>>, %arg12: memref<2x1x128xf32, #tpu.memory_space<vmem>>, %arg13: memref<2x128x64xf32, #tpu.memory_space<vmem>>, %arg14: memref<2x1x64xf32, #tpu.memory_space<vmem>>, %arg15: memref<2x1x64xf32, #tpu.memory_space<vmem>>, %arg16: memref<2x1x64xf32, #tpu.memory_space<vmem>>, %arg17: memref<64x5xf32, #tpu.memory_space<vmem>>, %arg18: memref<1x5xf32, #tpu.memory_space<vmem>>, %arg19: memref<4x5xf32, #tpu.memory_space<vmem>>) attributes {dimension_semantics = [], scalar_prefetch = 0 : i64, scratch_operands = 0 : i64, tpu.core_type = #tpu.core_type<tc>} {
    %c0 = arith.constant 0 : index
    %c0_0 = arith.constant 0 : index
    %0 = vector.load %arg0[%c0, %c0_0] : memref<32x5xf32, #tpu.memory_space<vmem>>, vector<32x5xf32>
    %c0_1 = arith.constant 0 : index
    %c0_2 = arith.constant 0 : index
    %1 = vector.load %arg2[%c0_1, %c0_2] : memref<5x64xf32, #tpu.memory_space<vmem>>, vector<5x64xf32>
    %cst = arith.constant dense<0.000000e+00> : vector<32x64xf32>
    %2 = tpu.matmul %0, %1, %cst {dimension_numbers = #tpu.dot_dimension_numbers<[1], [0], [0], [1], [0, 0, 1, 1], [], []>} : vector<32x5xf32>, vector<5x64xf32>, vector<32x64xf32> -> vector<32x64xf32>
    %c0_3 = arith.constant 0 : index
    %c0_4 = arith.constant 0 : index
    %3 = vector.load %arg3[%c0_3, %c0_4] : memref<1x64xf32, #tpu.memory_space<vmem>>, vector<1x64xf32>
    %4 = vector.broadcast %3 : vector<1x64xf32> to vector<32x64xf32>
    %5 = arith.addf %2, %4 : vector<32x64xf32>
    %c0_5 = arith.constant 0 : index
    %c0_6 = arith.constant 0 : index
    %6 = vector.load %arg4[%c0_5, %c0_6] : memref<32x64xf32, #tpu.memory_space<vmem>>, vector<32x64xf32>
    %7 = arith.addf %5, %6 : vector<32x64xf32>
    %c0_7 = arith.constant 0 : index
    %c0_8 = arith.constant 0 : index
    %8 = vector.load %arg1[%c0_7, %c0_8] : memref<32x32xf32, #tpu.memory_space<vmem>>, vector<32x32xf32>
    %c0_9 = arith.constant 0 : index
    %c0_10 = arith.constant 0 : index
    %c0_11 = arith.constant 0 : index
    %9 = vector.load %arg5[%c0_9, %c0_10, %c0_11] : memref<2x64x192xf32, #tpu.memory_space<vmem>>, vector<1x64x192xf32>
    %10 = vector.shape_cast %9 : vector<1x64x192xf32> to vector<64x192xf32>
    %cst_12 = arith.constant dense<0.000000e+00> : vector<32x192xf32>
    %11 = tpu.matmul %7, %10, %cst_12 {dimension_numbers = #tpu.dot_dimension_numbers<[1], [0], [0], [1], [0, 0, 1, 1], [], []>} : vector<32x64xf32>, vector<64x192xf32>, vector<32x192xf32> -> vector<32x192xf32>
    %c0_13 = arith.constant 0 : index
    %c0_14 = arith.constant 0 : index
    %c0_15 = arith.constant 0 : index
    %12 = vector.load %arg6[%c0_13, %c0_14, %c0_15] : memref<2x1x192xf32, #tpu.memory_space<vmem>>, vector<1x1x192xf32>
    %13 = vector.shape_cast %12 : vector<1x1x192xf32> to vector<1x192xf32>
    %14 = vector.broadcast %13 : vector<1x192xf32> to vector<32x192xf32>
    %15 = arith.addf %11, %14 : vector<32x192xf32>
    %16 = vector.extract_strided_slice %15 {offsets = [0, 0], sizes = [32, 64], strides = [1, 1]} : vector<32x192xf32> to vector<32x64xf32>
    %cst_16 = arith.constant 0.353553385 : f32
    %17 = vector.broadcast %cst_16 : f32 to vector<32x64xf32>
    %18 = arith.mulf %16, %17 : vector<32x64xf32>
    %19 = vector.extract_strided_slice %15 {offsets = [0, 64], sizes = [32, 64], strides = [1, 1]} : vector<32x192xf32> to vector<32x64xf32>
    %20 = vector.extract_strided_slice %15 {offsets = [0, 128], sizes = [32, 64], strides = [1, 1]} : vector<32x192xf32> to vector<32x64xf32>
    %21 = vector.extract_strided_slice %18 {offsets = [0, 0], sizes = [32, 8], strides = [1, 1]} : vector<32x64xf32> to vector<32x8xf32>
    %22 = vector.extract_strided_slice %19 {offsets = [0, 0], sizes = [32, 8], strides = [1, 1]} : vector<32x64xf32> to vector<32x8xf32>
    %cst_17 = arith.constant dense<0.000000e+00> : vector<32x32xf32>
    %23 = tpu.matmul %21, %22, %cst_17 {dimension_numbers = #tpu.dot_dimension_numbers<[1], [1], [0], [0], [0, 0, 1, 0], [], []>} : vector<32x8xf32>, vector<32x8xf32>, vector<32x32xf32> -> vector<32x32xf32>
    %24 = arith.addf %23, %8 : vector<32x32xf32>
    %cst_18 = arith.constant dense<0xFF800000> : vector<32xf32>
    %25 = vector.multi_reduction <maximumf>, %24, %cst_18 [1] : vector<32x32xf32> to vector<32xf32>
    %26 = vector.shape_cast %25 : vector<32xf32> to vector<32x1xf32>
    %27 = vector.broadcast %26 : vector<32x1xf32> to vector<32x32xf32>
    %28 = arith.subf %24, %27 : vector<32x32xf32>
    %29 = math.exp %28 : vector<32x32xf32>
    %cst_19 = arith.constant dense<0.000000e+00> : vector<32xf32>
    %30 = vector.multi_reduction <add>, %29, %cst_19 [1] : vector<32x32xf32> to vector<32xf32>
    %31 = vector.shape_cast %30 : vector<32xf32> to vector<32x1xf32>
    %32 = tpu.reciprocal %31 {approx = true} : vector<32x1xf32> -> vector<32x1xf32>
    %33 = vector.broadcast %32 : vector<32x1xf32> to vector<32x32xf32>
    %34 = arith.mulf %29, %33 : vector<32x32xf32>
    %35 = vector.extract_strided_slice %20 {offsets = [0, 0], sizes = [32, 8], strides = [1, 1]} : vector<32x64xf32> to vector<32x8xf32>
    %cst_20 = arith.constant dense<0.000000e+00> : vector<32x8xf32>
    %36 = tpu.matmul %34, %35, %cst_20 {dimension_numbers = #tpu.dot_dimension_numbers<[1], [0], [0], [1], [0, 0, 1, 1], [], []>} : vector<32x32xf32>, vector<32x8xf32>, vector<32x8xf32> -> vector<32x8xf32>
    %37 = vector.extract_strided_slice %18 {offsets = [0, 8], sizes = [32, 8], strides = [1, 1]} : vector<32x64xf32> to vector<32x8xf32>
    %38 = vector.extract_strided_slice %19 {offsets = [0, 8], sizes = [32, 8], strides = [1, 1]} : vector<32x64xf32> to vector<32x8xf32>
    %cst_21 = arith.constant dense<0.000000e+00> : vector<32x32xf32>
    %39 = tpu.matmul %37, %38, %cst_21 {dimension_numbers = #tpu.dot_dimension_numbers<[1], [1], [0], [0], [0, 0, 1, 0], [], []>} : vector<32x8xf32>, vector<32x8xf32>, vector<32x32xf32> -> vector<32x32xf32>
    %40 = arith.addf %39, %8 : vector<32x32xf32>
    %cst_22 = arith.constant dense<0xFF800000> : vector<32xf32>
    %41 = vector.multi_reduction <maximumf>, %40, %cst_22 [1] : vector<32x32xf32> to vector<32xf32>
    %42 = vector.shape_cast %41 : vector<32xf32> to vector<32x1xf32>
    %43 = vector.broadcast %42 : vector<32x1xf32> to vector<32x32xf32>
    %44 = arith.subf %40, %43 : vector<32x32xf32>
    %45 = math.exp %44 : vector<32x32xf32>
    %cst_23 = arith.constant dense<0.000000e+00> : vector<32xf32>
    %46 = vector.multi_reduction <add>, %45, %cst_23 [1] : vector<32x32xf32> to vector<32xf32>
    %47 = vector.shape_cast %46 : vector<32xf32> to vector<32x1xf32>
    %48 = tpu.reciprocal %47 {approx = true} : vector<32x1xf32> -> vector<32x1xf32>
    %49 = vector.broadcast %48 : vector<32x1xf32> to vector<32x32xf32>
    %50 = arith.mulf %45, %49 : vector<32x32xf32>
    %51 = vector.extract_strided_slice %20 {offsets = [0, 8], sizes = [32, 8], strides = [1, 1]} : vector<32x64xf32> to vector<32x8xf32>
    %cst_24 = arith.constant dense<0.000000e+00> : vector<32x8xf32>
    %52 = tpu.matmul %50, %51, %cst_24 {dimension_numbers = #tpu.dot_dimension_numbers<[1], [0], [0], [1], [0, 0, 1, 1], [], []>} : vector<32x32xf32>, vector<32x8xf32>, vector<32x8xf32> -> vector<32x8xf32>
    %53 = vector.extract_strided_slice %18 {offsets = [0, 16], sizes = [32, 8], strides = [1, 1]} : vector<32x64xf32> to vector<32x8xf32>
    %54 = vector.extract_strided_slice %19 {offsets = [0, 16], sizes = [32, 8], strides = [1, 1]} : vector<32x64xf32> to vector<32x8xf32>
    %cst_25 = arith.constant dense<0.000000e+00> : vector<32x32xf32>
    %55 = tpu.matmul %53, %54, %cst_25 {dimension_numbers = #tpu.dot_dimension_numbers<[1], [1], [0], [0], [0, 0, 1, 0], [], []>} : vector<32x8xf32>, vector<32x8xf32>, vector<32x32xf32> -> vector<32x32xf32>
    %56 = arith.addf %55, %8 : vector<32x32xf32>
    %cst_26 = arith.constant dense<0xFF800000> : vector<32xf32>
    %57 = vector.multi_reduction <maximumf>, %56, %cst_26 [1] : vector<32x32xf32> to vector<32xf32>
    %58 = vector.shape_cast %57 : vector<32xf32> to vector<32x1xf32>
    %59 = vector.broadcast %58 : vector<32x1xf32> to vector<32x32xf32>
    %60 = arith.subf %56, %59 : vector<32x32xf32>
    %61 = math.exp %60 : vector<32x32xf32>
    %cst_27 = arith.constant dense<0.000000e+00> : vector<32xf32>
    %62 = vector.multi_reduction <add>, %61, %cst_27 [1] : vector<32x32xf32> to vector<32xf32>
    %63 = vector.shape_cast %62 : vector<32xf32> to vector<32x1xf32>
    %64 = tpu.reciprocal %63 {approx = true} : vector<32x1xf32> -> vector<32x1xf32>
    %65 = vector.broadcast %64 : vector<32x1xf32> to vector<32x32xf32>
    %66 = arith.mulf %61, %65 : vector<32x32xf32>
    %67 = vector.extract_strided_slice %20 {offsets = [0, 16], sizes = [32, 8], strides = [1, 1]} : vector<32x64xf32> to vector<32x8xf32>
    %cst_28 = arith.constant dense<0.000000e+00> : vector<32x8xf32>
    %68 = tpu.matmul %66, %67, %cst_28 {dimension_numbers = #tpu.dot_dimension_numbers<[1], [0], [0], [1], [0, 0, 1, 1], [], []>} : vector<32x32xf32>, vector<32x8xf32>, vector<32x8xf32> -> vector<32x8xf32>
    %69 = vector.extract_strided_slice %18 {offsets = [0, 24], sizes = [32, 8], strides = [1, 1]} : vector<32x64xf32> to vector<32x8xf32>
    %70 = vector.extract_strided_slice %19 {offsets = [0, 24], sizes = [32, 8], strides = [1, 1]} : vector<32x64xf32> to vector<32x8xf32>
    %cst_29 = arith.constant dense<0.000000e+00> : vector<32x32xf32>
    %71 = tpu.matmul %69, %70, %cst_29 {dimension_numbers = #tpu.dot_dimension_numbers<[1], [1], [0], [0], [0, 0, 1, 0], [], []>} : vector<32x8xf32>, vector<32x8xf32>, vector<32x32xf32> -> vector<32x32xf32>
    %72 = arith.addf %71, %8 : vector<32x32xf32>
    %cst_30 = arith.constant dense<0xFF800000> : vector<32xf32>
    %73 = vector.multi_reduction <maximumf>, %72, %cst_30 [1] : vector<32x32xf32> to vector<32xf32>
    %74 = vector.shape_cast %73 : vector<32xf32> to vector<32x1xf32>
    %75 = vector.broadcast %74 : vector<32x1xf32> to vector<32x32xf32>
    %76 = arith.subf %72, %75 : vector<32x32xf32>
    %77 = math.exp %76 : vector<32x32xf32>
    %cst_31 = arith.constant dense<0.000000e+00> : vector<32xf32>
    %78 = vector.multi_reduction <add>, %77, %cst_31 [1] : vector<32x32xf32> to vector<32xf32>
    %79 = vector.shape_cast %78 : vector<32xf32> to vector<32x1xf32>
    %80 = tpu.reciprocal %79 {approx = true} : vector<32x1xf32> -> vector<32x1xf32>
    %81 = vector.broadcast %80 : vector<32x1xf32> to vector<32x32xf32>
    %82 = arith.mulf %77, %81 : vector<32x32xf32>
    %83 = vector.extract_strided_slice %20 {offsets = [0, 24], sizes = [32, 8], strides = [1, 1]} : vector<32x64xf32> to vector<32x8xf32>
    %cst_32 = arith.constant dense<0.000000e+00> : vector<32x8xf32>
    %84 = tpu.matmul %82, %83, %cst_32 {dimension_numbers = #tpu.dot_dimension_numbers<[1], [0], [0], [1], [0, 0, 1, 1], [], []>} : vector<32x32xf32>, vector<32x8xf32>, vector<32x8xf32> -> vector<32x8xf32>
    %85 = vector.extract_strided_slice %18 {offsets = [0, 32], sizes = [32, 8], strides = [1, 1]} : vector<32x64xf32> to vector<32x8xf32>
    %86 = vector.extract_strided_slice %19 {offsets = [0, 32], sizes = [32, 8], strides = [1, 1]} : vector<32x64xf32> to vector<32x8xf32>
    %cst_33 = arith.constant dense<0.000000e+00> : vector<32x32xf32>
    %87 = tpu.matmul %85, %86, %cst_33 {dimension_numbers = #tpu.dot_dimension_numbers<[1], [1], [0], [0], [0, 0, 1, 0], [], []>} : vector<32x8xf32>, vector<32x8xf32>, vector<32x32xf32> -> vector<32x32xf32>
    %88 = arith.addf %87, %8 : vector<32x32xf32>
    %cst_34 = arith.constant dense<0xFF800000> : vector<32xf32>
    %89 = vector.multi_reduction <maximumf>, %88, %cst_34 [1] : vector<32x32xf32> to vector<32xf32>
    %90 = vector.shape_cast %89 : vector<32xf32> to vector<32x1xf32>
    %91 = vector.broadcast %90 : vector<32x1xf32> to vector<32x32xf32>
    %92 = arith.subf %88, %91 : vector<32x32xf32>
    %93 = math.exp %92 : vector<32x32xf32>
    %cst_35 = arith.constant dense<0.000000e+00> : vector<32xf32>
    %94 = vector.multi_reduction <add>, %93, %cst_35 [1] : vector<32x32xf32> to vector<32xf32>
    %95 = vector.shape_cast %94 : vector<32xf32> to vector<32x1xf32>
    %96 = tpu.reciprocal %95 {approx = true} : vector<32x1xf32> -> vector<32x1xf32>
    %97 = vector.broadcast %96 : vector<32x1xf32> to vector<32x32xf32>
    %98 = arith.mulf %93, %97 : vector<32x32xf32>
    %99 = vector.extract_strided_slice %20 {offsets = [0, 32], sizes = [32, 8], strides = [1, 1]} : vector<32x64xf32> to vector<32x8xf32>
    %cst_36 = arith.constant dense<0.000000e+00> : vector<32x8xf32>
    %100 = tpu.matmul %98, %99, %cst_36 {dimension_numbers = #tpu.dot_dimension_numbers<[1], [0], [0], [1], [0, 0, 1, 1], [], []>} : vector<32x32xf32>, vector<32x8xf32>, vector<32x8xf32> -> vector<32x8xf32>
    %101 = vector.extract_strided_slice %18 {offsets = [0, 40], sizes = [32, 8], strides = [1, 1]} : vector<32x64xf32> to vector<32x8xf32>
    %102 = vector.extract_strided_slice %19 {offsets = [0, 40], sizes = [32, 8], strides = [1, 1]} : vector<32x64xf32> to vector<32x8xf32>
    %cst_37 = arith.constant dense<0.000000e+00> : vector<32x32xf32>
    %103 = tpu.matmul %101, %102, %cst_37 {dimension_numbers = #tpu.dot_dimension_numbers<[1], [1], [0], [0], [0, 0, 1, 0], [], []>} : vector<32x8xf32>, vector<32x8xf32>, vector<32x32xf32> -> vector<32x32xf32>
    %104 = arith.addf %103, %8 : vector<32x32xf32>
    %cst_38 = arith.constant dense<0xFF800000> : vector<32xf32>
    %105 = vector.multi_reduction <maximumf>, %104, %cst_38 [1] : vector<32x32xf32> to vector<32xf32>
    %106 = vector.shape_cast %105 : vector<32xf32> to vector<32x1xf32>
    %107 = vector.broadcast %106 : vector<32x1xf32> to vector<32x32xf32>
    %108 = arith.subf %104, %107 : vector<32x32xf32>
    %109 = math.exp %108 : vector<32x32xf32>
    %cst_39 = arith.constant dense<0.000000e+00> : vector<32xf32>
    %110 = vector.multi_reduction <add>, %109, %cst_39 [1] : vector<32x32xf32> to vector<32xf32>
    %111 = vector.shape_cast %110 : vector<32xf32> to vector<32x1xf32>
    %112 = tpu.reciprocal %111 {approx = true} : vector<32x1xf32> -> vector<32x1xf32>
    %113 = vector.broadcast %112 : vector<32x1xf32> to vector<32x32xf32>
    %114 = arith.mulf %109, %113 : vector<32x32xf32>
    %115 = vector.extract_strided_slice %20 {offsets = [0, 40], sizes = [32, 8], strides = [1, 1]} : vector<32x64xf32> to vector<32x8xf32>
    %cst_40 = arith.constant dense<0.000000e+00> : vector<32x8xf32>
    %116 = tpu.matmul %114, %115, %cst_40 {dimension_numbers = #tpu.dot_dimension_numbers<[1], [0], [0], [1], [0, 0, 1, 1], [], []>} : vector<32x32xf32>, vector<32x8xf32>, vector<32x8xf32> -> vector<32x8xf32>
    %117 = vector.extract_strided_slice %18 {offsets = [0, 48], sizes = [32, 8], strides = [1, 1]} : vector<32x64xf32> to vector<32x8xf32>
    %118 = vector.extract_strided_slice %19 {offsets = [0, 48], sizes = [32, 8], strides = [1, 1]} : vector<32x64xf32> to vector<32x8xf32>
    %cst_41 = arith.constant dense<0.000000e+00> : vector<32x32xf32>
    %119 = tpu.matmul %117, %118, %cst_41 {dimension_numbers = #tpu.dot_dimension_numbers<[1], [1], [0], [0], [0, 0, 1, 0], [], []>} : vector<32x8xf32>, vector<32x8xf32>, vector<32x32xf32> -> vector<32x32xf32>
    %120 = arith.addf %119, %8 : vector<32x32xf32>
    %cst_42 = arith.constant dense<0xFF800000> : vector<32xf32>
    %121 = vector.multi_reduction <maximumf>, %120, %cst_42 [1] : vector<32x32xf32> to vector<32xf32>
    %122 = vector.shape_cast %121 : vector<32xf32> to vector<32x1xf32>
    %123 = vector.broadcast %122 : vector<32x1xf32> to vector<32x32xf32>
    %124 = arith.subf %120, %123 : vector<32x32xf32>
    %125 = math.exp %124 : vector<32x32xf32>
    %cst_43 = arith.constant dense<0.000000e+00> : vector<32xf32>
    %126 = vector.multi_reduction <add>, %125, %cst_43 [1] : vector<32x32xf32> to vector<32xf32>
    %127 = vector.shape_cast %126 : vector<32xf32> to vector<32x1xf32>
    %128 = tpu.reciprocal %127 {approx = true} : vector<32x1xf32> -> vector<32x1xf32>
    %129 = vector.broadcast %128 : vector<32x1xf32> to vector<32x32xf32>
    %130 = arith.mulf %125, %129 : vector<32x32xf32>
    %131 = vector.extract_strided_slice %20 {offsets = [0, 48], sizes = [32, 8], strides = [1, 1]} : vector<32x64xf32> to vector<32x8xf32>
    %cst_44 = arith.constant dense<0.000000e+00> : vector<32x8xf32>
    %132 = tpu.matmul %130, %131, %cst_44 {dimension_numbers = #tpu.dot_dimension_numbers<[1], [0], [0], [1], [0, 0, 1, 1], [], []>} : vector<32x32xf32>, vector<32x8xf32>, vector<32x8xf32> -> vector<32x8xf32>
    %133 = vector.extract_strided_slice %18 {offsets = [0, 56], sizes = [32, 8], strides = [1, 1]} : vector<32x64xf32> to vector<32x8xf32>
    %134 = vector.extract_strided_slice %19 {offsets = [0, 56], sizes = [32, 8], strides = [1, 1]} : vector<32x64xf32> to vector<32x8xf32>
    %cst_45 = arith.constant dense<0.000000e+00> : vector<32x32xf32>
    %135 = tpu.matmul %133, %134, %cst_45 {dimension_numbers = #tpu.dot_dimension_numbers<[1], [1], [0], [0], [0, 0, 1, 0], [], []>} : vector<32x8xf32>, vector<32x8xf32>, vector<32x32xf32> -> vector<32x32xf32>
    %136 = arith.addf %135, %8 : vector<32x32xf32>
    %cst_46 = arith.constant dense<0xFF800000> : vector<32xf32>
    %137 = vector.multi_reduction <maximumf>, %136, %cst_46 [1] : vector<32x32xf32> to vector<32xf32>
    %138 = vector.shape_cast %137 : vector<32xf32> to vector<32x1xf32>
    %139 = vector.broadcast %138 : vector<32x1xf32> to vector<32x32xf32>
    %140 = arith.subf %136, %139 : vector<32x32xf32>
    %141 = math.exp %140 : vector<32x32xf32>
    %cst_47 = arith.constant dense<0.000000e+00> : vector<32xf32>
    %142 = vector.multi_reduction <add>, %141, %cst_47 [1] : vector<32x32xf32> to vector<32xf32>
    %143 = vector.shape_cast %142 : vector<32xf32> to vector<32x1xf32>
    %144 = tpu.reciprocal %143 {approx = true} : vector<32x1xf32> -> vector<32x1xf32>
    %145 = vector.broadcast %144 : vector<32x1xf32> to vector<32x32xf32>
    %146 = arith.mulf %141, %145 : vector<32x32xf32>
    %147 = vector.extract_strided_slice %20 {offsets = [0, 56], sizes = [32, 8], strides = [1, 1]} : vector<32x64xf32> to vector<32x8xf32>
    %cst_48 = arith.constant dense<0.000000e+00> : vector<32x8xf32>
    %148 = tpu.matmul %146, %147, %cst_48 {dimension_numbers = #tpu.dot_dimension_numbers<[1], [0], [0], [1], [0, 0, 1, 1], [], []>} : vector<32x32xf32>, vector<32x8xf32>, vector<32x8xf32> -> vector<32x8xf32>
    %149 = tpu.concatenate %36, %52, %68, %84, %100, %116, %132, %148 in 1 : vector<32x8xf32>, vector<32x8xf32>, vector<32x8xf32>, vector<32x8xf32>, vector<32x8xf32>, vector<32x8xf32>, vector<32x8xf32>, vector<32x8xf32> -> vector<32x64xf32>
    %c0_49 = arith.constant 0 : index
    %c0_50 = arith.constant 0 : index
    %c0_51 = arith.constant 0 : index
    %150 = vector.load %arg7[%c0_49, %c0_50, %c0_51] : memref<2x64x64xf32, #tpu.memory_space<vmem>>, vector<1x64x64xf32>
    %151 = vector.shape_cast %150 : vector<1x64x64xf32> to vector<64x64xf32>
    %cst_52 = arith.constant dense<0.000000e+00> : vector<32x64xf32>
    %152 = tpu.matmul %149, %151, %cst_52 {dimension_numbers = #tpu.dot_dimension_numbers<[1], [0], [0], [1], [0, 0, 1, 1], [], []>} : vector<32x64xf32>, vector<64x64xf32>, vector<32x64xf32> -> vector<32x64xf32>
    %c0_53 = arith.constant 0 : index
    %c0_54 = arith.constant 0 : index
    %c0_55 = arith.constant 0 : index
    %153 = vector.load %arg8[%c0_53, %c0_54, %c0_55] : memref<2x1x64xf32, #tpu.memory_space<vmem>>, vector<1x1x64xf32>
    %154 = vector.shape_cast %153 : vector<1x1x64xf32> to vector<1x64xf32>
    %155 = vector.broadcast %154 : vector<1x64xf32> to vector<32x64xf32>
    %156 = arith.addf %152, %155 : vector<32x64xf32>
    %157 = arith.addf %7, %156 : vector<32x64xf32>
    %c0_56 = arith.constant 0 : index
    %c0_57 = arith.constant 0 : index
    %c0_58 = arith.constant 0 : index
    %158 = vector.load %arg9[%c0_56, %c0_57, %c0_58] : memref<2x1x64xf32, #tpu.memory_space<vmem>>, vector<1x1x64xf32>
    %159 = vector.shape_cast %158 : vector<1x1x64xf32> to vector<1x64xf32>
    %c0_59 = arith.constant 0 : index
    %c0_60 = arith.constant 0 : index
    %c0_61 = arith.constant 0 : index
    %160 = vector.load %arg10[%c0_59, %c0_60, %c0_61] : memref<2x1x64xf32, #tpu.memory_space<vmem>>, vector<1x1x64xf32>
    %161 = vector.shape_cast %160 : vector<1x1x64xf32> to vector<1x64xf32>
    %cst_62 = arith.constant dense<0.000000e+00> : vector<32xf32>
    %162 = vector.multi_reduction <add>, %157, %cst_62 [1] : vector<32x64xf32> to vector<32xf32>
    %163 = vector.shape_cast %162 : vector<32xf32> to vector<32x1xf32>
    %cst_63 = arith.constant 6.400000e+01 : f32
    %164 = vector.broadcast %cst_63 : f32 to vector<32x1xf32>
    %165 = arith.divf %163, %164 : vector<32x1xf32>
    %166 = vector.broadcast %165 : vector<32x1xf32> to vector<32x64xf32>
    %167 = arith.subf %157, %166 : vector<32x64xf32>
    %168 = arith.mulf %167, %167 : vector<32x64xf32>
    %cst_64 = arith.constant dense<0.000000e+00> : vector<32xf32>
    %169 = vector.multi_reduction <add>, %168, %cst_64 [1] : vector<32x64xf32> to vector<32xf32>
    %170 = vector.shape_cast %169 : vector<32xf32> to vector<32x1xf32>
    %cst_65 = arith.constant 6.400000e+01 : f32
    %171 = vector.broadcast %cst_65 : f32 to vector<32x1xf32>
    %172 = arith.divf %170, %171 : vector<32x1xf32>
    %173 = vector.broadcast %165 : vector<32x1xf32> to vector<32x64xf32>
    %174 = arith.subf %157, %173 : vector<32x64xf32>
    %cst_66 = arith.constant 9.99999974E-6 : f32
    %175 = vector.broadcast %cst_66 : f32 to vector<32x1xf32>
    %176 = arith.addf %172, %175 : vector<32x1xf32>
    %177 = math.rsqrt %176 : vector<32x1xf32>
    %178 = vector.broadcast %177 : vector<32x1xf32> to vector<32x64xf32>
    %179 = arith.mulf %174, %178 : vector<32x64xf32>
    %180 = vector.broadcast %159 : vector<1x64xf32> to vector<32x64xf32>
    %181 = arith.mulf %179, %180 : vector<32x64xf32>
    %182 = vector.broadcast %161 : vector<1x64xf32> to vector<32x64xf32>
    %183 = arith.addf %181, %182 : vector<32x64xf32>
    %c0_67 = arith.constant 0 : index
    %c0_68 = arith.constant 0 : index
    %c0_69 = arith.constant 0 : index
    %184 = vector.load %arg11[%c0_67, %c0_68, %c0_69] : memref<2x64x128xf32, #tpu.memory_space<vmem>>, vector<1x64x128xf32>
    %185 = vector.shape_cast %184 : vector<1x64x128xf32> to vector<64x128xf32>
    %cst_70 = arith.constant dense<0.000000e+00> : vector<32x128xf32>
    %186 = tpu.matmul %183, %185, %cst_70 {dimension_numbers = #tpu.dot_dimension_numbers<[1], [0], [0], [1], [0, 0, 1, 1], [], []>} : vector<32x64xf32>, vector<64x128xf32>, vector<32x128xf32> -> vector<32x128xf32>
    %c0_71 = arith.constant 0 : index
    %c0_72 = arith.constant 0 : index
    %c0_73 = arith.constant 0 : index
    %187 = vector.load %arg12[%c0_71, %c0_72, %c0_73] : memref<2x1x128xf32, #tpu.memory_space<vmem>>, vector<1x1x128xf32>
    %188 = vector.shape_cast %187 : vector<1x1x128xf32> to vector<1x128xf32>
    %189 = vector.broadcast %188 : vector<1x128xf32> to vector<32x128xf32>
    %190 = arith.addf %186, %189 : vector<32x128xf32>
    %cst_74 = arith.constant 0.000000e+00 : f32
    %191 = vector.broadcast %cst_74 : f32 to vector<32x128xf32>
    %192 = arith.maximumf %190, %191 : vector<32x128xf32>
    %c0_75 = arith.constant 0 : index
    %c0_76 = arith.constant 0 : index
    %c0_77 = arith.constant 0 : index
    %193 = vector.load %arg13[%c0_75, %c0_76, %c0_77] : memref<2x128x64xf32, #tpu.memory_space<vmem>>, vector<1x128x64xf32>
    %194 = vector.shape_cast %193 : vector<1x128x64xf32> to vector<128x64xf32>
    %cst_78 = arith.constant dense<0.000000e+00> : vector<32x64xf32>
    %195 = tpu.matmul %192, %194, %cst_78 {dimension_numbers = #tpu.dot_dimension_numbers<[1], [0], [0], [1], [0, 0, 1, 1], [], []>} : vector<32x128xf32>, vector<128x64xf32>, vector<32x64xf32> -> vector<32x64xf32>
    %c0_79 = arith.constant 0 : index
    %c0_80 = arith.constant 0 : index
    %c0_81 = arith.constant 0 : index
    %196 = vector.load %arg14[%c0_79, %c0_80, %c0_81] : memref<2x1x64xf32, #tpu.memory_space<vmem>>, vector<1x1x64xf32>
    %197 = vector.shape_cast %196 : vector<1x1x64xf32> to vector<1x64xf32>
    %198 = vector.broadcast %197 : vector<1x64xf32> to vector<32x64xf32>
    %199 = arith.addf %195, %198 : vector<32x64xf32>
    %200 = arith.addf %183, %199 : vector<32x64xf32>
    %c0_82 = arith.constant 0 : index
    %c0_83 = arith.constant 0 : index
    %c0_84 = arith.constant 0 : index
    %201 = vector.load %arg15[%c0_82, %c0_83, %c0_84] : memref<2x1x64xf32, #tpu.memory_space<vmem>>, vector<1x1x64xf32>
    %202 = vector.shape_cast %201 : vector<1x1x64xf32> to vector<1x64xf32>
    %c0_85 = arith.constant 0 : index
    %c0_86 = arith.constant 0 : index
    %c0_87 = arith.constant 0 : index
    %203 = vector.load %arg16[%c0_85, %c0_86, %c0_87] : memref<2x1x64xf32, #tpu.memory_space<vmem>>, vector<1x1x64xf32>
    %204 = vector.shape_cast %203 : vector<1x1x64xf32> to vector<1x64xf32>
    %cst_88 = arith.constant dense<0.000000e+00> : vector<32xf32>
    %205 = vector.multi_reduction <add>, %200, %cst_88 [1] : vector<32x64xf32> to vector<32xf32>
    %206 = vector.shape_cast %205 : vector<32xf32> to vector<32x1xf32>
    %cst_89 = arith.constant 6.400000e+01 : f32
    %207 = vector.broadcast %cst_89 : f32 to vector<32x1xf32>
    %208 = arith.divf %206, %207 : vector<32x1xf32>
    %209 = vector.broadcast %208 : vector<32x1xf32> to vector<32x64xf32>
    %210 = arith.subf %200, %209 : vector<32x64xf32>
    %211 = arith.mulf %210, %210 : vector<32x64xf32>
    %cst_90 = arith.constant dense<0.000000e+00> : vector<32xf32>
    %212 = vector.multi_reduction <add>, %211, %cst_90 [1] : vector<32x64xf32> to vector<32xf32>
    %213 = vector.shape_cast %212 : vector<32xf32> to vector<32x1xf32>
    %cst_91 = arith.constant 6.400000e+01 : f32
    %214 = vector.broadcast %cst_91 : f32 to vector<32x1xf32>
    %215 = arith.divf %213, %214 : vector<32x1xf32>
    %216 = vector.broadcast %208 : vector<32x1xf32> to vector<32x64xf32>
    %217 = arith.subf %200, %216 : vector<32x64xf32>
    %cst_92 = arith.constant 9.99999974E-6 : f32
    %218 = vector.broadcast %cst_92 : f32 to vector<32x1xf32>
    %219 = arith.addf %215, %218 : vector<32x1xf32>
    %220 = math.rsqrt %219 : vector<32x1xf32>
    %221 = vector.broadcast %220 : vector<32x1xf32> to vector<32x64xf32>
    %222 = arith.mulf %217, %221 : vector<32x64xf32>
    %223 = vector.broadcast %202 : vector<1x64xf32> to vector<32x64xf32>
    %224 = arith.mulf %222, %223 : vector<32x64xf32>
    %225 = vector.broadcast %204 : vector<1x64xf32> to vector<32x64xf32>
    %226 = arith.addf %224, %225 : vector<32x64xf32>
    %c1 = arith.constant 1 : index
    %c0_93 = arith.constant 0 : index
    %c0_94 = arith.constant 0 : index
    %227 = vector.load %arg5[%c1, %c0_93, %c0_94] : memref<2x64x192xf32, #tpu.memory_space<vmem>>, vector<1x64x192xf32>
    %228 = vector.shape_cast %227 : vector<1x64x192xf32> to vector<64x192xf32>
    %cst_95 = arith.constant dense<0.000000e+00> : vector<32x192xf32>
    %229 = tpu.matmul %226, %228, %cst_95 {dimension_numbers = #tpu.dot_dimension_numbers<[1], [0], [0], [1], [0, 0, 1, 1], [], []>} : vector<32x64xf32>, vector<64x192xf32>, vector<32x192xf32> -> vector<32x192xf32>
    %c1_96 = arith.constant 1 : index
    %c0_97 = arith.constant 0 : index
    %c0_98 = arith.constant 0 : index
    %230 = vector.load %arg6[%c1_96, %c0_97, %c0_98] : memref<2x1x192xf32, #tpu.memory_space<vmem>>, vector<1x1x192xf32>
    %231 = vector.shape_cast %230 : vector<1x1x192xf32> to vector<1x192xf32>
    %232 = vector.broadcast %231 : vector<1x192xf32> to vector<32x192xf32>
    %233 = arith.addf %229, %232 : vector<32x192xf32>
    %234 = vector.extract_strided_slice %233 {offsets = [0, 0], sizes = [32, 64], strides = [1, 1]} : vector<32x192xf32> to vector<32x64xf32>
    %cst_99 = arith.constant 0.353553385 : f32
    %235 = vector.broadcast %cst_99 : f32 to vector<32x64xf32>
    %236 = arith.mulf %234, %235 : vector<32x64xf32>
    %237 = vector.extract_strided_slice %233 {offsets = [0, 64], sizes = [32, 64], strides = [1, 1]} : vector<32x192xf32> to vector<32x64xf32>
    %238 = vector.extract_strided_slice %233 {offsets = [0, 128], sizes = [32, 64], strides = [1, 1]} : vector<32x192xf32> to vector<32x64xf32>
    %239 = vector.extract_strided_slice %236 {offsets = [0, 0], sizes = [32, 8], strides = [1, 1]} : vector<32x64xf32> to vector<32x8xf32>
    %240 = vector.extract_strided_slice %237 {offsets = [0, 0], sizes = [32, 8], strides = [1, 1]} : vector<32x64xf32> to vector<32x8xf32>
    %cst_100 = arith.constant dense<0.000000e+00> : vector<32x32xf32>
    %241 = tpu.matmul %239, %240, %cst_100 {dimension_numbers = #tpu.dot_dimension_numbers<[1], [1], [0], [0], [0, 0, 1, 0], [], []>} : vector<32x8xf32>, vector<32x8xf32>, vector<32x32xf32> -> vector<32x32xf32>
    %242 = arith.addf %241, %8 : vector<32x32xf32>
    %cst_101 = arith.constant dense<0xFF800000> : vector<32xf32>
    %243 = vector.multi_reduction <maximumf>, %242, %cst_101 [1] : vector<32x32xf32> to vector<32xf32>
    %244 = vector.shape_cast %243 : vector<32xf32> to vector<32x1xf32>
    %245 = vector.broadcast %244 : vector<32x1xf32> to vector<32x32xf32>
    %246 = arith.subf %242, %245 : vector<32x32xf32>
    %247 = math.exp %246 : vector<32x32xf32>
    %cst_102 = arith.constant dense<0.000000e+00> : vector<32xf32>
    %248 = vector.multi_reduction <add>, %247, %cst_102 [1] : vector<32x32xf32> to vector<32xf32>
    %249 = vector.shape_cast %248 : vector<32xf32> to vector<32x1xf32>
    %250 = tpu.reciprocal %249 {approx = true} : vector<32x1xf32> -> vector<32x1xf32>
    %251 = vector.broadcast %250 : vector<32x1xf32> to vector<32x32xf32>
    %252 = arith.mulf %247, %251 : vector<32x32xf32>
    %253 = vector.extract_strided_slice %238 {offsets = [0, 0], sizes = [32, 8], strides = [1, 1]} : vector<32x64xf32> to vector<32x8xf32>
    %cst_103 = arith.constant dense<0.000000e+00> : vector<32x8xf32>
    %254 = tpu.matmul %252, %253, %cst_103 {dimension_numbers = #tpu.dot_dimension_numbers<[1], [0], [0], [1], [0, 0, 1, 1], [], []>} : vector<32x32xf32>, vector<32x8xf32>, vector<32x8xf32> -> vector<32x8xf32>
    %255 = vector.extract_strided_slice %236 {offsets = [0, 8], sizes = [32, 8], strides = [1, 1]} : vector<32x64xf32> to vector<32x8xf32>
    %256 = vector.extract_strided_slice %237 {offsets = [0, 8], sizes = [32, 8], strides = [1, 1]} : vector<32x64xf32> to vector<32x8xf32>
    %cst_104 = arith.constant dense<0.000000e+00> : vector<32x32xf32>
    %257 = tpu.matmul %255, %256, %cst_104 {dimension_numbers = #tpu.dot_dimension_numbers<[1], [1], [0], [0], [0, 0, 1, 0], [], []>} : vector<32x8xf32>, vector<32x8xf32>, vector<32x32xf32> -> vector<32x32xf32>
    %258 = arith.addf %257, %8 : vector<32x32xf32>
    %cst_105 = arith.constant dense<0xFF800000> : vector<32xf32>
    %259 = vector.multi_reduction <maximumf>, %258, %cst_105 [1] : vector<32x32xf32> to vector<32xf32>
    %260 = vector.shape_cast %259 : vector<32xf32> to vector<32x1xf32>
    %261 = vector.broadcast %260 : vector<32x1xf32> to vector<32x32xf32>
    %262 = arith.subf %258, %261 : vector<32x32xf32>
    %263 = math.exp %262 : vector<32x32xf32>
    %cst_106 = arith.constant dense<0.000000e+00> : vector<32xf32>
    %264 = vector.multi_reduction <add>, %263, %cst_106 [1] : vector<32x32xf32> to vector<32xf32>
    %265 = vector.shape_cast %264 : vector<32xf32> to vector<32x1xf32>
    %266 = tpu.reciprocal %265 {approx = true} : vector<32x1xf32> -> vector<32x1xf32>
    %267 = vector.broadcast %266 : vector<32x1xf32> to vector<32x32xf32>
    %268 = arith.mulf %263, %267 : vector<32x32xf32>
    %269 = vector.extract_strided_slice %238 {offsets = [0, 8], sizes = [32, 8], strides = [1, 1]} : vector<32x64xf32> to vector<32x8xf32>
    %cst_107 = arith.constant dense<0.000000e+00> : vector<32x8xf32>
    %270 = tpu.matmul %268, %269, %cst_107 {dimension_numbers = #tpu.dot_dimension_numbers<[1], [0], [0], [1], [0, 0, 1, 1], [], []>} : vector<32x32xf32>, vector<32x8xf32>, vector<32x8xf32> -> vector<32x8xf32>
    %271 = vector.extract_strided_slice %236 {offsets = [0, 16], sizes = [32, 8], strides = [1, 1]} : vector<32x64xf32> to vector<32x8xf32>
    %272 = vector.extract_strided_slice %237 {offsets = [0, 16], sizes = [32, 8], strides = [1, 1]} : vector<32x64xf32> to vector<32x8xf32>
    %cst_108 = arith.constant dense<0.000000e+00> : vector<32x32xf32>
    %273 = tpu.matmul %271, %272, %cst_108 {dimension_numbers = #tpu.dot_dimension_numbers<[1], [1], [0], [0], [0, 0, 1, 0], [], []>} : vector<32x8xf32>, vector<32x8xf32>, vector<32x32xf32> -> vector<32x32xf32>
    %274 = arith.addf %273, %8 : vector<32x32xf32>
    %cst_109 = arith.constant dense<0xFF800000> : vector<32xf32>
    %275 = vector.multi_reduction <maximumf>, %274, %cst_109 [1] : vector<32x32xf32> to vector<32xf32>
    %276 = vector.shape_cast %275 : vector<32xf32> to vector<32x1xf32>
    %277 = vector.broadcast %276 : vector<32x1xf32> to vector<32x32xf32>
    %278 = arith.subf %274, %277 : vector<32x32xf32>
    %279 = math.exp %278 : vector<32x32xf32>
    %cst_110 = arith.constant dense<0.000000e+00> : vector<32xf32>
    %280 = vector.multi_reduction <add>, %279, %cst_110 [1] : vector<32x32xf32> to vector<32xf32>
    %281 = vector.shape_cast %280 : vector<32xf32> to vector<32x1xf32>
    %282 = tpu.reciprocal %281 {approx = true} : vector<32x1xf32> -> vector<32x1xf32>
    %283 = vector.broadcast %282 : vector<32x1xf32> to vector<32x32xf32>
    %284 = arith.mulf %279, %283 : vector<32x32xf32>
    %285 = vector.extract_strided_slice %238 {offsets = [0, 16], sizes = [32, 8], strides = [1, 1]} : vector<32x64xf32> to vector<32x8xf32>
    %cst_111 = arith.constant dense<0.000000e+00> : vector<32x8xf32>
    %286 = tpu.matmul %284, %285, %cst_111 {dimension_numbers = #tpu.dot_dimension_numbers<[1], [0], [0], [1], [0, 0, 1, 1], [], []>} : vector<32x32xf32>, vector<32x8xf32>, vector<32x8xf32> -> vector<32x8xf32>
    %287 = vector.extract_strided_slice %236 {offsets = [0, 24], sizes = [32, 8], strides = [1, 1]} : vector<32x64xf32> to vector<32x8xf32>
    %288 = vector.extract_strided_slice %237 {offsets = [0, 24], sizes = [32, 8], strides = [1, 1]} : vector<32x64xf32> to vector<32x8xf32>
    %cst_112 = arith.constant dense<0.000000e+00> : vector<32x32xf32>
    %289 = tpu.matmul %287, %288, %cst_112 {dimension_numbers = #tpu.dot_dimension_numbers<[1], [1], [0], [0], [0, 0, 1, 0], [], []>} : vector<32x8xf32>, vector<32x8xf32>, vector<32x32xf32> -> vector<32x32xf32>
    %290 = arith.addf %289, %8 : vector<32x32xf32>
    %cst_113 = arith.constant dense<0xFF800000> : vector<32xf32>
    %291 = vector.multi_reduction <maximumf>, %290, %cst_113 [1] : vector<32x32xf32> to vector<32xf32>
    %292 = vector.shape_cast %291 : vector<32xf32> to vector<32x1xf32>
    %293 = vector.broadcast %292 : vector<32x1xf32> to vector<32x32xf32>
    %294 = arith.subf %290, %293 : vector<32x32xf32>
    %295 = math.exp %294 : vector<32x32xf32>
    %cst_114 = arith.constant dense<0.000000e+00> : vector<32xf32>
    %296 = vector.multi_reduction <add>, %295, %cst_114 [1] : vector<32x32xf32> to vector<32xf32>
    %297 = vector.shape_cast %296 : vector<32xf32> to vector<32x1xf32>
    %298 = tpu.reciprocal %297 {approx = true} : vector<32x1xf32> -> vector<32x1xf32>
    %299 = vector.broadcast %298 : vector<32x1xf32> to vector<32x32xf32>
    %300 = arith.mulf %295, %299 : vector<32x32xf32>
    %301 = vector.extract_strided_slice %238 {offsets = [0, 24], sizes = [32, 8], strides = [1, 1]} : vector<32x64xf32> to vector<32x8xf32>
    %cst_115 = arith.constant dense<0.000000e+00> : vector<32x8xf32>
    %302 = tpu.matmul %300, %301, %cst_115 {dimension_numbers = #tpu.dot_dimension_numbers<[1], [0], [0], [1], [0, 0, 1, 1], [], []>} : vector<32x32xf32>, vector<32x8xf32>, vector<32x8xf32> -> vector<32x8xf32>
    %303 = vector.extract_strided_slice %236 {offsets = [0, 32], sizes = [32, 8], strides = [1, 1]} : vector<32x64xf32> to vector<32x8xf32>
    %304 = vector.extract_strided_slice %237 {offsets = [0, 32], sizes = [32, 8], strides = [1, 1]} : vector<32x64xf32> to vector<32x8xf32>
    %cst_116 = arith.constant dense<0.000000e+00> : vector<32x32xf32>
    %305 = tpu.matmul %303, %304, %cst_116 {dimension_numbers = #tpu.dot_dimension_numbers<[1], [1], [0], [0], [0, 0, 1, 0], [], []>} : vector<32x8xf32>, vector<32x8xf32>, vector<32x32xf32> -> vector<32x32xf32>
    %306 = arith.addf %305, %8 : vector<32x32xf32>
    %cst_117 = arith.constant dense<0xFF800000> : vector<32xf32>
    %307 = vector.multi_reduction <maximumf>, %306, %cst_117 [1] : vector<32x32xf32> to vector<32xf32>
    %308 = vector.shape_cast %307 : vector<32xf32> to vector<32x1xf32>
    %309 = vector.broadcast %308 : vector<32x1xf32> to vector<32x32xf32>
    %310 = arith.subf %306, %309 : vector<32x32xf32>
    %311 = math.exp %310 : vector<32x32xf32>
    %cst_118 = arith.constant dense<0.000000e+00> : vector<32xf32>
    %312 = vector.multi_reduction <add>, %311, %cst_118 [1] : vector<32x32xf32> to vector<32xf32>
    %313 = vector.shape_cast %312 : vector<32xf32> to vector<32x1xf32>
    %314 = tpu.reciprocal %313 {approx = true} : vector<32x1xf32> -> vector<32x1xf32>
    %315 = vector.broadcast %314 : vector<32x1xf32> to vector<32x32xf32>
    %316 = arith.mulf %311, %315 : vector<32x32xf32>
    %317 = vector.extract_strided_slice %238 {offsets = [0, 32], sizes = [32, 8], strides = [1, 1]} : vector<32x64xf32> to vector<32x8xf32>
    %cst_119 = arith.constant dense<0.000000e+00> : vector<32x8xf32>
    %318 = tpu.matmul %316, %317, %cst_119 {dimension_numbers = #tpu.dot_dimension_numbers<[1], [0], [0], [1], [0, 0, 1, 1], [], []>} : vector<32x32xf32>, vector<32x8xf32>, vector<32x8xf32> -> vector<32x8xf32>
    %319 = vector.extract_strided_slice %236 {offsets = [0, 40], sizes = [32, 8], strides = [1, 1]} : vector<32x64xf32> to vector<32x8xf32>
    %320 = vector.extract_strided_slice %237 {offsets = [0, 40], sizes = [32, 8], strides = [1, 1]} : vector<32x64xf32> to vector<32x8xf32>
    %cst_120 = arith.constant dense<0.000000e+00> : vector<32x32xf32>
    %321 = tpu.matmul %319, %320, %cst_120 {dimension_numbers = #tpu.dot_dimension_numbers<[1], [1], [0], [0], [0, 0, 1, 0], [], []>} : vector<32x8xf32>, vector<32x8xf32>, vector<32x32xf32> -> vector<32x32xf32>
    %322 = arith.addf %321, %8 : vector<32x32xf32>
    %cst_121 = arith.constant dense<0xFF800000> : vector<32xf32>
    %323 = vector.multi_reduction <maximumf>, %322, %cst_121 [1] : vector<32x32xf32> to vector<32xf32>
    %324 = vector.shape_cast %323 : vector<32xf32> to vector<32x1xf32>
    %325 = vector.broadcast %324 : vector<32x1xf32> to vector<32x32xf32>
    %326 = arith.subf %322, %325 : vector<32x32xf32>
    %327 = math.exp %326 : vector<32x32xf32>
    %cst_122 = arith.constant dense<0.000000e+00> : vector<32xf32>
    %328 = vector.multi_reduction <add>, %327, %cst_122 [1] : vector<32x32xf32> to vector<32xf32>
    %329 = vector.shape_cast %328 : vector<32xf32> to vector<32x1xf32>
    %330 = tpu.reciprocal %329 {approx = true} : vector<32x1xf32> -> vector<32x1xf32>
    %331 = vector.broadcast %330 : vector<32x1xf32> to vector<32x32xf32>
    %332 = arith.mulf %327, %331 : vector<32x32xf32>
    %333 = vector.extract_strided_slice %238 {offsets = [0, 40], sizes = [32, 8], strides = [1, 1]} : vector<32x64xf32> to vector<32x8xf32>
    %cst_123 = arith.constant dense<0.000000e+00> : vector<32x8xf32>
    %334 = tpu.matmul %332, %333, %cst_123 {dimension_numbers = #tpu.dot_dimension_numbers<[1], [0], [0], [1], [0, 0, 1, 1], [], []>} : vector<32x32xf32>, vector<32x8xf32>, vector<32x8xf32> -> vector<32x8xf32>
    %335 = vector.extract_strided_slice %236 {offsets = [0, 48], sizes = [32, 8], strides = [1, 1]} : vector<32x64xf32> to vector<32x8xf32>
    %336 = vector.extract_strided_slice %237 {offsets = [0, 48], sizes = [32, 8], strides = [1, 1]} : vector<32x64xf32> to vector<32x8xf32>
    %cst_124 = arith.constant dense<0.000000e+00> : vector<32x32xf32>
    %337 = tpu.matmul %335, %336, %cst_124 {dimension_numbers = #tpu.dot_dimension_numbers<[1], [1], [0], [0], [0, 0, 1, 0], [], []>} : vector<32x8xf32>, vector<32x8xf32>, vector<32x32xf32> -> vector<32x32xf32>
    %338 = arith.addf %337, %8 : vector<32x32xf32>
    %cst_125 = arith.constant dense<0xFF800000> : vector<32xf32>
    %339 = vector.multi_reduction <maximumf>, %338, %cst_125 [1] : vector<32x32xf32> to vector<32xf32>
    %340 = vector.shape_cast %339 : vector<32xf32> to vector<32x1xf32>
    %341 = vector.broadcast %340 : vector<32x1xf32> to vector<32x32xf32>
    %342 = arith.subf %338, %341 : vector<32x32xf32>
    %343 = math.exp %342 : vector<32x32xf32>
    %cst_126 = arith.constant dense<0.000000e+00> : vector<32xf32>
    %344 = vector.multi_reduction <add>, %343, %cst_126 [1] : vector<32x32xf32> to vector<32xf32>
    %345 = vector.shape_cast %344 : vector<32xf32> to vector<32x1xf32>
    %346 = tpu.reciprocal %345 {approx = true} : vector<32x1xf32> -> vector<32x1xf32>
    %347 = vector.broadcast %346 : vector<32x1xf32> to vector<32x32xf32>
    %348 = arith.mulf %343, %347 : vector<32x32xf32>
    %349 = vector.extract_strided_slice %238 {offsets = [0, 48], sizes = [32, 8], strides = [1, 1]} : vector<32x64xf32> to vector<32x8xf32>
    %cst_127 = arith.constant dense<0.000000e+00> : vector<32x8xf32>
    %350 = tpu.matmul %348, %349, %cst_127 {dimension_numbers = #tpu.dot_dimension_numbers<[1], [0], [0], [1], [0, 0, 1, 1], [], []>} : vector<32x32xf32>, vector<32x8xf32>, vector<32x8xf32> -> vector<32x8xf32>
    %351 = vector.extract_strided_slice %236 {offsets = [0, 56], sizes = [32, 8], strides = [1, 1]} : vector<32x64xf32> to vector<32x8xf32>
    %352 = vector.extract_strided_slice %237 {offsets = [0, 56], sizes = [32, 8], strides = [1, 1]} : vector<32x64xf32> to vector<32x8xf32>
    %cst_128 = arith.constant dense<0.000000e+00> : vector<32x32xf32>
    %353 = tpu.matmul %351, %352, %cst_128 {dimension_numbers = #tpu.dot_dimension_numbers<[1], [1], [0], [0], [0, 0, 1, 0], [], []>} : vector<32x8xf32>, vector<32x8xf32>, vector<32x32xf32> -> vector<32x32xf32>
    %354 = arith.addf %353, %8 : vector<32x32xf32>
    %cst_129 = arith.constant dense<0xFF800000> : vector<32xf32>
    %355 = vector.multi_reduction <maximumf>, %354, %cst_129 [1] : vector<32x32xf32> to vector<32xf32>
    %356 = vector.shape_cast %355 : vector<32xf32> to vector<32x1xf32>
    %357 = vector.broadcast %356 : vector<32x1xf32> to vector<32x32xf32>
    %358 = arith.subf %354, %357 : vector<32x32xf32>
    %359 = math.exp %358 : vector<32x32xf32>
    %cst_130 = arith.constant dense<0.000000e+00> : vector<32xf32>
    %360 = vector.multi_reduction <add>, %359, %cst_130 [1] : vector<32x32xf32> to vector<32xf32>
    %361 = vector.shape_cast %360 : vector<32xf32> to vector<32x1xf32>
    %362 = tpu.reciprocal %361 {approx = true} : vector<32x1xf32> -> vector<32x1xf32>
    %363 = vector.broadcast %362 : vector<32x1xf32> to vector<32x32xf32>
    %364 = arith.mulf %359, %363 : vector<32x32xf32>
    %365 = vector.extract_strided_slice %238 {offsets = [0, 56], sizes = [32, 8], strides = [1, 1]} : vector<32x64xf32> to vector<32x8xf32>
    %cst_131 = arith.constant dense<0.000000e+00> : vector<32x8xf32>
    %366 = tpu.matmul %364, %365, %cst_131 {dimension_numbers = #tpu.dot_dimension_numbers<[1], [0], [0], [1], [0, 0, 1, 1], [], []>} : vector<32x32xf32>, vector<32x8xf32>, vector<32x8xf32> -> vector<32x8xf32>
    %367 = tpu.concatenate %254, %270, %286, %302, %318, %334, %350, %366 in 1 : vector<32x8xf32>, vector<32x8xf32>, vector<32x8xf32>, vector<32x8xf32>, vector<32x8xf32>, vector<32x8xf32>, vector<32x8xf32>, vector<32x8xf32> -> vector<32x64xf32>
    %c1_132 = arith.constant 1 : index
    %c0_133 = arith.constant 0 : index
    %c0_134 = arith.constant 0 : index
    %368 = vector.load %arg7[%c1_132, %c0_133, %c0_134] : memref<2x64x64xf32, #tpu.memory_space<vmem>>, vector<1x64x64xf32>
    %369 = vector.shape_cast %368 : vector<1x64x64xf32> to vector<64x64xf32>
    %cst_135 = arith.constant dense<0.000000e+00> : vector<32x64xf32>
    %370 = tpu.matmul %367, %369, %cst_135 {dimension_numbers = #tpu.dot_dimension_numbers<[1], [0], [0], [1], [0, 0, 1, 1], [], []>} : vector<32x64xf32>, vector<64x64xf32>, vector<32x64xf32> -> vector<32x64xf32>
    %c1_136 = arith.constant 1 : index
    %c0_137 = arith.constant 0 : index
    %c0_138 = arith.constant 0 : index
    %371 = vector.load %arg8[%c1_136, %c0_137, %c0_138] : memref<2x1x64xf32, #tpu.memory_space<vmem>>, vector<1x1x64xf32>
    %372 = vector.shape_cast %371 : vector<1x1x64xf32> to vector<1x64xf32>
    %373 = vector.broadcast %372 : vector<1x64xf32> to vector<32x64xf32>
    %374 = arith.addf %370, %373 : vector<32x64xf32>
    %375 = arith.addf %226, %374 : vector<32x64xf32>
    %c1_139 = arith.constant 1 : index
    %c0_140 = arith.constant 0 : index
    %c0_141 = arith.constant 0 : index
    %376 = vector.load %arg9[%c1_139, %c0_140, %c0_141] : memref<2x1x64xf32, #tpu.memory_space<vmem>>, vector<1x1x64xf32>
    %377 = vector.shape_cast %376 : vector<1x1x64xf32> to vector<1x64xf32>
    %c1_142 = arith.constant 1 : index
    %c0_143 = arith.constant 0 : index
    %c0_144 = arith.constant 0 : index
    %378 = vector.load %arg10[%c1_142, %c0_143, %c0_144] : memref<2x1x64xf32, #tpu.memory_space<vmem>>, vector<1x1x64xf32>
    %379 = vector.shape_cast %378 : vector<1x1x64xf32> to vector<1x64xf32>
    %cst_145 = arith.constant dense<0.000000e+00> : vector<32xf32>
    %380 = vector.multi_reduction <add>, %375, %cst_145 [1] : vector<32x64xf32> to vector<32xf32>
    %381 = vector.shape_cast %380 : vector<32xf32> to vector<32x1xf32>
    %cst_146 = arith.constant 6.400000e+01 : f32
    %382 = vector.broadcast %cst_146 : f32 to vector<32x1xf32>
    %383 = arith.divf %381, %382 : vector<32x1xf32>
    %384 = vector.broadcast %383 : vector<32x1xf32> to vector<32x64xf32>
    %385 = arith.subf %375, %384 : vector<32x64xf32>
    %386 = arith.mulf %385, %385 : vector<32x64xf32>
    %cst_147 = arith.constant dense<0.000000e+00> : vector<32xf32>
    %387 = vector.multi_reduction <add>, %386, %cst_147 [1] : vector<32x64xf32> to vector<32xf32>
    %388 = vector.shape_cast %387 : vector<32xf32> to vector<32x1xf32>
    %cst_148 = arith.constant 6.400000e+01 : f32
    %389 = vector.broadcast %cst_148 : f32 to vector<32x1xf32>
    %390 = arith.divf %388, %389 : vector<32x1xf32>
    %391 = vector.broadcast %383 : vector<32x1xf32> to vector<32x64xf32>
    %392 = arith.subf %375, %391 : vector<32x64xf32>
    %cst_149 = arith.constant 9.99999974E-6 : f32
    %393 = vector.broadcast %cst_149 : f32 to vector<32x1xf32>
    %394 = arith.addf %390, %393 : vector<32x1xf32>
    %395 = math.rsqrt %394 : vector<32x1xf32>
    %396 = vector.broadcast %395 : vector<32x1xf32> to vector<32x64xf32>
    %397 = arith.mulf %392, %396 : vector<32x64xf32>
    %398 = vector.broadcast %377 : vector<1x64xf32> to vector<32x64xf32>
    %399 = arith.mulf %397, %398 : vector<32x64xf32>
    %400 = vector.broadcast %379 : vector<1x64xf32> to vector<32x64xf32>
    %401 = arith.addf %399, %400 : vector<32x64xf32>
    %c1_150 = arith.constant 1 : index
    %c0_151 = arith.constant 0 : index
    %c0_152 = arith.constant 0 : index
    %402 = vector.load %arg11[%c1_150, %c0_151, %c0_152] : memref<2x64x128xf32, #tpu.memory_space<vmem>>, vector<1x64x128xf32>
    %403 = vector.shape_cast %402 : vector<1x64x128xf32> to vector<64x128xf32>
    %cst_153 = arith.constant dense<0.000000e+00> : vector<32x128xf32>
    %404 = tpu.matmul %401, %403, %cst_153 {dimension_numbers = #tpu.dot_dimension_numbers<[1], [0], [0], [1], [0, 0, 1, 1], [], []>} : vector<32x64xf32>, vector<64x128xf32>, vector<32x128xf32> -> vector<32x128xf32>
    %c1_154 = arith.constant 1 : index
    %c0_155 = arith.constant 0 : index
    %c0_156 = arith.constant 0 : index
    %405 = vector.load %arg12[%c1_154, %c0_155, %c0_156] : memref<2x1x128xf32, #tpu.memory_space<vmem>>, vector<1x1x128xf32>
    %406 = vector.shape_cast %405 : vector<1x1x128xf32> to vector<1x128xf32>
    %407 = vector.broadcast %406 : vector<1x128xf32> to vector<32x128xf32>
    %408 = arith.addf %404, %407 : vector<32x128xf32>
    %cst_157 = arith.constant 0.000000e+00 : f32
    %409 = vector.broadcast %cst_157 : f32 to vector<32x128xf32>
    %410 = arith.maximumf %408, %409 : vector<32x128xf32>
    %c1_158 = arith.constant 1 : index
    %c0_159 = arith.constant 0 : index
    %c0_160 = arith.constant 0 : index
    %411 = vector.load %arg13[%c1_158, %c0_159, %c0_160] : memref<2x128x64xf32, #tpu.memory_space<vmem>>, vector<1x128x64xf32>
    %412 = vector.shape_cast %411 : vector<1x128x64xf32> to vector<128x64xf32>
    %cst_161 = arith.constant dense<0.000000e+00> : vector<32x64xf32>
    %413 = tpu.matmul %410, %412, %cst_161 {dimension_numbers = #tpu.dot_dimension_numbers<[1], [0], [0], [1], [0, 0, 1, 1], [], []>} : vector<32x128xf32>, vector<128x64xf32>, vector<32x64xf32> -> vector<32x64xf32>
    %c1_162 = arith.constant 1 : index
    %c0_163 = arith.constant 0 : index
    %c0_164 = arith.constant 0 : index
    %414 = vector.load %arg14[%c1_162, %c0_163, %c0_164] : memref<2x1x64xf32, #tpu.memory_space<vmem>>, vector<1x1x64xf32>
    %415 = vector.shape_cast %414 : vector<1x1x64xf32> to vector<1x64xf32>
    %416 = vector.broadcast %415 : vector<1x64xf32> to vector<32x64xf32>
    %417 = arith.addf %413, %416 : vector<32x64xf32>
    %418 = arith.addf %401, %417 : vector<32x64xf32>
    %c1_165 = arith.constant 1 : index
    %c0_166 = arith.constant 0 : index
    %c0_167 = arith.constant 0 : index
    %419 = vector.load %arg15[%c1_165, %c0_166, %c0_167] : memref<2x1x64xf32, #tpu.memory_space<vmem>>, vector<1x1x64xf32>
    %420 = vector.shape_cast %419 : vector<1x1x64xf32> to vector<1x64xf32>
    %c1_168 = arith.constant 1 : index
    %c0_169 = arith.constant 0 : index
    %c0_170 = arith.constant 0 : index
    %421 = vector.load %arg16[%c1_168, %c0_169, %c0_170] : memref<2x1x64xf32, #tpu.memory_space<vmem>>, vector<1x1x64xf32>
    %422 = vector.shape_cast %421 : vector<1x1x64xf32> to vector<1x64xf32>
    %cst_171 = arith.constant dense<0.000000e+00> : vector<32xf32>
    %423 = vector.multi_reduction <add>, %418, %cst_171 [1] : vector<32x64xf32> to vector<32xf32>
    %424 = vector.shape_cast %423 : vector<32xf32> to vector<32x1xf32>
    %cst_172 = arith.constant 6.400000e+01 : f32
    %425 = vector.broadcast %cst_172 : f32 to vector<32x1xf32>
    %426 = arith.divf %424, %425 : vector<32x1xf32>
    %427 = vector.broadcast %426 : vector<32x1xf32> to vector<32x64xf32>
    %428 = arith.subf %418, %427 : vector<32x64xf32>
    %429 = arith.mulf %428, %428 : vector<32x64xf32>
    %cst_173 = arith.constant dense<0.000000e+00> : vector<32xf32>
    %430 = vector.multi_reduction <add>, %429, %cst_173 [1] : vector<32x64xf32> to vector<32xf32>
    %431 = vector.shape_cast %430 : vector<32xf32> to vector<32x1xf32>
    %cst_174 = arith.constant 6.400000e+01 : f32
    %432 = vector.broadcast %cst_174 : f32 to vector<32x1xf32>
    %433 = arith.divf %431, %432 : vector<32x1xf32>
    %434 = vector.broadcast %426 : vector<32x1xf32> to vector<32x64xf32>
    %435 = arith.subf %418, %434 : vector<32x64xf32>
    %cst_175 = arith.constant 9.99999974E-6 : f32
    %436 = vector.broadcast %cst_175 : f32 to vector<32x1xf32>
    %437 = arith.addf %433, %436 : vector<32x1xf32>
    %438 = math.rsqrt %437 : vector<32x1xf32>
    %439 = vector.broadcast %438 : vector<32x1xf32> to vector<32x64xf32>
    %440 = arith.mulf %435, %439 : vector<32x64xf32>
    %441 = vector.broadcast %420 : vector<1x64xf32> to vector<32x64xf32>
    %442 = arith.mulf %440, %441 : vector<32x64xf32>
    %443 = vector.broadcast %422 : vector<1x64xf32> to vector<32x64xf32>
    %444 = arith.addf %442, %443 : vector<32x64xf32>
    %445 = vector.extract_strided_slice %444 {offsets = [28, 0], sizes = [4, 64], strides = [1, 1]} : vector<32x64xf32> to vector<4x64xf32>
    %c0_176 = arith.constant 0 : index
    %c0_177 = arith.constant 0 : index
    %446 = vector.load %arg17[%c0_176, %c0_177] : memref<64x5xf32, #tpu.memory_space<vmem>>, vector<64x5xf32>
    %cst_178 = arith.constant dense<0.000000e+00> : vector<4x5xf32>
    %447 = tpu.matmul %445, %446, %cst_178 {dimension_numbers = #tpu.dot_dimension_numbers<[1], [0], [0], [1], [0, 0, 1, 1], [], []>} : vector<4x64xf32>, vector<64x5xf32>, vector<4x5xf32> -> vector<4x5xf32>
    %c0_179 = arith.constant 0 : index
    %c0_180 = arith.constant 0 : index
    %448 = vector.load %arg18[%c0_179, %c0_180] : memref<1x5xf32, #tpu.memory_space<vmem>>, vector<1x5xf32>
    %449 = vector.broadcast %448 : vector<1x5xf32> to vector<4x5xf32>
    %450 = arith.addf %447, %449 : vector<4x5xf32>
    %c0_181 = arith.constant 0 : index
    %c0_182 = arith.constant 0 : index
    %451 = vector.load %arg19[%c0_181, %c0_182] : memref<4x5xf32, #tpu.memory_space<vmem>>, vector<4x5xf32>
    tpu.vector_store %arg19[%c0_181, %c0_182], %450 {strides = array<i32>} : memref<4x5xf32, #tpu.memory_space<vmem>>, vector<4x5xf32>,
    return
  }
}

</mosaic_0001>

<bundles_post_ra>
// kernel: forward.1
= control target key start
LH: loop header
LB: loop body
LE: loop exit
PB: predicated region body
PF: predicated region fallthrough
CT: control target
= control target key end

     0   :  { %s10725_s0 = inlined_call_operand.vmem [shape: f32[32,5], index: 0, kind: input, shape index: {}]   ;;  %s10726_s1 = inlined_call_operand.vmem [shape: f32[32,32], index: 1, kind: input, shape index: {}]   ;;  %s10727_s2 = inlined_call_operand.vmem [shape: f32[5,64], index: 2, kind: input, shape index: {}]   ;;  %s10728_s3 = inlined_call_operand.hbm [shape: f32[1,64], index: 3, kind: input, shape index: {}]   ;;  %s10729_s4 = inlined_call_operand.hbm [shape: f32[32,64], index: 4, kind: input, shape index: {}]   ;;  %s10730_s5 = inlined_call_operand.vmem [shape: f32[2,64,192], index: 5, kind: input, shape index: {}]   ;;  %s10731_s6 = inlined_call_operand.vmem [shape: f32[2,1,192], index: 6, kind: input, shape index: {}]   ;;  %s10732_s7 = inlined_call_operand.vmem [shape: f32[2,64,64], index: 7, kind: input, shape index: {}]   ;;  %s10733_s8 = inlined_call_operand.vmem [shape: f32[2,1,64], index: 8, kind: input, shape index: {}]   ;;  %s10734_s9 = inlined_call_operand.vmem [shape: f32[2,1,64], index: 9, kind: input, shape index: {}]   ;;  %s10735_s10 = inlined_call_operand.vmem [shape: f32[2,1,64], index: 10, kind: input, shape index: {}]   ;;  %s10736_s11 = inlined_call_operand.hbm [shape: f32[2,64,128], index: 11, kind: input, shape index: {}]   ;;  %s10737_s12 = inlined_call_operand.vmem [shape: f32[2,1,128], index: 12, kind: input, shape index: {}]   ;;  %s10738_s13 = inlined_call_operand.vmem [shape: f32[2,128,64], index: 13, kind: input, shape index: {}]   ;;  %s10739_s14 = inlined_call_operand.hbm [shape: f32[2,1,64], index: 14, kind: input, shape index: {}]   ;;  %s10740_s15 = inlined_call_operand.hbm [shape: f32[2,1,64], index: 15, kind: input, shape index: {}]   ;;  %s10741_s16 = inlined_call_operand.hbm [shape: f32[2,1,64], index: 16, kind: input, shape index: {}]   ;;  %s10742_s17 = inlined_call_operand.vmem [shape: f32[64,5], index: 17, kind: input, shape index: {}]   ;;  %s10743_s18 = inlined_call_operand.hbm [shape: f32[1,5], index: 18, kind: input, shape index: {}]   ;;  %s10744_s19 = inlined_call_operand.hbm [shape: f32[4,5], index: 19, kind: output, shape index: {}]  }
   0x1   :  { %10761 = sst [smem:[#allocation20_spill]] %s10725_s0 }
   0x2   :  { %10762 = sst [smem:[#allocation21_spill]] %s10726_s1 }
   0x3   :  { %10763 = sst [smem:[#allocation22_spill]] %s10727_s2 }
   0x4   :  { %10764 = sst [smem:[#allocation23_spill]] %s10728_s3 }
   0x5   :  { %24 = vsyncpa [#allocation3], 0 }
   0x6   :  { %25 = vsyncpa [#allocation6], 0 }
   0x7   :  { %26 = vsyncpa [#allocation9], 0 }
   0x8   :  { %27 = vsyncpa [#allocation12], 0 }
   0x9   :  { %28 = vsyncpa [#allocation4], 0  ;;  %s8773_s0 = smov [#allocation5]   ;;  %s8587_s1 = scalar_lea.hbm %s10729_s4, 512 }
   0xa   :  { %s50_s30 = sshll.u32 %s8773_s0, 4  ;;  %p8588_p0 = scmp.ne.s32.totalorder %s10729_s4, %s8587_s1  ;;  %s51_s30 = int_to_ptr.vmem [resolvable:$true] %s50_s30 }
   0xb   :  { %p8591_p1 = scmp.lt.u32.totalorder %s8587_s1, %s10729_s4 }
   0xd   :  { %p8593_p2 = pnand %p8591_p1, %p8588_p0 }
   0xf   :  { %8596 = shalt.err (!%p8593_p2)
}
  0x10   :  { %s8597_s25 = scalar_lea.vmem %s51_s30, 512  ;;  %p8602_p4 = scmp.lt.s32.totalorder %s51_s30, %s51_s30 }
  0x11   :  { %p8598_p3 = scmp.ne.s32.totalorder %s51_s30, %s8597_s25  ;;  %p8603_p5 = scmp.lt.s32.totalorder %s8597_s25, %s8597_s25 }
  0x13   :  { %p8604_p6 = por %p8603_p5, %p8602_p4 }
  0x15   :  { %p8605_p7 = pnand %p8604_p6, %p8598_p3 }
  0x17   :  { %8608 = shalt.err (!%p8605_p7)
}
  0x18   :  { %s10748_s3 = smov 128   ;;  %s10749_s26 = smov 8  }
  0x19   :  { %56 = dma.hbm_to_vmem [thread:$0]  %s10729_s4, 512, %s51_s30, [#allocation6], %s10748_s3, %s10748_s3, %s10749_s26  }
  0x1a   :  { %s8776_s29 = smov [#allocation8]   ;;  %s8609_s1 = scalar_lea.hbm %s10739_s14, 32 }
  0x1b   :  { %s90_s0 = sshll.u32 %s8776_s29, 4  ;;  %p8610_p8 = scmp.ne.s32.totalorder %s10739_s14, %s8609_s1  ;;  %s91_s0 = int_to_ptr.vmem [resolvable:$true] %s90_s0 }
  0x1c   :  { %p8613_p9 = scmp.lt.u32.totalorder %s8609_s1, %s10739_s14 }
  0x1e   :  { %p8615_p10 = pnand %p8613_p9, %p8610_p8 }
  0x20   :  { %8618 = shalt.err (!%p8615_p10)
}
  0x21   :  { %s8619_s25 = scalar_lea.vmem %s91_s0, 32  ;;  %p8624_p12 = scmp.lt.s32.totalorder %s91_s0, %s91_s0 }
  0x22   :  { %p8620_p11 = scmp.ne.s32.totalorder %s91_s0, %s8619_s25  ;;  %p8625_p13 = scmp.lt.s32.totalorder %s8619_s25, %s8619_s25 }
  0x24   :  { %p8626_p0 = por %p8625_p13, %p8624_p12 }
  0x26   :  { %p8627_p1 = pnand %p8626_p0, %p8620_p11 }
  0x28   :  { %8630 = shalt.err (!%p8627_p1)
}
  0x29   :  { %s10755_s4 = smov 16   ;;  %s8778_s30 = smov 1  }
  0x2a   :  { %96 = dma.hbm_to_vmem [thread:$0]  %s10739_s14, 32, %s91_s0, [#allocation9], %s10755_s4, %s10755_s4, %s8778_s30  }
  0x2b   :  { %s8779_s29 = smov [#allocation11]   ;;  %s8780_s21 = smov [#allocation2]  }
  0x2c   :  { %s114_s20 = sshll.u32 %s8779_s29, 4  ;;  %s41_s1 = sshll.u32 %s8780_s21, 4  ;;  %s115_s20 = int_to_ptr.vmem [resolvable:$true] %s114_s20  ;;  %s42_s1 = int_to_ptr.vmem [resolvable:$true] %s41_s1 }
  0x2d   :  { %s8631_s23 = scalar_lea.hbm %s10741_s16, 32 }
  0x2e   :  { %p8632_p2 = scmp.ne.s32.totalorder %s10741_s16, %s8631_s23  ;;  %p8635_p3 = scmp.lt.u32.totalorder %s8631_s23, %s10741_s16 }
  0x30   :  { %p8637_p4 = pnand %p8635_p3, %p8632_p2 }
  0x32   :  { %8640 = shalt.err (!%p8637_p4)
}
  0x33   :  { %s8641_s14 = scalar_lea.vmem %s115_s20, 32  ;;  %p8646_p6 = scmp.lt.s32.totalorder %s115_s20, %s115_s20 }
  0x34   :  { %p8642_p5 = scmp.ne.s32.totalorder %s115_s20, %s8641_s14  ;;  %p8647_p7 = scmp.lt.s32.totalorder %s8641_s14, %s8641_s14 }
  0x36   :  { %p8648_p8 = por %p8647_p7, %p8646_p6 }
  0x38   :  { %p8649_p9 = pnand %p8648_p8, %p8642_p5 }
  0x3a   :  { %8652 = shalt.err (!%p8649_p9)
}
  0x3b   :  { %120 = dma.hbm_to_vmem [thread:$0]  %s10741_s16, 32, %s115_s20, [#allocation12], %s10755_s4, %s10755_s4, %s8778_s30  }
  0x3c   :  { %s10765_s3 = sld [smem:[#allocation23_spill]] }
  0x42   :  { %s8653_s26 = scalar_lea.hbm %s10765_s3, 16 }
  0x43   :  { %p8654_p10 = scmp.ne.s32.totalorder %s10765_s3, %s8653_s26  ;;  %p8657_p11 = scmp.lt.u32.totalorder %s8653_s26, %s10765_s3 }
  0x45   :  { %p8659_p12 = pnand %p8657_p11, %p8654_p10 }
  0x47   :  { %8662 = shalt.err (!%p8659_p12)
}
  0x48   :  { %s8663_s24 = scalar_lea.vmem %s42_s1, 16  ;;  %s8667_s25 = scalar_lea.vmem %s42_s1, 32 }
  0x49   :  { %p8664_p13 = scmp.ne.s32.totalorder %s42_s1, %s8663_s24  ;;  %p8668_p0 = scmp.lt.s32.totalorder %s42_s1, %s42_s1 }
  0x4a   :  { %p8669_p1 = scmp.lt.s32.totalorder %s8667_s25, %s8663_s24 }
  0x4c   :  { %p8670_p2 = por %p8669_p1, %p8668_p0 }
  0x4e   :  { %p8671_p3 = pnand %p8670_p2, %p8664_p13 }
  0x50   :  { %8674 = shalt.err (!%p8671_p3)
}
  0x51   :  { %44 = dma.hbm_to_vmem [thread:$0]  %s10765_s3, 16, %s42_s1, [#allocation3]  }
  0x52   :  { %s8781_s14 = smov [#allocation7]   ;;  %s8782_s27 = smov [#allocation10]  }
  0x53   :  { %s74_s0 = sshll.u32 %s8781_s14, 4  ;;  %s102_s28 = sshll.u32 %s8782_s27, 4  ;;  %s75_s0 = int_to_ptr.vmem [resolvable:$true] %s74_s0  ;;  %s8958_s28 = int_to_ptr.vmem [resolvable:$true] %s102_s28 }
  0x54   :  { %s8675_s21 = scalar_lea.hbm %s10736_s11, 2048 }
  0x55   :  { %p8676_p4 = scmp.ne.s32.totalorder %s10736_s11, %s8675_s21  ;;  %p8679_p5 = scmp.lt.u32.totalorder %s8675_s21, %s10736_s11 }
  0x57   :  { %p8681_p6 = pnand %p8679_p5, %p8676_p4 }
  0x59   :  { %8684 = shalt.err (!%p8681_p6)
}
  0x5a   :  { %s8685_s1 = scalar_lea.vmem %s75_s0, 2048  ;;  %p8690_p8 = scmp.lt.s32.totalorder %s75_s0, %s75_s0 }
  0x5b   :  { %p8686_p7 = scmp.ne.s32.totalorder %s75_s0, %s8685_s1  ;;  %p8691_p9 = scmp.lt.s32.totalorder %s8685_s1, %s8685_s1 }
  0x5d   :  { %p8692_p10 = por %p8691_p9, %p8690_p8 }
  0x5f   :  { %p8693_p11 = pnand %p8692_p10, %p8686_p7 }
  0x61   :  { %8696 = shalt.err (!%p8693_p11)
}
  0x62   :  { %s10766_s3 = smov 8   ;;  %s10767_s25 = smov 128  }
  0x63   :  { %80 = dma.hbm_to_vmem [thread:$0]  %s10736_s11, 2048, %s75_s0, [#allocation6], %s10767_s25, %s10767_s25, %s10766_s3  }
  0x64   :  { %s8697_s29 = scalar_lea.hbm %s10740_s15, 32 }
  0x65   :  { %p8698_p12 = scmp.ne.s32.totalorder %s10740_s15, %s8697_s29  ;;  %p8701_p13 = scmp.lt.u32.totalorder %s8697_s29, %s10740_s15 }
  0x67   :  { %p8703_p0 = pnand %p8701_p13, %p8698_p12 }
  0x69   :  { %8706 = shalt.err (!%p8703_p0)
}
  0x6a   :  { %s8707_s23 = scalar_lea.vmem %s8958_s28, 32  ;;  %p8712_p2 = scmp.lt.s32.totalorder %s8958_s28, %s8958_s28 }
  0x6b   :  { %p8708_p1 = scmp.ne.s32.totalorder %s8958_s28, %s8707_s23  ;;  %p8713_p3 = scmp.lt.s32.totalorder %s8707_s23, %s8707_s23 }
  0x6d   :  { %p8714_p4 = por %p8713_p3, %p8712_p2 }
  0x6f   :  { %p8715_p5 = pnand %p8714_p4, %p8708_p1 }
  0x71   :  { %8718 = shalt.err (!%p8715_p5)
}
  0x72   :  { %108 = dma.hbm_to_vmem [thread:$0]  %s10740_s15, 32, %s8958_s28, [#allocation9], %s10755_s4, %s10755_s4, %s8778_s30  }
  0x73   :  { %s8783_s24 = smov [#allocation13]   ;;  %s8719_s20 = scalar_lea.hbm %s10743_s18, 16 }
  0x74   :  { %s129_s1 = sshll.u32 %s8783_s24, 4  ;;  %p8720_p6 = scmp.ne.s32.totalorder %s10743_s18, %s8719_s20  ;;  %s130_s1 = int_to_ptr.vmem [resolvable:$true] %s129_s1 }
  0x75   :  { %p8723_p7 = scmp.lt.u32.totalorder %s8719_s20, %s10743_s18 }
  0x77   :  { %p8725_p8 = pnand %p8723_p7, %p8720_p6 }
  0x79   :  { %8728 = shalt.err (!%p8725_p8)
}
  0x7a   :  { %s8729_s21 = scalar_lea.vmem %s130_s1, 16  ;;  %s8733_s15 = scalar_lea.vmem %s130_s1, 32 }
  0x7b   :  { %p8730_p9 = scmp.ne.s32.totalorder %s130_s1, %s8729_s21  ;;  %p8734_p10 = scmp.lt.s32.totalorder %s130_s1, %s130_s1 }
  0x7c   :  { %p8735_p11 = scmp.lt.s32.totalorder %s8733_s15, %s8729_s21 }
  0x7e   :  { %p8736_p12 = por %p8735_p11, %p8734_p10 }
  0x80   :  { %p8737_p13 = pnand %p8736_p12, %p8730_p9 }
  0x82   :  { %8740 = shalt.err (!%p8737_p13)
}
  0x83   :  { %132 = dma.hbm_to_vmem [thread:$0]  %s10743_s18, 16, %s130_s1, [#allocation12]  }
  0x84   :  { %8763 = dma.done.wait [#allocation3], 16  }
  0x85   :  { %8764 = vsyncadd [#allocation3], 4294967280 }
  0x86   :  { %8765 = dma.done.wait [#allocation6], 2560  }
  0x87   :  { %8766 = vsyncadd [#allocation6], 4294964736 }
  0x88   :  { %8767 = dma.done.wait [#allocation9], 64  }
  0x89   :  { %8768 = vsyncadd [#allocation9], 4294967232 }
  0x8a   :  { %8769 = dma.done.wait [#allocation12], 48  }
  0x8b   :  { %8770 = vsyncadd [#allocation12], 4294967248  ;;  %vm179_vm0 = vcmask 1044480   ;;  %vm166_vm1 = vcmask 39936   ;;  %s10768_s23 = sld [smem:[#allocation22_spill]]  ;;  %s10769_s24 = sld [smem:[#allocation20_spill]]  ;;  %v298_v47 = vlaneseq }
  0x8c   :  { %v281_v4 = vld [vmem:[%s10730_s5 + $0x8] sm:$0xff]  ;;  %v283_v6 = vld [vmem:[%s10730_s5 + $0x18] sm:$0xff]  ;;  %v280_v7 = vld [vmem:[%s10730_s5] sm:$0xff]  ;;  %v8784_v29 = vmov 0.0   ;;  %vm308_vm2 = vcmask 523264   ;;  %vm426_vm3 = vcmask 64512  }
  0x8d   :  { %v282_v8 = vld [vmem:[%s10730_s5 + $0x10] sm:$0xff]  ;;  %v7473_v9 = vpack.c.bf16 %v283_v6, %v281_v4  ;;  %v285_v11 = vld [vmem:[%s10730_s5 + $0x28] sm:$0xff]  ;;  %v287_v12 = vld [vmem:[%s10730_s5 + $0x38] sm:$0xff]  ;;  %385 = vmatprep.mubr.f32.mxu1 %v8784_v29  ;;  %v9094_v48 = vshrl.u32 %v298_v47, 7  ;;  %s8785_s1 = smov 64   ;;  %s8786_s16 = smov 56  }
  0x8e   :  { %v7475_v10 = vpack.c.bf16 %v282_v8, %v280_v7  ;;  %v284_v13 = vld [vmem:[%s10730_s5 + $0x20] sm:$0xff]  ;;  %v7477_v14 = vpack.c.bf16 %v287_v12, %v285_v11  ;;  %v286_v15 = vld [vmem:[%s10730_s5 + $0x30] sm:$0xff]  ;;  %v289_v16 = vld [vmem:[%s10730_s5 + $0x48] sm:$0xff]  ;;  %s8787_s20 = smov 48   ;;  %s8788_s14 = smov 120   ;;  %vm532_vm5 = vcmask 261120  }
  0x8f   :  { %v291_v17 = vld [vmem:[%s10730_s5 + $0x58] sm:$0xff]  ;;  %7474 = vmatprep.subr.bf16.mxu1 %v7473_v9  ;;  %v7479_v18 = vpack.c.bf16 %v286_v15, %v284_v13  ;;  %v288_v20 = vld [vmem:[%s10730_s5 + $0x40] sm:$0xff]  ;;  %v290_v21 = vld [vmem:[%s10730_s5 + $0x50] sm:$0xff]  ;;  %v300_v49 = vsub.s32 0, %v9094_v48  ;;  %v304_v52 = vsub.s32 1, %v9094_v48  ;;  %s8789_s27 = smov 112  }
  0x90   :  { %7476 = vmatpush1.bf16.msra.mxu1 %v7475_v10  ;;  %v7481_v19 = vpack.c.bf16 %v291_v17, %v289_v16  ;;  %v7483_v22 = vpack.c.bf16 %v290_v21, %v288_v20  ;;  %v293_v23 = vld [vmem:[%s10730_s5 + $0x68] sm:$0xff]  ;;  %v295_v24 = vld [vmem:[%s10730_s5 + $0x78] sm:$0xff]  ;;  %v292_v26 = vld [vmem:[%s10730_s5 + $0x60] sm:$0xff]  ;;  %s10772_s21 = sld [smem:[#allocation21_spill]]  ;;  %s8790_s11 = smov 40   ;;  %vm2684_vm6 = vcmask 130048  }
  0x91   :  { %v158_v0 = vld [vmem:[%s10768_s23] sm:$0x1f]  ;;  %v155_v2 = vld [vmem:[%s10769_s24 + $0x8] sm:$0xff]  ;;  %v156_v3 = vld [vmem:[%s10769_s24 + $0x10] sm:$0xff]  ;;  %7478 = vmatprep.subr.bf16.mxu1 %v7477_v14  ;;  %v7485_v25 = vpack.c.bf16 %v295_v24, %v293_v23  ;;  %s8791_s0 = smov 104   ;;  %s8793_s25 = smov 96  }
  0x92   :  { %v154_v1 = vld [vmem:[%s10769_s24] sm:$0xff]  ;;  %6834 = vmatprep.subr.msk.mxu0 %vm179_vm0, %v158_v0  ;;  %v157_v5 = vld [vmem:[%s10769_s24 + $0x18] sm:$0xff]  ;;  %v294_v27 = vld [vmem:[%s10730_s5 + $0x70] sm:$0xff]  ;;  %s8792_s24 = smov 32   ;;  %s10757_s18 = smov 88   ;;  %vm2689_vm7 = vcmask 195584  }
  0x93   :  { %6836 = vmatprep.mubr.msk.f32.mxu0 %vm166_vm1, %v154_v1  ;;  %6835 = vmatpush3.msk.msra.mxu0 %vm179_vm0, %v158_v0  ;;  %v7487_v28 = vpack.c.bf16 %v294_v27, %v292_v26  ;;  %v6193_v30 = vld [vmem:[#allocation2] ss:$0 sm:$0xff]  ;;  %v268_v33 = vld [vmem:[#allocation5] sm:$0xff]  ;;  %v269_v38 = vld [vmem:[#allocation5 + $0x8] sm:$0xff]  ;;  %s10759_s29 = smov 24   ;;  %s10753_s26 = smov 80  }
  0x94   :  { %6837 = vmatmul.mubr.msk.f32.vlgmr.msra.gmra.mrb[0].mxu0 %vm166_vm1, %v155_v2  ;;  %7480 = vmatpush1.bf16.msra.mxu1 %v7479_v18  ;;  %v270_v41 = vld [vmem:[#allocation5 + $0x10] sm:$0xff]  ;;  %v271_v45 = vld [vmem:[#allocation5 + $0x18] sm:$0xff]  ;;  %vm9163_vm4 = vmpackc.low %vm426_vm3, %vm426_vm3  ;;  %s10751_s28 = smov 72   ;;  %vm2698_vm8 = vcmask 326656   ;;  %vm2703_vm9 = vcmask 392192   ;;  %vm2708_vm10 = vcmask 457728  }
  0x95   :  { %6839 = vmatprep.mubr.msk.f32.mxu0 %vm166_vm1, %v156_v3  ;;  %7482 = vmatprep.subr.bf16.mxu1 %v7481_v19  ;;  %v296_v50 = vld [vmem:[%s10731_s6] sm:$0x3]  ;;  %vm8799_vm11 = vmmov 0   ;;  %vm6173_vm12 = vcmask 35840  }
  0x96   :  { %v301_v51 = vrot.slane %v296_v50, %v300_v49  ;;  %v305_v56 = vrot.slane %v296_v50, %v304_v52 }
  0x98   :  { %6840 = vmatmul.mubr.msk.f32.gmra.mrb[2].mxu0 %vm166_vm1, %v157_v5  ;;  %7484 = vmatpush1.bf16.msra.mxu1 %v7483_v22 }
  0x99   :  { %7486 = vmatprep.subr.bf16.mxu1 %v7485_v25 }
  0x9c   :  { %7488 = vmatpush1.bf16.msra.mxu1 %v7487_v28 }
 0x167   :  { %v6838_v31 = vpop.f32.mrb[0].mxu0 }
 0x168   :  { %v249_v32 = vpop.f32.mrb[1].mxu0  ;;  %v255_v35 = vadd.f32 %v6838_v31, %v6193_v30 }
 0x169   :  { %v250_v34 = vadd.f32 %v6193_v30, %v249_v32 }
 0x16a   :  { %v9080_v42 = vadd.f32 %v269_v38, %v255_v35 }
 0x16b   :  { %v9075_v36 = vadd.f32 %v268_v33, %v250_v34  ;;  %v6841_v37 = vpop.f32.mrb[2].mxu0 }
 0x16c   :  { %v259_v39 = vpop.f32.mrb[3].mxu0  ;;  %v265_v44 = vadd.f32 %v6841_v37, %v6193_v30 }
 0x16d   :  { %6199 = vmatmul.mubr.msk.f32.vlgmr.msra.gmra.mrb[0].mxu1 %vm308_vm2, %v9075_v36  ;;  %v260_v40 = vadd.f32 %v6193_v30, %v259_v39 }
 0x16e   :  { %391 = vmatprep.mubr.f32.mxu1 %v8784_v29  ;;  %v9090_v46 = vadd.f32 %v271_v45, %v265_v44 }
 0x16f   :  { %v9082_v43 = vadd.f32 %v270_v41, %v260_v40 }
 0x171   :  { %6200 = vmatmul.mubr.msk.f32.gmra.mrb[2].mxu1 %vm308_vm2, %v9080_v42 }
 0x172   :  { %397 = vmatprep.mubr.f32.mxu1 %v8784_v29 }
 0x175   :  { %6201 = vmatmul.mubr.msk.f32.gmra.mrb[4].mxu1 %vm308_vm2, %v9082_v43 }
 0x176   :  { %403 = vmatprep.mubr.f32.mxu1 %v8784_v29 }
 0x179   :  { %6202 = vmatmul.mubr.msk.f32.gmra.mrb[6].mxu1 %vm308_vm2, %v9090_v46 }
 0x240   :  { %v387_v53 = vpop.f32.mrb[0].mxu1 }
 0x241   :  { %v388_v54 = vadd.f32 %v387_v53, %v301_v51  ;;  %v389_v55 = vpop.f32.mrb[1].mxu1 }
 0x242   :  { %v390_v61 = vadd.f32 %v389_v55, %v305_v56 }
 0x243   :  { %v9105_v57 = vmul.f32 0.35355338, %v388_v54 }
 0x244   :  { %v393_v58 = vpop.f32.mrb[2].mxu1 }
 0x245   :  { %v394_v59 = vadd.f32 %v393_v58, %v301_v51  ;;  %v395_v60 = vpop.f32.mrb[3].mxu1  ;;  %6850 = vmatprep.mubr.msk.f32.mxu0 %vm426_vm3, %v9105_v57 }
 0x246   :  { %v396_v62 = vadd.f32 %v395_v60, %v305_v56 }
 0x247   :  { %v9109_v63 = vpack.i.bf16 %v394_v59, %v388_v54  ;;  %v9129_v13 = vmul.f32 0.35355338, %v394_v59 }
 0x248   :  { %v399_v0 = vpop.f32.mrb[4].mxu1  ;;  %v9111_v1 = vpack.i.bf16 %v396_v62, %v390_v61  ;;  %v9113_v2 = vpack.c.bf16 %v396_v62, %v390_v61  ;;  %v9215_v62 = vld [vmem:[%s10772_s21 + $0x8] sm:$0xff] }
 0x249   :  { %v401_v3 = vpop.f32.mrb[5].mxu1  ;;  %7994 = vrot.lane.b32.xlu0 %v9109_v63, %s8785_s1  ;;  %v400_v5 = vadd.f32 %v399_v0, %v301_v51 }
 0x24a   :  { %v402_v8 = vadd.f32 %v401_v3, %v305_v56 }
 0x24b   :  { %v9135_v14 = vmul.f32 0.35355338, %v400_v5 }
 0x24c   :  { %v405_v4 = vpop.f32.mrb[6].mxu1 }
 0x24d   :  { %v406_v6 = vadd.f32 %v405_v4, %v301_v51  ;;  %v407_v7 = vpop.f32.mrb[7].mxu1  ;;  %7999 = vrot.lane.b32.xlu0 %v9109_v63, %s8786_s16 }
 0x24e   :  { %v408_v9 = vadd.f32 %v407_v7, %v305_v56 }
 0x24f   :  { %v9119_v10 = vpack.i.bf16 %v406_v6, %v400_v5  ;;  %v9145_v15 = vmul.f32 0.35355338, %v406_v6  ;;  %v9222_v5 = vld [vmem:[%s10772_s21] sm:$0xff] }
 0x250   :  { %v9121_v11 = vpack.i.bf16 %v408_v9, %v402_v8  ;;  %v9123_v12 = vpack.c.bf16 %v408_v9, %v402_v8 }
 0x251   :  { %8004 = vrot.lane.b32.xlu1 %v9119_v10, %s8785_s1  ;;  %8014 = vrot.lane.b32.xlu0 %v9109_v63, %s8787_s20 }
 0x255   :  { %8009 = vrot.lane.b32.xlu1 %v9119_v10, %s8786_s16  ;;  %676 = vrot.lane.b32.xlu0 %v9129_v13, %s8788_s14 }
 0x259   :  { %678 = vrot.lane.b32.xlu0 %v9135_v14, %s8788_s14  ;;  %674 = vrot.lane.b32.xlu1 %v9105_v57, %s8788_s14 }
 0x25d   :  { %948 = vrot.lane.b32.xlu0 %v9105_v57, %s8789_s27  ;;  %8019 = vrot.lane.b32.xlu1 %v9119_v10, %s8787_s20 }
 0x261   :  { %952 = vrot.lane.b32.xlu0 %v9135_v14, %s8789_s27  ;;  %680 = vrot.lane.b32.xlu1 %v9145_v15, %s8788_s14 }
 0x265   :  { %8029 = vrot.lane.b32.xlu0 %v9121_v11, %s8788_s14  ;;  %950 = vrot.lane.b32.xlu1 %v9129_v13, %s8789_s27 }
 0x269   :  { %954 = vrot.lane.b32.xlu1 %v9145_v15, %s8789_s27 }
 0x26d   :  { %8024 = vrot.lane.b32.xlu1 %v9111_v1, %s8788_s14 }
 0x271   :  { %8034 = vrot.lane.b32.xlu1 %v9111_v1, %s8789_s27 }
 0x2bb   :  { %v7995_v16 = vpop.permute.xlu0 %7994 }
 0x2bc   :  { %v7997_v17 = vunpack.i.h.bf16 %v7995_v16  ;;  %v7996_v18 = vunpack.i.l.bf16 %v7995_v16 }
 0x2be   :  { %v7489_v20 = vpack.c.bf16 %v7997_v17, %v7996_v18 }
 0x2bf   :  { %v8000_v21 = vpop.permute.xlu0 %7999 }
 0x2c0   :  { %v8002_v22 = vunpack.i.h.bf16 %v8000_v21  ;;  %v8001_v23 = vunpack.i.l.bf16 %v8000_v21  ;;  %7491 = vmatprep.subr.msk.bf16.mxu0 %vm9163_vm4, %v7489_v20 }
 0x2c1   :  { %7494 = vmatpush3.bf16.xpose.msk.msra.mxu0 %vm9163_vm4, %v7489_v20  ;;  %v9231_v20 = vld [vmem:[%s10772_s21 + $0x18] sm:$0xff] }
 0x2c2   :  { %v7509_v24 = vpack.c.bf16 %v8002_v22, %v8001_v23  ;;  %v9237_v23 = vld [vmem:[%s10772_s21 + $0x10] sm:$0xff] }
 0x2c3   :  { %v8005_v25 = vpop.permute.xlu1 %8004  ;;  %v8015_v28 = vpop.permute.xlu0 %8014 }
 0x2c4   :  { %v8007_v26 = vunpack.i.h.bf16 %v8005_v25  ;;  %v8006_v27 = vunpack.i.l.bf16 %v8005_v25  ;;  %7511 = vmatprep.subr.msk.bf16.mxu1 %vm9163_vm4, %v7509_v24  ;;  %v8017_v32 = vunpack.i.h.bf16 %v8015_v28  ;;  %v8016_v33 = vunpack.i.l.bf16 %v8015_v28 }
 0x2c5   :  { %7514 = vmatpush3.bf16.xpose.msk.msra.mxu1 %vm9163_vm4, %v7509_v24 }
 0x2c6   :  { %v7495_v30 = vpack.c.bf16 %v8007_v26, %v8006_v27  ;;  %v7529_v39 = vpack.c.bf16 %v8017_v32, %v8016_v33 }
 0x2c7   :  { %v8010_v31 = vpop.permute.xlu1 %8009  ;;  %v677_v40 = vpop.permute.xlu0 %676 }
 0x2c8   :  { %v8012_v34 = vunpack.i.h.bf16 %v8010_v31  ;;  %v8011_v35 = vunpack.i.l.bf16 %v8010_v31  ;;  %7497 = vmatprep.subr.msk.bf16.mxu0 %vm9163_vm4, %v7495_v30 }
 0x2c9   :  { %7500 = vmatpush3.bf16.xpose.msk.msra.mxu0 %vm9163_vm4, %v7495_v30 }
 0x2ca   :  { %v7515_v37 = vpack.c.bf16 %v8012_v34, %v8011_v35  ;;  %7502 = vmatprep.subr.bf16.mxu0 %v9113_v2 }
 0x2cb   :  { %v675_v38 = vpop.permute.xlu1 %674  ;;  %v679_v47 = vpop.permute.xlu0 %678 }
 0x2cc   :  { %7517 = vmatprep.subr.msk.bf16.mxu1 %vm9163_vm4, %v7515_v37  ;;  %6878 = vmatprep.mubr.msk.f32.mxu1 %vm426_vm3, %v675_v38 }
 0x2cd   :  { %7520 = vmatpush3.bf16.xpose.msk.msra.mxu1 %vm9163_vm4, %v7515_v37 }
 0x2ce   :  { %7531 = vmatprep.subr.msk.bf16.mxu1 %vm9163_vm4, %v7529_v39 }
 0x2cf   :  { %v8020_v41 = vpop.permute.xlu1 %8019  ;;  %v949_v54 = vpop.permute.xlu0 %948 }
 0x2d0   :  { %6851 = vmatmul.mubr.msk.f32.vlgmr.msra.gmra.mrb[4].mxu0 %vm426_vm3, %v9129_v13  ;;  %v8022_v44 = vunpack.i.h.bf16 %v8020_v41  ;;  %v8021_v45 = vunpack.i.l.bf16 %v8020_v41 }
 0x2d1   :  { %6853 = vmatprep.mubr.msk.f32.mxu0 %vm426_vm3, %v9135_v14  ;;  %7504 = vmatpush3.bf16.msra.mxu0 %v9113_v2 }
 0x2d2   :  { %7506 = vmatprep.subr.bf16.mxu0 %v9123_v12  ;;  %v7535_v51 = vpack.c.bf16 %v8022_v44, %v8021_v45 }
 0x2d3   :  { %v681_v50 = vpop.permute.xlu1 %680  ;;  %v953_v61 = vpop.permute.xlu0 %952 }
 0x2d4   :  { %6854 = vmatmul.mubr.msk.f32.gmra.mrb[6].mxu0 %vm426_vm3, %v9145_v15  ;;  %6879 = vmatmul.mubr.msk.f32.vlgmr.msra.gmra.mrb[8].mxu1 %vm426_vm3, %v677_v40 }
 0x2d5   :  { %7508 = vmatpush3.bf16.msra.mxu0 %v9123_v12  ;;  %6881 = vmatprep.mubr.msk.f32.mxu1 %vm426_vm3, %v679_v47 }
 0x2d6   :  { %7534 = vmatpush3.bf16.xpose.msk.msra.mxu1 %vm9163_vm4, %v7529_v39 }
 0x2d7   :  { %7537 = vmatprep.subr.msk.bf16.mxu1 %vm9163_vm4, %v7535_v51  ;;  %v951_v53 = vpop.permute.xlu1 %950 }
 0x2d8   :  { %6882 = vmatmul.mubr.msk.f32.gmra.mrb[10].mxu1 %vm426_vm3, %v681_v50 }
 0x2d9   :  { %6906 = vmatprep.mubr.msk.f32.mxu1 %vm426_vm3, %v949_v54 }
 0x2db   :  { %v955_v55 = vpop.permute.xlu1 %954 }
 0x2de   :  { %7540 = vmatpush3.bf16.xpose.msk.msra.mxu1 %vm9163_vm4, %v7535_v51 }
 0x2df   :  { %v8025_v56 = vpop.permute.xlu1 %8024 }
 0x2e0   :  { %v8027_v58 = vunpack.i.h.bf16 %v8025_v56  ;;  %v8026_v59 = vunpack.i.l.bf16 %v8025_v56 }
 0x2e2   :  { %v9206_v60 = vpack.c.bf16 %v8027_v58, %v8026_v59 }
 0x2e3   :  { %v9280_v54 = vpop.permute.xlu1 %8034 }
 0x2e4   :  { %7522 = vmatprep.subr.bf16.mxu0 %v9206_v60 }
 0x2e5   :  { %6907 = vmatmul.mubr.msk.f32.vlgmr.msra.gmra.mrb[12].mxu1 %vm426_vm3, %v951_v53 }
 0x2e6   :  { %6909 = vmatprep.mubr.msk.f32.mxu1 %vm426_vm3, %v953_v61 }
 0x2e9   :  { %6910 = vmatmul.mubr.msk.f32.gmra.mrb[14].mxu1 %vm426_vm3, %v955_v55  ;;  %v9282_v55 = vpop.permute.xlu0 %8029 }
 0x3a3   :  { %v6852_v0 = vpop.f32.mrb[4].mxu0 }
 0x3a4   :  { %v519_v2 = vadd.f32 %v6852_v0, %v9215_v62  ;;  %v513_v3 = vpop.f32.mrb[5].mxu0 }
 0x3a5   :  { %v514_v17 = vadd.f32 %v513_v3, %v9222_v5 }
 0x3a6   :  { %v536_v4 = vsel %vm532_vm5, %v519_v2, -inf }
 0x3a7   :  { %v6880_v6 = vpop.f32.mrb[8].mxu1  ;;  %537 = vmax.xlane.f32.xlu1 %v536_v4  ;;  %v6855_v7 = vpop.f32.mrb[6].mxu0  ;;  %v533_v27 = vsel %vm532_vm5, %v514_v17, -inf }
 0x3a8   :  { %v778_v8 = vadd.f32 %v6880_v6, %v9215_v62  ;;  %v523_v9 = vpop.f32.mrb[7].mxu0  ;;  %v772_v12 = vpop.f32.mrb[9].mxu1  ;;  %v529_v26 = vadd.f32 %v6855_v7, %v9231_v20 }
 0x3a9   :  { %v773_v16 = vadd.f32 %v772_v12, %v9222_v5  ;;  %v9249_v32 = vadd.f32 %v523_v9, %v9237_v23 }
 0x3aa   :  { %v794_v18 = vsel %vm532_vm5, %v778_v8, -inf  ;;  %v542_v31 = vsel %vm532_vm5, %v529_v26, -inf }
 0x3ab   :  { %795 = vmax.xlane.f32.xlu0 %v794_v18  ;;  %v6883_v21 = vpop.f32.mrb[10].mxu1  ;;  %v791_v22 = vsel %vm532_vm5, %v773_v16, -inf  ;;  %v539_v39 = vsel %vm532_vm5, %v9249_v32, -inf }
 0x3ac   :  { %v782_v24 = vpop.f32.mrb[11].mxu1  ;;  %792 = vmax.xlane.f32.xlu1 %v791_v22  ;;  %v788_v30 = vadd.f32 %v6883_v21, %v9231_v20 }
 0x3ad   :  { %v9240_v25 = vadd.f32 %v782_v24, %v9237_v23 }
 0x3ae   :  { %v800_v33 = vsel %vm532_vm5, %v788_v30, -inf }
 0x3af   :  { %534 = vmax.xlane.f32.xlu0 %v533_v27  ;;  %v797_v28 = vsel %vm532_vm5, %v9240_v25, -inf }
 0x3b0   :  { %798 = vmax.xlane.f32.xlu1 %v797_v28 }
 0x3b3   :  { %543 = vmax.xlane.f32.xlu0 %v542_v31 }
 0x3b7   :  { %801 = vmax.xlane.f32.xlu0 %v800_v33 }
 0x3b8   :  { %v6908_v34 = vpop.f32.mrb[12].mxu1 }
 0x3b9   :  { %v1046_v35 = vpop.f32.mrb[13].mxu1  ;;  %v9253_v37 = vadd.f32 %v6908_v34, %v9215_v62 }
 0x3ba   :  { %v9256_v38 = vadd.f32 %v1046_v35, %v9222_v5 }
 0x3bb   :  { %540 = vmax.xlane.f32.xlu0 %v539_v39  ;;  %v1068_v47 = vsel %vm532_vm5, %v9253_v37, -inf }
 0x3bc   :  { %v6911_v40 = vpop.f32.mrb[14].mxu1  ;;  %v1065_v41 = vsel %vm532_vm5, %v9256_v38, -inf }
 0x3bd   :  { %v1056_v44 = vpop.f32.mrb[15].mxu1  ;;  %1066 = vmax.xlane.f32.xlu1 %v1065_v41  ;;  %v9263_v45 = vadd.f32 %v6911_v40, %v9231_v20 }
 0x3be   :  { %v9274_v51 = vadd.f32 %v1056_v44, %v9237_v23 }
 0x3bf   :  { %1069 = vmax.xlane.f32.xlu0 %v1068_v47  ;;  %v1074_v50 = vsel %vm532_vm5, %v9263_v45, -inf }
 0x3c0   :  { %v1071_v53 = vsel %vm532_vm5, %v9274_v51, -inf }
 0x3c3   :  { %1075 = vmax.xlane.f32.xlu0 %v1074_v50 }
 0x3ce   :  { %8044 = vrot.lane.b32.xlu1 %v9109_v63, %s8790_s11 }
 0x3d9   :  { %8039 = vrot.lane.b32.xlu0 %v9121_v11, %s8789_s27 }
 0x3f2   :  { %1072 = vmax.xlane.f32.xlu1 %v1071_v53 }
 0x403   :  { %8049 = vrot.lane.b32.xlu1 %v9119_v10, %s8790_s11 }
 0x434   :  { %v538_v56 = vpop.xlane.xlu1 %537 }
 0x435   :  { %v546_v58 = vsub.f32 %v519_v2, %v538_v56 }
 0x437   :  { %v551_v59 = vmul.f32 1.442695, %v546_v58 }
 0x438   :  { %v796_v61 = vpop.xlane.xlu0 %795 }
 0x439   :  { %8293 = vpow2.f32 %v551_v59  ;;  %v804_v0 = vsub.f32 %v778_v8, %v796_v61  ;;  %v793_v3 = vpop.xlane.xlu1 %792 }
 0x43a   :  { %v803_v6 = vsub.f32 %v773_v16, %v793_v3 }
 0x43b   :  { %v809_v4 = vmul.f32 1.442695, %v804_v0 }
 0x43c   :  { %v535_v7 = vpop.xlane.xlu0 %534  ;;  %v807_v12 = vmul.f32 1.442695, %v803_v6 }
 0x43d   :  { %8295 = vpow2.f32 %v809_v4  ;;  %v545_v9 = vsub.f32 %v514_v17, %v535_v7  ;;  %v799_v2 = vpop.xlane.xlu1 %798 }
 0x43e   :  { %v805_v17 = vsub.f32 %v9240_v25, %v799_v2 }
 0x43f   :  { %v549_v18 = vmul.f32 1.442695, %v545_v9 }
 0x440   :  { %v544_v21 = vpop.xlane.xlu0 %543  ;;  %v811_v41 = vmul.f32 1.442695, %v805_v17 }
 0x441   :  { %8297 = vpow2.f32 %v549_v18  ;;  %v548_v22 = vsub.f32 %v529_v26, %v544_v21 }
 0x442   :  { %8299 = vpow2.f32 %v807_v12 }
 0x443   :  { %v9284_v24 = vpop.eup %8293  ;;  %v555_v27 = vmul.f32 1.442695, %v548_v22 }
 0x444   :  { %v802_v28 = vpop.xlane.xlu0 %801  ;;  %v560_v8 = vsel %vm532_vm5, %v9284_v24, 0.0 }
 0x445   :  { %8301 = vpow2.f32 %v555_v27  ;;  %v806_v31 = vsub.f32 %v788_v30, %v802_v28  ;;  %561 = vadd.xlane.f32.xlu0 %v560_v8 }
 0x447   :  { %v9288_v16 = vpop.eup %8295  ;;  %v813_v33 = vmul.f32 1.442695, %v806_v31 }
 0x448   :  { %v541_v34 = vpop.xlane.xlu0 %540  ;;  %v818_v26 = vsel %vm532_vm5, %v9288_v16, 0.0 }
 0x449   :  { %8303 = vpow2.f32 %v813_v33  ;;  %v547_v35 = vsub.f32 %v9249_v32, %v541_v34  ;;  %819 = vadd.xlane.f32.xlu0 %v818_v26 }
 0x44a   :  { %v1067_v39 = vpop.xlane.xlu1 %1066 }
 0x44b   :  { %v9294_v40 = vpop.eup %8297  ;;  %v553_v44 = vmul.f32 1.442695, %v547_v35  ;;  %v1077_v30 = vsub.f32 %v9256_v38, %v1067_v39 }
 0x44c   :  { %v1070_v47 = vpop.xlane.xlu0 %1069  ;;  %v557_v25 = vsel %vm532_vm5, %v9294_v40, 0.0  ;;  %v9299_v50 = vpop.eup %8299 }
 0x44d   :  { %8305 = vpow2.f32 %v553_v44  ;;  %v1078_v53 = vsub.f32 %v9253_v37, %v1070_v47  ;;  %558 = vadd.xlane.f32.xlu1 %v557_v25  ;;  %v1081_v32 = vmul.f32 1.442695, %v1077_v30  ;;  %v815_v59 = vsel %vm532_vm5, %v9299_v50, 0.0 }
 0x44e   :  { %8307 = vpow2.f32 %v811_v41  ;;  %v9332_v22 = vpop.permute.xlu1 %8044 }
 0x44f   :  { %v9302_v56 = vpop.eup %8301  ;;  %v1083_v58 = vmul.f32 1.442695, %v1078_v53  ;;  %v8032_v53 = vunpack.i.h.bf16 %v9282_v55 }
 0x450   :  { %v566_v38 = vsel %vm532_vm5, %v9302_v56, 0.0  ;;  %v1076_v21 = vpop.xlane.xlu0 %1075 }
 0x451   :  { %8309 = vpow2.f32 %v1083_v58  ;;  %816 = vadd.xlane.f32.xlu1 %v815_v59  ;;  %567 = vadd.xlane.f32.xlu0 %v566_v38  ;;  %v1080_v27 = vsub.f32 %v9263_v45, %v1076_v21 }
 0x452   :  { %8311 = vpow2.f32 %v1081_v32  ;;  %v8031_v32 = vunpack.i.l.bf16 %v9282_v55 }
 0x453   :  { %v9308_v61 = vpop.eup %8303  ;;  %v1087_v28 = vmul.f32 1.442695, %v1080_v27 }
 0x454   :  { %v824_v37 = vsel %vm532_vm5, %v9308_v61, 0.0  ;;  %v9360_v45 = vpop.permute.xlu0 %8039 }
 0x455   :  { %825 = vadd.xlane.f32.xlu0 %v824_v37  ;;  %8313 = vpow2.f32 %v1087_v28 }
 0x457   :  { %v9312_v0 = vpop.eup %8305 }
 0x458   :  { %v563_v3 = vsel %vm532_vm5, %v9312_v0, 0.0  ;;  %v9316_v4 = vpop.eup %8307 }
 0x459   :  { %564 = vadd.xlane.f32.xlu1 %v563_v3  ;;  %v821_v7 = vsel %vm532_vm5, %v9316_v4, 0.0  ;;  %v8037_v3 = vunpack.i.h.bf16 %v9280_v54 }
 0x45b   :  { %v9318_v6 = vpop.eup %8309 }
 0x45c   :  { %v1092_v9 = vsel %vm532_vm5, %v9318_v6, 0.0  ;;  %v9324_v12 = vpop.eup %8311 }
 0x45d   :  { %822 = vadd.xlane.f32.xlu1 %v821_v7  ;;  %1093 = vadd.xlane.f32.xlu0 %v1092_v9  ;;  %v1089_v18 = vsel %vm532_vm5, %v9324_v12, 0.0  ;;  %v8036_v7 = vunpack.i.l.bf16 %v9280_v54  ;;  %v7525_v9 = vpack.c.bf16 %v8032_v53, %v8031_v32  ;;  %v8046_v53 = vunpack.i.l.bf16 %v9332_v22 }
 0x45f   :  { %v9336_v17 = vpop.eup %8313 }
 0x460   :  { %v1098_v33 = vsel %vm532_vm5, %v9336_v17, 0.0 }
 0x461   :  { %1090 = vadd.xlane.f32.xlu1 %v1089_v18 }
 0x472   :  { %1218 = vrot.lane.b32.xlu1 %v9105_v57, %s8791_s0 }
 0x473   :  { %8054 = vrot.lane.b32.xlu0 %v9109_v63, %s8792_s24 }
 0x47f   :  { %v1073_v2 = vpop.xlane.xlu1 %1072 }
 0x480   :  { %v1079_v8 = vsub.f32 %v9274_v51, %v1073_v2 }
 0x482   :  { %v1085_v31 = vmul.f32 1.442695, %v1079_v8 }
 0x483   :  { %v9362_v51 = vpop.permute.xlu1 %8049 }
 0x484   :  { %8315 = vpow2.f32 %v1085_v31 }
 0x48e   :  { %v9340_v34 = vpop.eup %8315 }
 0x48f   :  { %v1095_v26 = vsel %vm532_vm5, %v9340_v34, 0.0 }
 0x492   :  { %1099 = vadd.xlane.f32.xlu0 %v1098_v33 }
 0x496   :  { %1096 = vadd.xlane.f32.xlu1 %v1095_v26 }
 0x4a7   :  { %8059 = vrot.lane.b32.xlu1 %v9119_v10, %s8792_s24 }
 0x4a8   :  { %1220 = vrot.lane.b32.xlu0 %v9129_v13, %s8791_s0 }
 0x4ab   :  { %1224 = vrot.lane.b32.xlu1 %v9145_v15, %s8791_s0 }
 0x4ac   :  { %1222 = vrot.lane.b32.xlu0 %v9135_v14, %s8791_s0 }
 0x4af   :  { %1490 = vrot.lane.b32.xlu1 %v9129_v13, %s8793_s25 }
 0x4b0   :  { %1488 = vrot.lane.b32.xlu0 %v9105_v57, %s8793_s25 }
 0x4b3   :  { %1494 = vrot.lane.b32.xlu1 %v9145_v15, %s8793_s25 }
 0x4b4   :  { %1492 = vrot.lane.b32.xlu0 %v9135_v14, %s8793_s25 }
 0x4d2   :  { %v562_v35 = vpop.xlane.xlu0 %561 }
 0x4d3   :  { %8317 = vrcp.f32 %v562_v35 }
 0x4d6   :  { %v820_v41 = vpop.xlane.xlu0 %819 }
 0x4da   :  { %v559_v39 = vpop.xlane.xlu1 %558 }
 0x4db   :  { %8319 = vrcp.f32 %v559_v39 }
 0x4dd   :  { %v8318_v47 = vpop.eup %8317 }
 0x4de   :  { %v568_v44 = vpop.xlane.xlu0 %567  ;;  %v817_v30 = vpop.xlane.xlu1 %816  ;;  %v574_v37 = vmul.f32 %v8318_v47, %v9284_v24 }
 0x4df   :  { %8321 = vrcp.f32 %v817_v30 }
 0x4e0   :  { %8323 = vrcp.f32 %v568_v44  ;;  %v8041_v44 = vunpack.i.l.bf16 %v9360_v45 }
 0x4e2   :  { %v826_v58 = vpop.xlane.xlu0 %825 }
 0x4e5   :  { %v8320_v25 = vpop.eup %8319 }
 0x4e6   :  { %v565_v59 = vpop.xlane.xlu1 %564  ;;  %v573_v38 = vmul.f32 %v8320_v25, %v9294_v40  ;;  %v7541_v40 = vpack.c.bf16 %v8037_v3, %v8036_v7  ;;  %v8047_v25 = vunpack.i.h.bf16 %v9332_v22  ;;  %v8052_v22 = vunpack.i.h.bf16 %v9362_v51 }
 0x4e7   :  { %8325 = vrcp.f32 %v565_v59 }
 0x4e8   :  { %6864 = vmatprep.mubr.msk.f32.mxu0 %vm532_vm5, %v573_v38  ;;  %8327 = vrcp.f32 %v820_v41  ;;  %v8042_v41 = vunpack.i.h.bf16 %v9360_v45 }
 0x4e9   :  { %6865 = vmatmul.mubr.msk.f32.vlgmr.msra.gmra.mrb[8].mxu0 %vm532_vm5, %v574_v37  ;;  %v8322_v27 = vpop.eup %8321 }
 0x4ea   :  { %7524 = vmatpush3.bf16.msra.mxu0 %v9206_v60  ;;  %v823_v55 = vpop.xlane.xlu1 %822  ;;  %v1094_v18 = vpop.xlane.xlu0 %1093  ;;  %v831_v35 = vmul.f32 %v8322_v27, %v9299_v50  ;;  %v7545_v50 = vpack.c.bf16 %v8042_v41, %v8041_v44 }
 0x4eb   :  { %8329 = vrcp.f32 %v823_v55  ;;  %7526 = vmatprep.subr.bf16.mxu0 %v7525_v9  ;;  %v8324_v28 = vpop.eup %8323 }
 0x4ec   :  { %8331 = vrcp.f32 %v826_v58  ;;  %v576_v33 = vmul.f32 %v8324_v28, %v9302_v56  ;;  %v7549_v58 = vpack.c.bf16 %v8047_v25, %v8046_v53 }
 0x4ee   :  { %7528 = vmatpush3.bf16.msra.mxu0 %v7525_v9  ;;  %v1091_v24 = vpop.xlane.xlu1 %1090  ;;  %v8055_v21 = vpop.permute.xlu0 %8054 }
 0x4ef   :  { %8333 = vrcp.f32 %v1091_v24  ;;  %7542 = vmatprep.subr.bf16.mxu0 %v7541_v40  ;;  %v8057_v2 = vunpack.i.h.bf16 %v8055_v21  ;;  %v8056_v54 = vunpack.i.l.bf16 %v8055_v21 }
 0x4f0   :  { %8335 = vrcp.f32 %v1094_v18 }
 0x4f1   :  { %v8326_v8 = vpop.eup %8325  ;;  %v7569_v31 = vpack.c.bf16 %v8057_v2, %v8056_v54 }
 0x4f2   :  { %v575_v60 = vmul.f32 %v8326_v8, %v9312_v0  ;;  %v8328_v26 = vpop.eup %8327 }
 0x4f3   :  { %7571 = vmatprep.subr.msk.bf16.mxu1 %vm9163_vm4, %v7569_v31  ;;  %v832_v0 = vmul.f32 %v8328_v26, %v9288_v16 }
 0x4f4   :  { %6867 = vmatprep.mubr.msk.f32.mxu0 %vm532_vm5, %v575_v60  ;;  %7574 = vmatpush3.bf16.xpose.msk.msra.mxu1 %vm9163_vm4, %v7569_v31 }
 0x4f5   :  { %v8330_v39 = vpop.eup %8329  ;;  %6868 = vmatmul.mubr.msk.f32.gmra.mrb[10].mxu0 %vm532_vm5, %v576_v33 }
 0x4f6   :  { %6892 = vmatprep.mubr.msk.f32.mxu0 %vm532_vm5, %v831_v35  ;;  %v8332_v56 = vpop.eup %8331  ;;  %v833_v30 = vmul.f32 %v8330_v39, %v9316_v4 }
 0x4f7   :  { %v834_v45 = vmul.f32 %v8332_v56, %v9308_v61  ;;  %v8051_v61 = vunpack.i.l.bf16 %v9362_v51 }
 0x4f9   :  { %v8334_v47 = vpop.eup %8333  ;;  %6893 = vmatmul.mubr.msk.f32.vlgmr.msra.gmra.mrb[12].mxu0 %vm532_vm5, %v832_v0  ;;  %v7555_v59 = vpack.c.bf16 %v8052_v22, %v8051_v61 }
 0x4fa   :  { %7544 = vmatpush3.bf16.msra.mxu0 %v7541_v40  ;;  %6895 = vmatprep.mubr.msk.f32.mxu0 %vm532_vm5, %v833_v30  ;;  %v8336_v32 = vpop.eup %8335  ;;  %v1105_v16 = vmul.f32 %v8334_v47, %v9324_v12 }
 0x4fb   :  { %7546 = vmatprep.subr.bf16.mxu0 %v7545_v50  ;;  %v1106_v4 = vmul.f32 %v8336_v32, %v9318_v6  ;;  %v1219_v6 = vpop.permute.xlu1 %1218 }
 0x4fd   :  { %6896 = vmatmul.mubr.msk.f32.gmra.mrb[14].mxu0 %vm532_vm5, %v834_v45 }
 0x4fe   :  { %7548 = vmatpush3.bf16.msra.mxu0 %v7545_v50  ;;  %6920 = vmatprep.mubr.msk.f32.mxu0 %vm532_vm5, %v1105_v16 }
 0x4ff   :  { %7551 = vmatprep.subr.msk.bf16.mxu0 %vm9163_vm4, %v7549_v58 }
 0x501   :  { %6921 = vmatmul.mubr.msk.f32.vlgmr.msra.gmra.mrb[16].mxu0 %vm532_vm5, %v1106_v4 }
 0x507   :  { %7554 = vmatpush3.bf16.xpose.msk.msra.mxu0 %vm9163_vm4, %v7549_v58 }
 0x508   :  { %7557 = vmatprep.subr.msk.bf16.mxu0 %vm9163_vm4, %v7555_v59 }
 0x50f   :  { %7560 = vmatpush3.bf16.xpose.msk.msra.mxu0 %vm9163_vm4, %v7555_v59 }
 0x51f   :  { %v1100_v12 = vpop.xlane.xlu0 %1099 }
 0x520   :  { %8337 = vrcp.f32 %v1100_v12 }
 0x523   :  { %v1097_v38 = vpop.xlane.xlu1 %1096  ;;  %v1221_v37 = vpop.permute.xlu0 %1220 }
 0x524   :  { %8339 = vrcp.f32 %v1097_v38 }
 0x527   :  { %v8060_v3 = vpop.permute.xlu1 %8059  ;;  %v1223_v7 = vpop.permute.xlu0 %1222 }
 0x528   :  { %v8062_v9 = vunpack.i.h.bf16 %v8060_v3  ;;  %v8061_v51 = vunpack.i.l.bf16 %v8060_v3 }
 0x52a   :  { %v7575_v55 = vpack.c.bf16 %v8062_v9, %v8061_v51  ;;  %v8338_v24 = vpop.eup %8337 }
 0x52b   :  { %v1225_v18 = vpop.permute.xlu1 %1224  ;;  %v1489_v40 = vpop.permute.xlu0 %1488  ;;  %v1108_v2 = vmul.f32 %v8338_v24, %v9336_v17 }
 0x52c   :  { %7577 = vmatprep.subr.msk.bf16.mxu1 %vm9163_vm4, %v7575_v55  ;;  %6962 = vmatprep.mubr.msk.f32.mxu1 %vm426_vm3, %v1489_v40 }
 0x52d   :  { %7580 = vmatpush3.bf16.xpose.msk.msra.mxu1 %vm9163_vm4, %v7575_v55 }
 0x52e   :  { %v8340_v21 = vpop.eup %8339 }
 0x52f   :  { %v1107_v27 = vmul.f32 %v8340_v21, %v9340_v34  ;;  %v1491_v54 = vpop.permute.xlu1 %1490  ;;  %v1493_v28 = vpop.permute.xlu0 %1492 }
 0x531   :  { %6923 = vmatprep.mubr.msk.f32.mxu0 %vm532_vm5, %v1107_v27 }
 0x532   :  { %6924 = vmatmul.mubr.msk.f32.gmra.mrb[18].mxu0 %vm532_vm5, %v1108_v2 }
 0x533   :  { %6934 = vmatprep.mubr.msk.f32.mxu0 %vm426_vm3, %v1219_v6  ;;  %v1495_v8 = vpop.permute.xlu1 %1494 }
 0x534   :  { %6963 = vmatmul.mubr.msk.f32.vlgmr.msra.gmra.mrb[16].mxu1 %vm426_vm3, %v1491_v54 }
 0x535   :  { %6965 = vmatprep.mubr.msk.f32.mxu1 %vm426_vm3, %v1493_v28 }
 0x536   :  { %6935 = vmatmul.mubr.msk.f32.vlgmr.msra.gmra.mrb[20].mxu0 %vm426_vm3, %v1221_v37 }
 0x537   :  { %6937 = vmatprep.mubr.msk.f32.mxu0 %vm426_vm3, %v1223_v7 }
 0x538   :  { %6966 = vmatmul.mubr.msk.f32.gmra.mrb[18].mxu1 %vm426_vm3, %v1495_v8 }
 0x53a   :  { %6938 = vmatmul.mubr.msk.f32.gmra.mrb[22].mxu0 %vm426_vm3, %v1225_v18 }
 0x5bc   :  { %v9423_v17 = vpop.f32.mrb[8].mxu0 }
 0x5bd   :  { %v9425_v34 = vpop.f32.mrb[9].mxu0 }
 0x5c8   :  { %v9427_v31 = vpop.f32.mrb[10].mxu0 }
 0x5c9   :  { %v9429_v60 = vpop.f32.mrb[11].mxu0 }
 0x5cc   :  { %v9431_v33 = vpop.f32.mrb[12].mxu0 }
 0x5cd   :  { %v9433_v26 = vpop.f32.mrb[13].mxu0 }
 0x5d0   :  { %v9435_v35 = vpop.f32.mrb[14].mxu0 }
 0x5d1   :  { %v9437_v39 = vpop.f32.mrb[15].mxu0 }
 0x5d4   :  { %v9439_v41 = vpop.f32.mrb[16].mxu0 }
 0x5d5   :  { %v9441_v44 = vpop.f32.mrb[17].mxu0 }
 0x605   :  { %v9443_v0 = vpop.f32.mrb[18].mxu0 }
 0x606   :  { %v9445_v56 = vpop.f32.mrb[19].mxu0 }
 0x607   :  { %v6964_v30 = vpop.f32.mrb[16].mxu1 }
 0x608   :  { %v1586_v47 = vpop.f32.mrb[17].mxu1  ;;  %v1592_v9 = vadd.f32 %v6964_v30, %v9215_v62 }
 0x609   :  { %v6936_v25 = vpop.f32.mrb[20].mxu0  ;;  %v1587_v16 = vadd.f32 %v1586_v47, %v9222_v5 }
 0x60a   :  { %v1322_v53 = vadd.f32 %v6936_v25, %v9215_v62  ;;  %v1316_v50 = vpop.f32.mrb[21].mxu0  ;;  %v1608_v18 = vsel %vm532_vm5, %v1592_v9, -inf }
 0x60b   :  { %v9449_v45 = vadd.f32 %v1316_v50, %v9222_v5  ;;  %v6967_v32 = vpop.f32.mrb[18].mxu1  ;;  %v1605_v38 = vsel %vm532_vm5, %v1587_v16, -inf }
 0x60c   :  { %v1596_v58 = vpop.f32.mrb[19].mxu1  ;;  %v1338_v4 = vsel %vm532_vm5, %v1322_v53, -inf  ;;  %v1602_v55 = vadd.f32 %v6967_v32, %v9231_v20 }
 0x60d   :  { %1339 = vmax.xlane.f32.xlu1 %v1338_v4  ;;  %v6939_v22 = vpop.f32.mrb[22].mxu0  ;;  %v1335_v61 = vsel %vm532_vm5, %v9449_v45, -inf  ;;  %v1597_v12 = vadd.f32 %v1596_v58, %v9237_v23 }
 0x60e   :  { %v1326_v59 = vpop.f32.mrb[23].mxu0  ;;  %1336 = vmax.xlane.f32.xlu0 %v1335_v61  ;;  %v1332_v37 = vadd.f32 %v6939_v22, %v9231_v20  ;;  %v1614_v40 = vsel %vm532_vm5, %v1602_v55, -inf }
 0x60f   :  { %v9456_v6 = vadd.f32 %v1326_v59, %v9237_v23  ;;  %v1611_v7 = vsel %vm532_vm5, %v1597_v12, -inf }
 0x610   :  { %v1344_v51 = vsel %vm532_vm5, %v1332_v37, -inf }
 0x611   :  { %1606 = vmax.xlane.f32.xlu1 %v1605_v38  ;;  %v1341_v3 = vsel %vm532_vm5, %v9456_v6, -inf }
 0x612   :  { %1342 = vmax.xlane.f32.xlu0 %v1341_v3 }
 0x615   :  { %1612 = vmax.xlane.f32.xlu1 %v1611_v7 }
 0x616   :  { %1345 = vmax.xlane.f32.xlu0 %v1344_v51 }
 0x61a   :  { %1609 = vmax.xlane.f32.xlu0 %v1608_v18 }
 0x61e   :  { %1615 = vmax.xlane.f32.xlu0 %v1614_v40 }
 0x69a   :  { %v1340_v24 = vpop.xlane.xlu1 %1339 }
 0x69b   :  { %v1337_v21 = vpop.xlane.xlu0 %1336  ;;  %v1348_v3 = vsub.f32 %v1322_v53, %v1340_v24 }
 0x69e   :  { %v1607_v27 = vpop.xlane.xlu1 %1606 }
 0x69f   :  { %v1617_v2 = vsub.f32 %v1587_v16, %v1607_v27  ;;  %v1343_v54 = vpop.xlane.xlu0 %1342 }
 0x6a1   :  { %v1621_v28 = vmul.f32 1.442695, %v1617_v2 }
 0x6a2   :  { %v1613_v16 = vpop.xlane.xlu1 %1612 }
 0x6a3   :  { %8341 = vpow2.f32 %v1621_v28  ;;  %v1346_v8 = vpop.xlane.xlu0 %1345  ;;  %v1619_v22 = vsub.f32 %v1597_v12, %v1613_v16  ;;  %v1347_v28 = vsub.f32 %v9449_v45, %v1337_v21 }
 0x6a4   :  { %v1350_v51 = vsub.f32 %v1332_v37, %v1346_v8 }
 0x6a5   :  { %v1625_v61 = vmul.f32 1.442695, %v1619_v22  ;;  %v1351_v8 = vmul.f32 1.442695, %v1347_v28 }
 0x6a6   :  { %v1357_v40 = vmul.f32 1.442695, %v1350_v51 }
 0x6a7   :  { %v1610_v30 = vpop.xlane.xlu0 %1609 }
 0x6a8   :  { %v1618_v47 = vsub.f32 %v1592_v9, %v1610_v30  ;;  %v1353_v9 = vmul.f32 1.442695, %v1348_v3  ;;  %v1349_v30 = vsub.f32 %v9456_v6, %v1343_v54 }
 0x6aa   :  { %v1623_v25 = vmul.f32 1.442695, %v1618_v47  ;;  %v1355_v47 = vmul.f32 1.442695, %v1349_v30 }
 0x6ab   :  { %v1616_v59 = vpop.xlane.xlu0 %1615 }
 0x6ac   :  { %8343 = vpow2.f32 %v1623_v25  ;;  %v1620_v38 = vsub.f32 %v1602_v55, %v1616_v59 }
 0x6ad   :  { %v9469_v50 = vpop.eup %8341  ;;  %8345 = vpow2.f32 %v1625_v61 }
 0x6ae   :  { %v1629_v32 = vsel %vm532_vm5, %v9469_v50, 0.0  ;;  %v1627_v7 = vmul.f32 1.442695, %v1620_v38 }
 0x6af   :  { %1630 = vadd.xlane.f32.xlu1 %v1629_v32 }
 0x6b0   :  { %8347 = vpow2.f32 %v1627_v7 }
 0x6b1   :  { %8349 = vpow2.f32 %v1353_v9 }
 0x6b2   :  { %8351 = vpow2.f32 %v1357_v40 }
 0x6b3   :  { %8353 = vpow2.f32 %v1351_v8 }
 0x6b4   :  { %8355 = vpow2.f32 %v1355_v47 }
 0x6b6   :  { %v9473_v58 = vpop.eup %8343 }
 0x6b7   :  { %v1632_v4 = vsel %vm532_vm5, %v9473_v58, 0.0  ;;  %v9481_v18 = vpop.eup %8345 }
 0x6b8   :  { %1633 = vadd.xlane.f32.xlu0 %v1632_v4  ;;  %v1635_v27 = vsel %vm532_vm5, %v9481_v18, 0.0 }
 0x6ba   :  { %v9485_v12 = vpop.eup %8347 }
 0x6bb   :  { %v1638_v2 = vsel %vm532_vm5, %v9485_v12, 0.0  ;;  %v9489_v55 = vpop.eup %8349 }
 0x6bc   :  { %v1362_v53 = vsel %vm532_vm5, %v9489_v55, 0.0  ;;  %v9493_v37 = vpop.eup %8351 }
 0x6bd   :  { %v1368_v24 = vsel %vm532_vm5, %v9493_v37, 0.0  ;;  %v8354_v25 = vpop.eup %8353 }
 0x6be   :  { %v1359_v32 = vsel %vm532_vm5, %v8354_v25, 0.0  ;;  %v8356_v45 = vpop.eup %8355 }
 0x6bf   :  { %v1365_v6 = vsel %vm532_vm5, %v8356_v45, 0.0 }
 0x6c0   :  { %8064 = vrot.lane.b32.xlu1 %v9111_v1, %s8791_s0 }
 0x6ce   :  { %8069 = vrot.lane.b32.xlu0 %v9121_v11, %s8791_s0 }
 0x6e4   :  { %1636 = vadd.xlane.f32.xlu1 %v1635_v27 }
 0x6ed   :  { %1639 = vadd.xlane.f32.xlu0 %v1638_v2 }
 0x6f1   :  { %1363 = vadd.xlane.f32.xlu0 %v1362_v53 }
 0x6f5   :  { %8074 = vrot.lane.b32.xlu1 %v9111_v1, %s8793_s25  ;;  %1369 = vadd.xlane.f32.xlu0 %v1368_v24 }
 0x70b   :  { %8079 = vrot.lane.b32.xlu0 %v9121_v11, %s8793_s25 }
 0x70f   :  { %1758 = vrot.lane.b32.xlu0 %v9105_v57, %s10757_s18 }
 0x713   :  { %1762 = vrot.lane.b32.xlu0 %v9135_v14, %s10757_s18 }
 0x719   :  { %1360 = vadd.xlane.f32.xlu1 %v1359_v32 }
 0x71d   :  { %1366 = vadd.xlane.f32.xlu1 %v1365_v6 }
 0x72e   :  { %8084 = vrot.lane.b32.xlu1 %v9109_v63, %s10759_s29 }
 0x732   :  { %8089 = vrot.lane.b32.xlu1 %v9119_v10, %s10759_s29 }
 0x736   :  { %1760 = vrot.lane.b32.xlu1 %v9129_v13, %s10757_s18 }
 0x73a   :  { %1764 = vrot.lane.b32.xlu1 %v9145_v15, %s10757_s18 }
 0x73c   :  { %v1631_v21 = vpop.xlane.xlu1 %1630 }
 0x740   :  { %v8065_v54 = vpop.permute.xlu1 %8064 }
 0x741   :  { %v8067_v4 = vunpack.i.h.bf16 %v8065_v54  ;;  %v8066_v16 = vunpack.i.l.bf16 %v8065_v54 }
 0x743   :  { %v7561_v22 = vpack.c.bf16 %v8067_v4, %v8066_v16 }
 0x745   :  { %7562 = vmatprep.subr.bf16.mxu0 %v7561_v22  ;;  %v1634_v61 = vpop.xlane.xlu0 %1633 }
 0x746   :  { %7564 = vmatpush3.bf16.msra.mxu0 %v7561_v22 }
 0x749   :  { %v8070_v59 = vpop.permute.xlu0 %8069 }
 0x74a   :  { %v8072_v38 = vunpack.i.h.bf16 %v8070_v59  ;;  %v8071_v3 = vunpack.i.l.bf16 %v8070_v59 }
 0x74c   :  { %v7565_v7 = vpack.c.bf16 %v8072_v38, %v8071_v3 }
 0x74e   :  { %7566 = vmatprep.subr.bf16.mxu0 %v7565_v7 }
 0x74f   :  { %7568 = vmatpush3.bf16.msra.mxu0 %v7565_v7 }
 0x771   :  { %v1637_v9 = vpop.xlane.xlu1 %1636 }
 0x775   :  { %v8075_v51 = vpop.permute.xlu1 %8074 }
 0x776   :  { %v8077_v40 = vunpack.i.h.bf16 %v8075_v51  ;;  %v8076_v27 = vunpack.i.l.bf16 %v8075_v51 }
 0x778   :  { %v7581_v2 = vpack.c.bf16 %v8077_v40, %v8076_v27 }
 0x77a   :  { %7582 = vmatprep.subr.bf16.mxu0 %v7581_v2  ;;  %v1640_v53 = vpop.xlane.xlu0 %1639 }
 0x77e   :  { %v1364_v24 = vpop.xlane.xlu0 %1363 }
 0x77f   :  { %8357 = vrcp.f32 %v1364_v24 }
 0x782   :  { %v1370_v8 = vpop.xlane.xlu0 %1369 }
 0x786   :  { %v8080_v47 = vpop.permute.xlu0 %8079 }
 0x787   :  { %v8082_v54 = vunpack.i.h.bf16 %v8080_v47  ;;  %v8081_v4 = vunpack.i.l.bf16 %v8080_v47 }
 0x789   :  { %v8358_v32 = vpop.eup %8357 }
 0x78a   :  { %v1376_v38 = vmul.f32 %v8358_v32, %v9489_v55 }
 0x7a6   :  { %v1361_v28 = vpop.xlane.xlu1 %1360 }
 0x7a7   :  { %8359 = vrcp.f32 %v1361_v28 }
 0x7a8   :  { %8361 = vrcp.f32 %v1631_v21 }
 0x7a9   :  { %8363 = vrcp.f32 %v1370_v8 }
 0x7aa   :  { %v1367_v30 = vpop.xlane.xlu1 %1366 }
 0x7ab   :  { %8365 = vrcp.f32 %v1367_v30  ;;  %v1759_v30 = vpop.permute.xlu0 %1758 }
 0x7ac   :  { %8367 = vrcp.f32 %v1634_v61  ;;  %v7585_v61 = vpack.c.bf16 %v8082_v54, %v8081_v4 }
 0x7ad   :  { %8369 = vrcp.f32 %v1637_v9 }
 0x7ae   :  { %8371 = vrcp.f32 %v1640_v53  ;;  %v8085_v16 = vpop.permute.xlu1 %8084 }
 0x7af   :  { %v8087_v7 = vunpack.i.h.bf16 %v8085_v16  ;;  %v8086_v51 = vunpack.i.l.bf16 %v8085_v16 }
 0x7b1   :  { %v8360_v6 = vpop.eup %8359  ;;  %v7589_v53 = vpack.c.bf16 %v8087_v7, %v8086_v51 }
 0x7b2   :  { %v1375_v22 = vmul.f32 %v8360_v6, %v8354_v25  ;;  %v8362_v59 = vpop.eup %8361  ;;  %v8090_v28 = vpop.permute.xlu1 %8089 }
 0x7b3   :  { %v8364_v3 = vpop.eup %8363  ;;  %v1645_v25 = vmul.f32 %v8362_v59, %v9469_v50  ;;  %v8091_v50 = vunpack.i.l.bf16 %v8090_v28 }
 0x7b4   :  { %6948 = vmatprep.mubr.msk.f32.mxu0 %vm532_vm5, %v1375_v22  ;;  %v1378_v40 = vmul.f32 %v8364_v3, %v9493_v37 }
 0x7b5   :  { %v8366_v21 = vpop.eup %8365  ;;  %6949 = vmatmul.mubr.msk.f32.vlgmr.msra.gmra.mrb[24].mxu0 %vm532_vm5, %v1376_v38 }
 0x7b6   :  { %7584 = vmatpush3.bf16.msra.mxu0 %v7581_v2  ;;  %v1377_v9 = vmul.f32 %v8366_v21, %v8356_v45  ;;  %v8368_v27 = vpop.eup %8367  ;;  %v8092_v2 = vunpack.i.h.bf16 %v8090_v28 }
 0x7b7   :  { %7586 = vmatprep.subr.bf16.mxu0 %v7585_v61  ;;  %v8370_v55 = vpop.eup %8369  ;;  %v1646_v24 = vmul.f32 %v8368_v27, %v9473_v58  ;;  %v1761_v58 = vpop.permute.xlu1 %1760 }
 0x7b8   :  { %6951 = vmatprep.mubr.msk.f32.mxu0 %vm532_vm5, %v1377_v9  ;;  %v8372_v45 = vpop.eup %8371  ;;  %v1647_v37 = vmul.f32 %v8370_v55, %v9481_v18  ;;  %v7595_v47 = vpack.c.bf16 %v8092_v2, %v8091_v50  ;;  %v1763_v18 = vpop.permute.xlu0 %1762 }
 0x7b9   :  { %6952 = vmatmul.mubr.msk.f32.gmra.mrb[26].mxu0 %vm532_vm5, %v1378_v40  ;;  %v1648_v8 = vmul.f32 %v8372_v45, %v9485_v12 }
 0x7ba   :  { %7588 = vmatpush3.bf16.msra.mxu0 %v7585_v61  ;;  %6976 = vmatprep.mubr.msk.f32.mxu0 %vm532_vm5, %v1645_v25 }
 0x7bb   :  { %7591 = vmatprep.subr.msk.bf16.mxu0 %vm9163_vm4, %v7589_v53  ;;  %v1765_v12 = vpop.permute.xlu1 %1764 }
 0x7bd   :  { %6977 = vmatmul.mubr.msk.f32.vlgmr.msra.gmra.mrb[28].mxu0 %vm532_vm5, %v1646_v24 }
 0x7be   :  { %6979 = vmatprep.mubr.msk.f32.mxu0 %vm532_vm5, %v1647_v37 }
 0x7c1   :  { %6980 = vmatmul.mubr.msk.f32.gmra.mrb[30].mxu0 %vm532_vm5, %v1648_v8 }
 0x7c2   :  { %6990 = vmatprep.mubr.msk.f32.mxu0 %vm426_vm3, %v1759_v30 }
 0x7c3   :  { %7594 = vmatpush3.bf16.xpose.msk.msra.mxu0 %vm9163_vm4, %v7589_v53 }
 0x7c4   :  { %7597 = vmatprep.subr.msk.bf16.mxu0 %vm9163_vm4, %v7595_v47 }
 0x7cb   :  { %7600 = vmatpush3.bf16.xpose.msk.msra.mxu0 %vm9163_vm4, %v7595_v47 }
 0x7d2   :  { %6991 = vmatmul.mubr.msk.f32.vlgmr.msra.gmra.mrb[32].mxu0 %vm426_vm3, %v1761_v58 }
 0x7d3   :  { %6993 = vmatprep.mubr.msk.f32.mxu0 %vm426_vm3, %v1763_v18 }
 0x7d6   :  { %6994 = vmatmul.mubr.msk.f32.gmra.mrb[34].mxu0 %vm426_vm3, %v1765_v12 }
 0x888   :  { %v9543_v32 = vpop.f32.mrb[24].mxu0 }
 0x889   :  { %v9545_v6 = vpop.f32.mrb[25].mxu0 }
 0x88c   :  { %v9547_v54 = vpop.f32.mrb[26].mxu0 }
 0x88d   :  { %v9549_v4 = vpop.f32.mrb[27].mxu0 }
 0x890   :  { %v9551_v16 = vpop.f32.mrb[28].mxu0 }
 0x891   :  { %v9553_v22 = vpop.f32.mrb[29].mxu0 }
 0x894   :  { %v9555_v59 = vpop.f32.mrb[30].mxu0 }
 0x895   :  { %v9557_v38 = vpop.f32.mrb[31].mxu0 }
 0x8a5   :  { %v6992_v3 = vpop.f32.mrb[32].mxu0 }
 0x8a6   :  { %v1862_v21 = vadd.f32 %v6992_v3, %v9215_v62  ;;  %v1856_v7 = vpop.f32.mrb[33].mxu0 }
 0x8a7   :  { %v1857_v51 = vadd.f32 %v1856_v7, %v9222_v5 }
 0x8a8   :  { %v1878_v61 = vsel %vm532_vm5, %v1862_v21, -inf }
 0x8a9   :  { %1879 = vmax.xlane.f32.xlu1 %v1878_v61  ;;  %v6995_v9 = vpop.f32.mrb[34].mxu0  ;;  %v1875_v40 = vsel %vm532_vm5, %v1857_v51, -inf }
 0x8aa   :  { %v1866_v27 = vpop.f32.mrb[35].mxu0  ;;  %1876 = vmax.xlane.f32.xlu0 %v1875_v40  ;;  %v1872_v55 = vadd.f32 %v6995_v9, %v9231_v20 }
 0x8ab   :  { %v1867_v25 = vadd.f32 %v1866_v27, %v9237_v23 }
 0x8ac   :  { %v1884_v62 = vsel %vm532_vm5, %v1872_v55, -inf }
 0x8ad   :  { %v1881_v53 = vsel %vm532_vm5, %v1867_v25, -inf }
 0x8ae   :  { %1882 = vmax.xlane.f32.xlu0 %v1881_v53 }
 0x8b2   :  { %1885 = vmax.xlane.f32.xlu0 %v1884_v62 }
 0x8ba   :  { %8094 = vrot.lane.b32.xlu1 %v9111_v1, %s10757_s18 }
 0x8be   :  { %8104 = vrot.lane.b32.xlu1 %v9109_v63, %s10755_s4 }
 0x936   :  { %v1880_v5 = vpop.xlane.xlu1 %1879 }
 0x937   :  { %v1888_v24 = vsub.f32 %v1862_v21, %v1880_v5  ;;  %v1877_v28 = vpop.xlane.xlu0 %1876 }
 0x938   :  { %v1887_v45 = vsub.f32 %v1857_v51, %v1877_v28 }
 0x939   :  { %v1893_v37 = vmul.f32 1.442695, %v1888_v24 }
 0x93a   :  { %v1891_v23 = vmul.f32 1.442695, %v1887_v45  ;;  %v8095_v2 = vpop.permute.xlu1 %8094 }
 0x93b   :  { %8373 = vpow2.f32 %v1893_v37  ;;  %v8097_v20 = vunpack.i.h.bf16 %v8095_v2  ;;  %v8096_v50 = vunpack.i.l.bf16 %v8095_v2  ;;  %v1883_v12 = vpop.xlane.xlu0 %1882 }
 0x93c   :  { %8375 = vpow2.f32 %v1891_v23  ;;  %v1889_v7 = vsub.f32 %v1867_v25, %v1883_v12 }
 0x93d   :  { %v7601_v8 = vpack.c.bf16 %v8097_v20, %v8096_v50 }
 0x93e   :  { %v1895_v61 = vmul.f32 1.442695, %v1889_v7  ;;  %v8105_v25 = vpop.permute.xlu1 %8104 }
 0x93f   :  { %7602 = vmatprep.subr.bf16.mxu1 %v7601_v8  ;;  %v1886_v3 = vpop.xlane.xlu0 %1885  ;;  %v8107_v24 = vunpack.i.h.bf16 %v8105_v25  ;;  %v8106_v28 = vunpack.i.l.bf16 %v8105_v25 }
 0x940   :  { %7604 = vmatpush3.bf16.msra.mxu1 %v7601_v8  ;;  %v1890_v21 = vsub.f32 %v1872_v55, %v1886_v3 }
 0x941   :  { %v7609_v2 = vpack.c.bf16 %v8107_v24, %v8106_v28 }
 0x942   :  { %v1897_v51 = vmul.f32 1.442695, %v1890_v21 }
 0x944   :  { %8377 = vpow2.f32 %v1897_v51 }
 0x945   :  { %v8374_v30 = vpop.eup %8373  ;;  %8379 = vpow2.f32 %v1895_v61 }
 0x946   :  { %v8376_v47 = vpop.eup %8375  ;;  %v1902_v58 = vsel %vm532_vm5, %v8374_v30, 0.0 }
 0x947   :  { %1903 = vadd.xlane.f32.xlu0 %v1902_v58  ;;  %v1899_v18 = vsel %vm532_vm5, %v8376_v47, 0.0 }
 0x948   :  { %1900 = vadd.xlane.f32.xlu1 %v1899_v18 }
 0x94e   :  { %v8378_v9 = vpop.eup %8377 }
 0x94f   :  { %v8380_v40 = vpop.eup %8379  ;;  %v1908_v27 = vsel %vm532_vm5, %v8378_v9, 0.0 }
 0x950   :  { %v1905_v53 = vsel %vm532_vm5, %v8380_v40, 0.0 }
 0x959   :  { %8109 = vrot.lane.b32.xlu1 %v9119_v10, %s10755_s4 }
 0x95d   :  { %8099 = vrot.lane.b32.xlu0 %v9121_v11, %s10757_s18 }
 0x97c   :  { %1909 = vadd.xlane.f32.xlu0 %v1908_v27 }
 0x97d   :  { %1906 = vadd.xlane.f32.xlu1 %v1905_v53 }
 0x98e   :  { %2030 = vrot.lane.b32.xlu1 %v9129_v13, %s10753_s26 }
 0x992   :  { %2034 = vrot.lane.b32.xlu1 %v9145_v15, %s10753_s26  ;;  %2028 = vrot.lane.b32.xlu0 %v9105_v57, %s10753_s26 }
 0x996   :  { %2032 = vrot.lane.b32.xlu0 %v9135_v14, %s10753_s26 }
 0x9d4   :  { %v1904_v55 = vpop.xlane.xlu0 %1903 }
 0x9d5   :  { %8381 = vrcp.f32 %v1904_v55  ;;  %v1901_v62 = vpop.xlane.xlu1 %1900 }
 0x9d6   :  { %8383 = vrcp.f32 %v1901_v62 }
 0x9d8   :  { %v8100_v5 = vpop.permute.xlu0 %8099 }
 0x9d9   :  { %v8102_v45 = vunpack.i.h.bf16 %v8100_v5  ;;  %v8101_v37 = vunpack.i.l.bf16 %v8100_v5  ;;  %v8110_v50 = vpop.permute.xlu1 %8109 }
 0x9da   :  { %v8112_v12 = vunpack.i.h.bf16 %v8110_v50  ;;  %v8111_v3 = vunpack.i.l.bf16 %v8110_v50 }
 0x9db   :  { %v7605_v23 = vpack.c.bf16 %v8102_v45, %v8101_v37  ;;  %v9614_v45 = vld [vmem:[%s10772_s21 + $0x8] sm:$0xff] }
 0x9dc   :  { %v7615_v21 = vpack.c.bf16 %v8112_v12, %v8111_v3  ;;  %v9628_v12 = vld [vmem:[%s10772_s21 + $0x10] sm:$0xff] }
 0x9dd   :  { %7606 = vmatprep.subr.bf16.mxu1 %v7605_v23 }
 0x9de   :  { %7608 = vmatpush3.bf16.msra.mxu1 %v7605_v23 }
 0x9df   :  { %v8382_v20 = vpop.eup %8381  ;;  %7611 = vmatprep.subr.msk.bf16.mxu1 %vm9163_vm4, %v7609_v2 }
 0x9e0   :  { %v8384_v8 = vpop.eup %8383  ;;  %v1916_v18 = vmul.f32 %v8382_v20, %v8374_v30 }
 0x9e1   :  { %v1915_v58 = vmul.f32 %v8384_v8, %v8376_v47 }
 0x9e3   :  { %7004 = vmatprep.mubr.msk.f32.mxu1 %vm532_vm5, %v1915_v58 }
 0x9e4   :  { %7005 = vmatmul.mubr.msk.f32.vlgmr.msra.gmra.mrb[20].mxu1 %vm532_vm5, %v1916_v18 }
 0x9e7   :  { %7614 = vmatpush3.bf16.xpose.msk.msra.mxu1 %vm9163_vm4, %v7609_v2  ;;  %v9620_v2 = vld [vmem:[%s10772_s21] sm:$0xff] }
 0x9e8   :  { %7617 = vmatprep.subr.msk.bf16.mxu1 %vm9163_vm4, %v7615_v21 }
 0x9ef   :  { %7620 = vmatpush3.bf16.xpose.msk.msra.mxu1 %vm9163_vm4, %v7615_v21  ;;  %v9634_v21 = vld [vmem:[%s10772_s21 + $0x18] sm:$0xff] }
 0xa09   :  { %v1910_v7 = vpop.xlane.xlu0 %1909 }
 0xa0a   :  { %8385 = vrcp.f32 %v1910_v7  ;;  %v1907_v47 = vpop.xlane.xlu1 %1906 }
 0xa0b   :  { %8387 = vrcp.f32 %v1907_v47 }
 0xa0d   :  { %v2029_v27 = vpop.permute.xlu0 %2028 }
 0xa0e   :  { %v2031_v25 = vpop.permute.xlu1 %2030 }
 0xa11   :  { %v2033_v55 = vpop.permute.xlu0 %2032 }
 0xa12   :  { %v2035_v62 = vpop.permute.xlu1 %2034 }
 0xa14   :  { %v8386_v30 = vpop.eup %8385 }
 0xa15   :  { %v8388_v51 = vpop.eup %8387  ;;  %v1918_v53 = vmul.f32 %v8386_v30, %v8378_v9 }
 0xa16   :  { %v1917_v61 = vmul.f32 %v8388_v51, %v8380_v40 }
 0xa18   :  { %7007 = vmatprep.mubr.msk.f32.mxu1 %vm532_vm5, %v1917_v61 }
 0xa19   :  { %7008 = vmatmul.mubr.msk.f32.gmra.mrb[22].mxu1 %vm532_vm5, %v1918_v53 }
 0xa1a   :  { %7018 = vmatprep.mubr.msk.f32.mxu1 %vm426_vm3, %v2029_v27 }
 0xa1d   :  { %7019 = vmatmul.mubr.msk.f32.vlgmr.msra.gmra.mrb[24].mxu1 %vm426_vm3, %v2031_v25 }
 0xa1e   :  { %7021 = vmatprep.mubr.msk.f32.mxu1 %vm426_vm3, %v2033_v55 }
 0xa21   :  { %7022 = vmatmul.mubr.msk.f32.gmra.mrb[26].mxu1 %vm426_vm3, %v2035_v62 }
 0xab7   :  { %v9603_v5 = vpop.f32.mrb[20].mxu1 }
 0xab8   :  { %v9605_v40 = vpop.f32.mrb[21].mxu1 }
 0xaec   :  { %v9607_v9 = vpop.f32.mrb[22].mxu1 }
 0xaed   :  { %v9609_v24 = vpop.f32.mrb[23].mxu1 }
 0xaf0   :  { %v7020_v28 = vpop.f32.mrb[24].mxu1 }
 0xaf1   :  { %v2132_v37 = vadd.f32 %v9614_v45, %v7020_v28  ;;  %v2126_v23 = vpop.f32.mrb[25].mxu1 }
 0xaf2   :  { %v2127_v20 = vadd.f32 %v9620_v2, %v2126_v23 }
 0xaf3   :  { %v2148_v50 = vsel %vm532_vm5, %v2132_v37, -inf }
 0xaf4   :  { %2149 = vmax.xlane.f32.xlu1 %v2148_v50  ;;  %v7023_v8 = vpop.f32.mrb[26].mxu1  ;;  %v2145_v58 = vsel %vm532_vm5, %v2127_v20, -inf }
 0xaf5   :  { %v2136_v18 = vpop.f32.mrb[27].mxu1  ;;  %2146 = vmax.xlane.f32.xlu0 %v2145_v58  ;;  %v2142_v7 = vadd.f32 %v9634_v21, %v7023_v8 }
 0xaf6   :  { %v2137_v3 = vadd.f32 %v9628_v12, %v2136_v18 }
 0xaf7   :  { %v2154_v30 = vsel %vm532_vm5, %v2142_v7, -inf }
 0xaf8   :  { %v2151_v47 = vsel %vm532_vm5, %v2137_v3, -inf }
 0xaf9   :  { %2152 = vmax.xlane.f32.xlu0 %v2151_v47 }
 0xafd   :  { %2155 = vmax.xlane.f32.xlu0 %v2154_v30 }
 0xb05   :  { %8114 = vrot.lane.b32.xlu1 %v9111_v1, %s10753_s26 }
 0xb09   :  { %8124 = vrot.lane.b32.xlu1 %v9109_v63, %s10766_s3 }
 0xb81   :  { %v2150_v51 = vpop.xlane.xlu1 %2149 }
 0xb82   :  { %v2158_v61 = vsub.f32 %v2132_v37, %v2150_v51  ;;  %v2147_v27 = vpop.xlane.xlu0 %2146 }
 0xb83   :  { %v2157_v53 = vsub.f32 %v2127_v20, %v2147_v27 }
 0xb84   :  { %v2163_v25 = vmul.f32 1.442695, %v2158_v61 }
 0xb85   :  { %v2161_v55 = vmul.f32 1.442695, %v2157_v53  ;;  %v8115_v62 = vpop.permute.xlu1 %8114 }
 0xb86   :  { %8389 = vpow2.f32 %v2163_v25  ;;  %v8117_v28 = vunpack.i.h.bf16 %v8115_v62  ;;  %v8116_v23 = vunpack.i.l.bf16 %v8115_v62  ;;  %v2153_v37 = vpop.xlane.xlu0 %2152 }
 0xb87   :  { %8391 = vpow2.f32 %v2161_v55  ;;  %v2159_v30 = vsub.f32 %v2137_v3, %v2153_v37 }
 0xb88   :  { %v7621_v50 = vpack.c.bf16 %v8117_v28, %v8116_v23 }
 0xb89   :  { %v2165_v61 = vmul.f32 1.442695, %v2159_v30 }
 0xb8a   :  { %7622 = vmatprep.subr.bf16.mxu0 %v7621_v50  ;;  %v2156_v20 = vpop.xlane.xlu0 %2155 }
 0xb8b   :  { %7624 = vmatpush3.bf16.msra.mxu0 %v7621_v50  ;;  %v2160_v47 = vsub.f32 %v2142_v7, %v2156_v20 }
 0xb8d   :  { %v2167_v51 = vmul.f32 1.442695, %v2160_v47 }
 0xb8f   :  { %8393 = vpow2.f32 %v2167_v51 }
 0xb90   :  { %v8390_v8 = vpop.eup %8389  ;;  %8395 = vpow2.f32 %v2165_v61 }
 0xb91   :  { %v8392_v58 = vpop.eup %8391  ;;  %v2172_v18 = vsel %vm532_vm5, %v8390_v8, 0.0 }
 0xb92   :  { %2173 = vadd.xlane.f32.xlu0 %v2172_v18  ;;  %v2169_v63 = vsel %vm532_vm5, %v8392_v58, 0.0 }
 0xb93   :  { %2170 = vadd.xlane.f32.xlu1 %v2169_v63 }
 0xb99   :  { %v8394_v27 = vpop.eup %8393 }
 0xb9a   :  { %v8396_v53 = vpop.eup %8395  ;;  %v2178_v25 = vsel %vm532_vm5, %v8394_v27, 0.0 }
 0xb9b   :  { %v2175_v55 = vsel %vm532_vm5, %v8396_v53, 0.0 }
 0xba4   :  { %8129 = vrot.lane.b32.xlu1 %v9119_v10, %s10766_s3  ;;  %v8125_v10 = vpop.permute.xlu1 %8124 }
 0xba5   :  { %v8127_v28 = vunpack.i.h.bf16 %v8125_v10  ;;  %v8126_v23 = vunpack.i.l.bf16 %v8125_v10 }
 0xba7   :  { %v7629_v63 = vpack.c.bf16 %v8127_v28, %v8126_v23 }
 0xba8   :  { %8119 = vrot.lane.b32.xlu0 %v9121_v11, %s10753_s26 }
 0xbc7   :  { %2179 = vadd.xlane.f32.xlu0 %v2178_v25 }
 0xbc8   :  { %2176 = vadd.xlane.f32.xlu1 %v2175_v55 }
 0xbd9   :  { %2300 = vrot.lane.b32.xlu1 %v9129_v13, %s10751_s28 }
 0xbdd   :  { %2304 = vrot.lane.b32.xlu1 %v9145_v15, %s10751_s28  ;;  %2298 = vrot.lane.b32.xlu0 %v9105_v57, %s10751_s28 }
 0xbe1   :  { %2302 = vrot.lane.b32.xlu0 %v9135_v14, %s10751_s28 }
 0xc1f   :  { %v2174_v3 = vpop.xlane.xlu0 %2173 }
 0xc20   :  { %8397 = vrcp.f32 %v2174_v3  ;;  %v2171_v7 = vpop.xlane.xlu1 %2170 }
 0xc21   :  { %8399 = vrcp.f32 %v2171_v7 }
 0xc23   :  { %v8120_v62 = vpop.permute.xlu0 %8119 }
 0xc24   :  { %v8122_v50 = vunpack.i.h.bf16 %v8120_v62  ;;  %v8121_v18 = vunpack.i.l.bf16 %v8120_v62  ;;  %v8130_v37 = vpop.permute.xlu1 %8129 }
 0xc25   :  { %v8132_v47 = vunpack.i.h.bf16 %v8130_v37  ;;  %v8131_v30 = vunpack.i.l.bf16 %v8130_v37 }
 0xc26   :  { %v7625_v13 = vpack.c.bf16 %v8122_v50, %v8121_v18 }
 0xc27   :  { %v7635_v51 = vpack.c.bf16 %v8132_v47, %v8131_v30 }
 0xc28   :  { %7626 = vmatprep.subr.bf16.mxu0 %v7625_v13 }
 0xc29   :  { %7628 = vmatpush3.bf16.msra.mxu0 %v7625_v13 }
 0xc2a   :  { %v8398_v15 = vpop.eup %8397  ;;  %7631 = vmatprep.subr.msk.bf16.mxu0 %vm9163_vm4, %v7629_v63 }
 0xc2b   :  { %v8400_v57 = vpop.eup %8399  ;;  %v2186_v20 = vmul.f32 %v8398_v15, %v8390_v8 }
 0xc2c   :  { %v2185_v14 = vmul.f32 %v8400_v57, %v8392_v58 }
 0xc2e   :  { %7032 = vmatprep.mubr.msk.f32.mxu0 %vm532_vm5, %v2185_v14 }
 0xc2f   :  { %7033 = vmatmul.mubr.msk.f32.vlgmr.msra.gmra.mrb[36].mxu0 %vm532_vm5, %v2186_v20 }
 0xc32   :  { %7634 = vmatpush3.bf16.xpose.msk.msra.mxu0 %vm9163_vm4, %v7629_v63 }
 0xc33   :  { %7637 = vmatprep.subr.msk.bf16.mxu0 %vm9163_vm4, %v7635_v51 }
 0xc3a   :  { %7640 = vmatpush3.bf16.xpose.msk.msra.mxu0 %vm9163_vm4, %v7635_v51 }
 0xc54   :  { %v2180_v61 = vpop.xlane.xlu0 %2179 }
 0xc55   :  { %8401 = vrcp.f32 %v2180_v61  ;;  %v2177_v58 = vpop.xlane.xlu1 %2176 }
 0xc56   :  { %8403 = vrcp.f32 %v2177_v58 }
 0xc58   :  { %v2299_v10 = vpop.permute.xlu0 %2298 }
 0xc59   :  { %v2301_v7 = vpop.permute.xlu1 %2300 }
 0xc5c   :  { %v2303_v62 = vpop.permute.xlu0 %2302 }
 0xc5d   :  { %v2305_v28 = vpop.permute.xlu1 %2304 }
 0xc5f   :  { %v8402_v8 = vpop.eup %8401 }
 0xc60   :  { %v8404_v25 = vpop.eup %8403  ;;  %v2188_v3 = vmul.f32 %v8402_v8, %v8394_v27 }
 0xc61   :  { %v2187_v55 = vmul.f32 %v8404_v25, %v8396_v53 }
 0xc63   :  { %7035 = vmatprep.mubr.msk.f32.mxu0 %vm532_vm5, %v2187_v55 }
 0xc64   :  { %7036 = vmatmul.mubr.msk.f32.gmra.mrb[38].mxu0 %vm532_vm5, %v2188_v3 }
 0xc65   :  { %7046 = vmatprep.mubr.msk.f32.mxu0 %vm426_vm3, %v2299_v10 }
 0xc68   :  { %7047 = vmatmul.mubr.msk.f32.vlgmr.msra.gmra.mrb[40].mxu0 %vm426_vm3, %v2301_v7 }
 0xc69   :  { %7049 = vmatprep.mubr.msk.f32.mxu0 %vm426_vm3, %v2303_v62 }
 0xc6c   :  { %7050 = vmatmul.mubr.msk.f32.gmra.mrb[42].mxu0 %vm426_vm3, %v2305_v28 }
 0xd02   :  { %v7034_v23 = vpop.f32.mrb[36].mxu0 }
 0xd03   :  { %v2279_v50 = vpop.f32.mrb[37].mxu0 }
 0xd37   :  { %v9675_v53 = vpop.f32.mrb[38].mxu0 }
 0xd38   :  { %v9677_v27 = vpop.f32.mrb[39].mxu0 }
 0xd3b   :  { %v7048_v18 = vpop.f32.mrb[40].mxu0 }
 0xd3c   :  { %v2402_v13 = vadd.f32 %v9614_v45, %v7048_v18  ;;  %v2396_v63 = vpop.f32.mrb[41].mxu0 }
 0xd3d   :  { %v2397_v15 = vadd.f32 %v9620_v2, %v2396_v63 }
 0xd3e   :  { %v2418_v37 = vsel %vm532_vm5, %v2402_v13, -inf }
 0xd3f   :  { %2419 = vmax.xlane.f32.xlu1 %v2418_v37  ;;  %v7051_v57 = vpop.f32.mrb[42].mxu0  ;;  %v2415_v14 = vsel %vm532_vm5, %v2397_v15, -inf }
 0xd40   :  { %v2406_v20 = vpop.f32.mrb[43].mxu0  ;;  %2416 = vmax.xlane.f32.xlu0 %v2415_v14  ;;  %v2412_v30 = vadd.f32 %v9634_v21, %v7051_v57 }
 0xd41   :  { %v2407_v47 = vadd.f32 %v9628_v12, %v2406_v20  ;;  %v2716_v20 = vld [vmem:[%s10732_s7 + $0x18] sm:$0xff] }
 0xd42   :  { %v2424_v45 = vsel %vm532_vm5, %v2412_v30, -inf }
 0xd43   :  { %v2421_v51 = vsel %vm532_vm5, %v2407_v47, -inf }
 0xd44   :  { %2422 = vmax.xlane.f32.xlu0 %v2421_v51  ;;  %v2718_v51 = vld [vmem:[%s10732_s7 + $0x28] sm:$0xff] }
 0xd48   :  { %2425 = vmax.xlane.f32.xlu0 %v2424_v45 }
 0xdcc   :  { %v2420_v61 = vpop.xlane.xlu1 %2419 }
 0xdcd   :  { %v2428_v2 = vsub.f32 %v2402_v13, %v2420_v61  ;;  %v2417_v58 = vpop.xlane.xlu0 %2416  ;;  %v2719_v61 = vld [vmem:[%s10732_s7 + $0x30] sm:$0xff] }
 0xdce   :  { %v2427_v8 = vsub.f32 %v2397_v15, %v2417_v58 }
 0xdcf   :  { %v2433_v25 = vmul.f32 1.442695, %v2428_v2  ;;  %v2720_v2 = vld [vmem:[%s10732_s7 + $0x38] sm:$0xff] }
 0xdd0   :  { %v2431_v55 = vmul.f32 1.442695, %v2427_v8  ;;  %v7661_v58 = vpack.c.bf16 %v2720_v2, %v2719_v61 }
 0xdd1   :  { %8405 = vpow2.f32 %v2433_v25  ;;  %v2423_v10 = vpop.xlane.xlu0 %2422 }
 0xdd2   :  { %8407 = vpow2.f32 %v2431_v55  ;;  %v2429_v3 = vsub.f32 %v2407_v47, %v2423_v10 }
 0xdd4   :  { %v2435_v7 = vmul.f32 1.442695, %v2429_v3 }
 0xdd5   :  { %v2426_v12 = vpop.xlane.xlu0 %2425 }
 0xdd6   :  { %8409 = vpow2.f32 %v2435_v7  ;;  %v2430_v21 = vsub.f32 %v2412_v30, %v2426_v12  ;;  %v2717_v30 = vld [vmem:[%s10732_s7 + $0x20] sm:$0xff] }
 0xdd7   :  { %v7657_v45 = vpack.c.bf16 %v2718_v51, %v2717_v30 }
 0xdd8   :  { %v2437_v62 = vmul.f32 1.442695, %v2430_v21 }
 0xdda   :  { %8411 = vpow2.f32 %v2437_v62 }
 0xddb   :  { %v8406_v28 = vpop.eup %8405 }
 0xddc   :  { %v8408_v18 = vpop.eup %8407  ;;  %v2442_v63 = vsel %vm532_vm5, %v8406_v28, 0.0 }
 0xddd   :  { %2443 = vadd.xlane.f32.xlu0 %v2442_v63  ;;  %v2439_v13 = vsel %vm532_vm5, %v8408_v18, 0.0 }
 0xdde   :  { %2440 = vadd.xlane.f32.xlu1 %v2439_v13 }
 0xde0   :  { %v8410_v15 = vpop.eup %8409 }
 0xde1   :  { %v2445_v37 = vsel %vm532_vm5, %v8410_v15, 0.0 }
 0xde2   :  { %2446 = vadd.xlane.f32.xlu1 %v2445_v37 }
 0xde4   :  { %v8412_v57 = vpop.eup %8411 }
 0xde5   :  { %v2448_v14 = vsel %vm532_vm5, %v8412_v57, 0.0 }
 0xde6   :  { %2449 = vadd.xlane.f32.xlu0 %v2448_v14 }
 0xdf3   :  { %8134 = vrot.lane.b32.xlu1 %v9111_v1, %s10751_s28 }
 0xdf7   :  { %2572 = vrot.lane.b32.xlu1 %v9433_v26, %s10766_s3 }
 0xdfb   :  { %2574 = vrot.lane.b32.xlu1 %v9431_v33, %s10766_s3 }
 0xdfc   :  { %8139 = vrot.lane.b32.xlu0 %v9121_v11, %s10751_s28 }
 0xdff   :  { %2590 = vrot.lane.b32.xlu1 %v9439_v41, %s10755_s4 }
 0xe00   :  { %2588 = vrot.lane.b32.xlu0 %v9441_v44, %s10755_s4 }
 0xe03   :  { %2606 = vrot.lane.b32.xlu1 %v9543_v32, %s10759_s29 }
 0xe04   :  { %2604 = vrot.lane.b32.xlu0 %v9545_v6, %s10759_s29 }
 0xe07   :  { %2622 = vrot.lane.b32.xlu1 %v9551_v16, %s8792_s24 }
 0xe08   :  { %2620 = vrot.lane.b32.xlu0 %v9553_v22, %s8792_s24 }
 0xe0b   :  { %2638 = vrot.lane.b32.xlu1 %v9603_v5, %s8790_s11 }
 0xe0c   :  { %2636 = vrot.lane.b32.xlu0 %v9605_v40, %s8790_s11 }
 0xe0f   :  { %2654 = vrot.lane.b32.xlu1 %v7034_v23, %s8787_s20  ;;  %v2715_v23 = vld [vmem:[%s10732_s7 + $0x10] sm:$0xff] }
 0xe10   :  { %2652 = vrot.lane.b32.xlu0 %v2279_v50, %s8787_s20  ;;  %v7653_v47 = vpack.c.bf16 %v2716_v20, %v2715_v23 }
 0xe13   :  { %2578 = vrot.lane.b32.xlu1 %v9435_v35, %s10766_s3 }
 0xe14   :  { %2576 = vrot.lane.b32.xlu0 %v9437_v39, %s10766_s3 }
 0xe17   :  { %2594 = vrot.lane.b32.xlu1 %v9443_v0, %s10755_s4 }
 0xe18   :  { %2592 = vrot.lane.b32.xlu0 %v9445_v56, %s10755_s4 }
 0xe1b   :  { %2610 = vrot.lane.b32.xlu1 %v9547_v54, %s10759_s29 }
 0xe1c   :  { %2608 = vrot.lane.b32.xlu0 %v9549_v4, %s10759_s29 }
 0xe1f   :  { %2626 = vrot.lane.b32.xlu1 %v9555_v59, %s8792_s24 }
 0xe20   :  { %2624 = vrot.lane.b32.xlu0 %v9557_v38, %s8792_s24 }
 0xe23   :  { %2642 = vrot.lane.b32.xlu1 %v9607_v9, %s8790_s11  ;;  %v2713_v9 = vld [vmem:[%s10732_s7] sm:$0xff] }
 0xe24   :  { %2640 = vrot.lane.b32.xlu0 %v9609_v24, %s8790_s11  ;;  %v2714_v24 = vld [vmem:[%s10732_s7 + $0x8] sm:$0xff] }
 0xe25   :  { %v7649_v50 = vpack.c.bf16 %v2714_v24, %v2713_v9 }
 0xe6a   :  { %v2444_v11 = vpop.xlane.xlu0 %2443 }
 0xe6b   :  { %v2441_v1 = vpop.xlane.xlu1 %2440 }
 0xe6c   :  { %8413 = vrcp.f32 %v2441_v1 }
 0xe6d   :  { %8415 = vrcp.f32 %v2444_v11 }
 0xe6f   :  { %v2447_v33 = vpop.xlane.xlu1 %2446 }
 0xe70   :  { %8417 = vrcp.f32 %v2447_v33 }
 0xe73   :  { %v8135_v26 = vpop.permute.xlu1 %8134  ;;  %v2450_v35 = vpop.xlane.xlu0 %2449 }
 0xe74   :  { %v8137_v39 = vunpack.i.h.bf16 %v8135_v26  ;;  %v8136_v41 = vunpack.i.l.bf16 %v8135_v26  ;;  %8419 = vrcp.f32 %v2450_v35 }
 0xe76   :  { %v8414_v44 = vpop.eup %8413  ;;  %v7641_v0 = vpack.c.bf16 %v8137_v39, %v8136_v41 }
 0xe77   :  { %v8140_v56 = vpop.permute.xlu0 %8139  ;;  %v2455_v32 = vmul.f32 %v8414_v44, %v8408_v18  ;;  %v8416_v16 = vpop.eup %8415 }
 0xe78   :  { %v8142_v6 = vunpack.i.h.bf16 %v8140_v56  ;;  %v8141_v54 = vunpack.i.l.bf16 %v8140_v56  ;;  %7642 = vmatprep.subr.bf16.mxu1 %v7641_v0  ;;  %v2456_v59 = vmul.f32 %v8416_v16, %v8406_v28  ;;  %v2573_v3 = vpop.permute.xlu1 %2572 }
 0xe79   :  { %7644 = vmatpush3.bf16.msra.mxu1 %v7641_v0  ;;  %7060 = vmatprep.mubr.msk.f32.mxu1 %vm532_vm5, %v2455_v32  ;;  %v2680_v39 = vsel %vm426_vm3, %v9425_v34, %v2573_v3 }
 0xe7a   :  { %v7645_v4 = vpack.c.bf16 %v8142_v6, %v8141_v54  ;;  %v8418_v22 = vpop.eup %8417 }
 0xe7b   :  { %v2457_v5 = vmul.f32 %v8418_v22, %v8410_v15  ;;  %v2589_v21 = vpop.permute.xlu0 %2588 }
 0xe7c   :  { %7646 = vmatprep.subr.bf16.mxu1 %v7645_v4  ;;  %v2575_v7 = vpop.permute.xlu1 %2574  ;;  %v2685_v0 = vsel %vm2684_vm6, %v2680_v39, %v2589_v21 }
 0xe7d   :  { %7648 = vmatpush3.bf16.msra.mxu1 %v7645_v4  ;;  %v2681_v44 = vsel %vm426_vm3, %v9423_v17, %v2575_v7  ;;  %v6299_v7 = vld [vmem:[%s10733_s8] ss:$0 sm:$0xff] }
 0xe7e   :  { %v8420_v38 = vpop.eup %8419  ;;  %7650 = vmatprep.subr.bf16.mxu1 %v7649_v50 }
 0xe7f   :  { %v2458_v40 = vmul.f32 %v8420_v38, %v8412_v57  ;;  %v2605_v28 = vpop.permute.xlu0 %2604 }
 0xe80   :  { %7061 = vmatmul.mubr.msk.f32.vlgmr.msra.gmra.mrb[28].mxu1 %vm532_vm5, %v2456_v59  ;;  %v2591_v12 = vpop.permute.xlu1 %2590  ;;  %v2690_v6 = vsel %vm2689_vm7, %v2685_v0, %v2605_v28 }
 0xe81   :  { %7063 = vmatprep.mubr.msk.f32.mxu1 %vm532_vm5, %v2457_v5  ;;  %7652 = vmatpush3.bf16.msra.mxu1 %v7649_v50  ;;  %v2686_v32 = vsel %vm2684_vm6, %v2681_v44, %v2591_v12 }
 0xe82   :  { %7654 = vmatprep.subr.bf16.mxu1 %v7653_v47 }
 0xe83   :  { %v2621_v63 = vpop.permute.xlu0 %2620 }
 0xe84   :  { %7064 = vmatmul.mubr.msk.f32.gmra.mrb[30].mxu1 %vm532_vm5, %v2458_v40  ;;  %v2607_v62 = vpop.permute.xlu1 %2606  ;;  %v2694_v4 = vsel %vm532_vm5, %v2690_v6, %v2621_v63 }
 0xe85   :  { %7656 = vmatpush3.bf16.msra.mxu1 %v7653_v47  ;;  %v2691_v54 = vsel %vm2689_vm7, %v2686_v32, %v2607_v62 }
 0xe86   :  { %7658 = vmatprep.subr.bf16.mxu1 %v7657_v45 }
 0xe87   :  { %v2637_v15 = vpop.permute.xlu0 %2636 }
 0xe88   :  { %v2623_v18 = vpop.permute.xlu1 %2622  ;;  %v2699_v16 = vsel %vm2698_vm8, %v2694_v4, %v2637_v15 }
 0xe89   :  { %7660 = vmatpush3.bf16.msra.mxu1 %v7657_v45  ;;  %v2695_v34 = vsel %vm532_vm5, %v2691_v54, %v2623_v18 }
 0xe8a   :  { %7662 = vmatprep.subr.bf16.mxu1 %v7661_v58 }
 0xe8c   :  { %v2639_v13 = vpop.permute.xlu1 %2638 }
 0xe8d   :  { %7664 = vmatpush3.bf16.msra.mxu1 %v7661_v58  ;;  %v2700_v17 = vsel %vm2698_vm8, %v2695_v34, %v2639_v13 }
 0xe90   :  { %v2655_v37 = vpop.permute.xlu1 %2654 }
 0xe91   :  { %v2705_v5 = vsel %vm2703_vm9, %v2700_v17, %v2655_v37 }
 0xe94   :  { %v2579_v57 = vpop.permute.xlu1 %2578 }
 0xe95   :  { %v2683_v50 = vsel %vm426_vm3, %v9427_v31, %v2579_v57 }
 0xe98   :  { %v2595_v1 = vpop.permute.xlu1 %2594 }
 0xe99   :  { %v2688_v30 = vsel %vm2684_vm6, %v2683_v50, %v2595_v1  ;;  %v2908_v50 = vld [vmem:[#allocation7 + $0x20] sm:$0xff] }
 0xe9c   :  { %v2611_v11 = vpop.permute.xlu1 %2610 }
 0xe9d   :  { %v2693_v45 = vsel %vm2689_vm7, %v2688_v30, %v2611_v11  ;;  %v2910_v30 = vld [vmem:[#allocation7 + $0x30] sm:$0xff] }
 0xea0   :  { %v2627_v26 = vpop.permute.xlu1 %2626 }
 0xea1   :  { %v2697_v2 = vsel %vm532_vm5, %v2693_v45, %v2627_v26 }
 0xea4   :  { %v2643_v41 = vpop.permute.xlu1 %2642 }
 0xf53   :  { %v7062_v8 = vpop.f32.mrb[28].mxu1 }
 0xf54   :  { %2670 = vrot.lane.b32.xlu1 %v7062_v8, %s8786_s16  ;;  %v2549_v25 = vpop.f32.mrb[29].mxu1  ;;  %v2702_v8 = vsel %vm2698_vm8, %v2697_v2, %v2643_v41  ;;  %v3021_v2 = vld [vmem:[%s10738_s13 + $0x8] sm:$0xff] }
 0xf55   :  { %2668 = vrot.lane.b32.xlu0 %v2549_v25, %s8786_s16 }
 0xf57   :  { %v7065_v55 = vpop.f32.mrb[30].mxu1 }
 0xf58   :  { %2658 = vrot.lane.b32.xlu1 %v9675_v53, %s8787_s20  ;;  %v2559_v10 = vpop.f32.mrb[31].mxu1  ;;  %v2653_v53 = vpop.permute.xlu0 %2652 }
 0xf59   :  { %2656 = vrot.lane.b32.xlu0 %v9677_v27, %s8787_s20  ;;  %v2704_v59 = vsel %vm2703_vm9, %v2699_v16, %v2653_v53 }
 0xf5c   :  { %2674 = vrot.lane.b32.xlu1 %v7065_v55, %s8786_s16  ;;  %v2577_v14 = vpop.permute.xlu0 %2576 }
 0xf5d   :  { %2672 = vrot.lane.b32.xlu0 %v2559_v10, %s8786_s16  ;;  %v2682_v24 = vsel %vm426_vm3, %v9429_v60, %v2577_v14 }
 0xf60   :  { %v2593_v27 = vpop.permute.xlu0 %2592 }
 0xf61   :  { %v2687_v20 = vsel %vm2684_vm6, %v2682_v24, %v2593_v27  ;;  %v2907_v24 = vld [vmem:[#allocation7 + $0x18] sm:$0xff] }
 0xf64   :  { %v2609_v33 = vpop.permute.xlu0 %2608 }
 0xf65   :  { %v2692_v51 = vsel %vm2689_vm7, %v2687_v20, %v2609_v33  ;;  %v2909_v20 = vld [vmem:[#allocation7 + $0x28] sm:$0xff] }
 0xf68   :  { %v2625_v35 = vpop.permute.xlu0 %2624 }
 0xf69   :  { %v2696_v61 = vsel %vm532_vm5, %v2692_v51, %v2625_v35  ;;  %v2911_v51 = vld [vmem:[#allocation7 + $0x38] sm:$0xff] }
 0xf6a   :  { %v7677_v45 = vpack.c.bf16 %v2911_v51, %v2910_v30 }
 0xf6c   :  { %v2641_v56 = vpop.permute.xlu0 %2640 }
 0xf6d   :  { %v2701_v60 = vsel %vm2698_vm8, %v2696_v61, %v2641_v56  ;;  %v3020_v61 = vld [vmem:[%s10738_s13] sm:$0xff] }
 0xfc6   :  { %v2671_v22 = vpop.permute.xlu1 %2670 }
 0xfc7   :  { %v2669_v38 = vpop.permute.xlu0 %2668  ;;  %v2710_v9 = vsel %vm2708_vm10, %v2705_v5, %v2671_v22  ;;  %v2905_v5 = vld [vmem:[#allocation7 + $0x8] sm:$0xff] }
 0xfc8   :  { %v2709_v40 = vsel %vm2708_vm10, %v2704_v59, %v2669_v38  ;;  %v2904_v38 = vld [vmem:[#allocation7] sm:$0xff] }
 0xfc9   :  { %7082 = vmatprep.mubr.msk.f32.mxu1 %vm308_vm2, %v2709_v40  ;;  %v7665_v40 = vpack.c.bf16 %v2905_v5, %v2904_v38 }
 0xfca   :  { %v2659_v23 = vpop.permute.xlu1 %2658  ;;  %7083 = vmatmul.mubr.msk.f32.vlgmr.msra.gmra.mrb[32].mxu1 %vm308_vm2, %v2710_v9  ;;  %v2906_v9 = vld [vmem:[#allocation7 + $0x10] sm:$0xff] }
 0xfcb   :  { %v2657_v47 = vpop.permute.xlu0 %2656  ;;  %v2707_v55 = vsel %vm2703_vm9, %v2702_v8, %v2659_v23  ;;  %7666 = vmatprep.subr.bf16.mxu0 %v7665_v40  ;;  %v7669_v23 = vpack.c.bf16 %v2907_v24, %v2906_v9  ;;  %v3023_v8 = vld [vmem:[%s10738_s13 + $0x18] sm:$0xff] }
 0xfcc   :  { %v2706_v31 = vsel %vm2703_vm9, %v2701_v60, %v2657_v47  ;;  %7668 = vmatpush3.bf16.msra.mxu0 %v7665_v40  ;;  %v7673_v47 = vpack.c.bf16 %v2909_v20, %v2908_v50  ;;  %v3022_v60 = vld [vmem:[%s10738_s13 + $0x10] sm:$0xff] }
 0xfcd   :  { %7670 = vmatprep.subr.bf16.mxu0 %v7669_v23  ;;  %v3034_v50 = vld [vmem:[%s10738_s13 + $0x70] sm:$0xff] }
 0xfce   :  { %v2675_v58 = vpop.permute.xlu1 %2674 }
 0xfcf   :  { %v2673_v25 = vpop.permute.xlu0 %2672  ;;  %v2712_v3 = vsel %vm2708_vm10, %v2707_v55, %v2675_v58  ;;  %v7681_v58 = vpack.c.bf16 %v3021_v2, %v3020_v61  ;;  %v3025_v55 = vld [vmem:[%s10738_s13 + $0x28] sm:$0xff] }
 0xfd0   :  { %v2711_v10 = vsel %vm2708_vm10, %v2706_v31, %v2673_v25  ;;  %7672 = vmatpush3.bf16.msra.mxu0 %v7669_v23  ;;  %v7685_v31 = vpack.c.bf16 %v3023_v8, %v3022_v60  ;;  %v3024_v25 = vld [vmem:[%s10738_s13 + $0x20] sm:$0xff] }
 0xfd1   :  { %7085 = vmatprep.mubr.msk.f32.mxu1 %vm308_vm2, %v2711_v10  ;;  %7674 = vmatprep.subr.bf16.mxu0 %v7673_v47  ;;  %v7689_v10 = vpack.c.bf16 %v3025_v55, %v3024_v25 }
 0xfd2   :  { %7086 = vmatmul.mubr.msk.f32.gmra.mrb[34].mxu1 %vm308_vm2, %v2712_v3  ;;  %7682 = vmatprep.subr.bf16.mxu1 %v7681_v58  ;;  %v3026_v3 = vld [vmem:[%s10738_s13 + $0x30] sm:$0xff] }
 0xfd3   :  { %7684 = vmatpush3.bf16.msra.mxu1 %v7681_v58 }
 0xfd4   :  { %7676 = vmatpush3.bf16.msra.mxu0 %v7673_v47  ;;  %7686 = vmatprep.subr.bf16.mxu1 %v7685_v31 }
 0xfd5   :  { %7678 = vmatprep.subr.bf16.mxu0 %v7677_v45 }
 0xfd7   :  { %7688 = vmatpush3.bf16.msra.mxu1 %v7685_v31 }
 0xfd8   :  { %7680 = vmatpush3.bf16.msra.mxu0 %v7677_v45  ;;  %7690 = vmatprep.subr.bf16.mxu1 %v7689_v10 }
 0xfdb   :  { %7692 = vmatpush3.bf16.msra.mxu1 %v7689_v10  ;;  %v6311_v10 = vld [vmem:[#allocation8] ss:$0 sm:$0xff] }
0x109d   :  { %v7084_v12 = vpop.f32.mrb[32].mxu1 }
0x109e   :  { %v2812_v21 = vadd.f32 %v7084_v12, %v6299_v7  ;;  %v2806_v62 = vpop.f32.mrb[33].mxu1 }
0x109f   :  { %v2807_v28 = vadd.f32 %v6299_v7, %v2806_v62  ;;  %v3029_v62 = vld [vmem:[%s10738_s13 + $0x48] sm:$0xff] }
0x10a0   :  { %v2826_v18 = vadd.f32 %v2812_v21, %v9080_v42  ;;  %v3028_v21 = vld [vmem:[%s10738_s13 + $0x40] sm:$0xff] }
0x10a1   :  { %v2825_v63 = vadd.f32 %v2807_v28, %v9075_v36  ;;  %v7697_v28 = vpack.c.bf16 %v3029_v62, %v3028_v21 }
0x10a2   :  { %v2834_v13 = vsel %vm308_vm2, %v2826_v18, 0.0 }
0x10a3   :  { %2835 = vadd.xlane.f32.xlu1 %v2834_v13  ;;  %v2831_v15 = vsel %vm308_vm2, %v2825_v63, 0.0 }
0x10a4   :  { %2832 = vadd.xlane.f32.xlu0 %v2831_v15  ;;  %v3032_v15 = vld [vmem:[%s10738_s13 + $0x60] sm:$0xff] }
0x10a5   :  { %v7087_v37 = vpop.f32.mrb[34].mxu1 }
0x10a6   :  { %v2816_v53 = vpop.f32.mrb[35].mxu1  ;;  %v2822_v57 = vadd.f32 %v7087_v37, %v6299_v7  ;;  %v3033_v37 = vld [vmem:[%s10738_s13 + $0x68] sm:$0xff] }
0x10a7   :  { %v2817_v14 = vadd.f32 %v6299_v7, %v2816_v53  ;;  %v3027_v7 = vld [vmem:[%s10738_s13 + $0x38] sm:$0xff]  ;;  %v7705_v53 = vpack.c.bf16 %v3033_v37, %v3032_v15 }
0x10a8   :  { %v2828_v27 = vadd.f32 %v2822_v57, %v9090_v46  ;;  %v7693_v12 = vpack.c.bf16 %v3027_v7, %v3026_v3 }
0x10a9   :  { %v2827_v1 = vadd.f32 %v2817_v14, %v9082_v43 }
0x10aa   :  { %v2840_v42 = vsel %vm308_vm2, %v2828_v27, 0.0  ;;  %7694 = vmatprep.subr.bf16.mxu1 %v7693_v12 }
0x10ab   :  { %v2837_v11 = vsel %vm308_vm2, %v2827_v1, 0.0  ;;  %7696 = vmatpush3.bf16.msra.mxu1 %v7693_v12 }
0x10ac   :  { %2838 = vadd.xlane.f32.xlu0 %v2837_v11  ;;  %7698 = vmatprep.subr.bf16.mxu1 %v7697_v28 }
0x10af   :  { %7700 = vmatpush3.bf16.msra.mxu1 %v7697_v28 }
0x10b0   :  { %2841 = vadd.xlane.f32.xlu0 %v2840_v42 }
0x1130   :  { %v2836_v36 = vpop.xlane.xlu1 %2835 }
0x1131   :  { %v2845_v33 = vmul.f32 0.015625, %v2836_v36  ;;  %v2833_v26 = vpop.xlane.xlu0 %2832 }
0x1132   :  { %v2844_v35 = vmul.f32 0.015625, %v2833_v26 }
0x1133   :  { %v9820_v39 = vsub.f32 %v2826_v18, %v2845_v33  ;;  %v3030_v18 = vld [vmem:[%s10738_s13 + $0x50] sm:$0xff] }
0x1134   :  { %v9822_v41 = vsub.f32 %v2825_v63, %v2844_v35  ;;  %v3031_v63 = vld [vmem:[%s10738_s13 + $0x58] sm:$0xff] }
0x1135   :  { %v2853_v44 = vmul.f32 %v9820_v39, %v9820_v39  ;;  %v7701_v13 = vpack.c.bf16 %v3031_v63, %v3030_v18 }
0x1136   :  { %v2852_v43 = vmul.f32 %v9822_v41, %v9822_v41 }
0x1137   :  { %v2859_v46 = vsel %vm308_vm2, %v2853_v44, 0.0  ;;  %7702 = vmatprep.subr.bf16.mxu1 %v7701_v13 }
0x1138   :  { %2860 = vadd.xlane.f32.xlu0 %v2859_v46  ;;  %v2856_v0 = vsel %vm308_vm2, %v2852_v43, 0.0  ;;  %7704 = vmatpush3.bf16.msra.mxu1 %v7701_v13  ;;  %v6304_v46 = vld [vmem:[%s10734_s9] ss:$0 sm:$0xff] }
0x1139   :  { %2857 = vadd.xlane.f32.xlu1 %v2856_v0  ;;  %v2839_v56 = vpop.xlane.xlu0 %2838  ;;  %7706 = vmatprep.subr.bf16.mxu1 %v7705_v53 }
0x113a   :  { %v2846_v32 = vmul.f32 0.015625, %v2839_v56 }
0x113c   :  { %v9830_v6 = vsub.f32 %v2827_v1, %v2846_v32  ;;  %7708 = vmatpush3.bf16.msra.mxu1 %v7705_v53 }
0x113d   :  { %v2842_v54 = vpop.xlane.xlu0 %2841 }
0x113e   :  { %v2847_v4 = vmul.f32 0.015625, %v2842_v54  ;;  %v2854_v34 = vmul.f32 %v9830_v6, %v9830_v6 }
0x1140   :  { %v9834_v16 = vsub.f32 %v2828_v27, %v2847_v4  ;;  %v2862_v22 = vsel %vm308_vm2, %v2854_v34, 0.0  ;;  %v6305_v4 = vld [vmem:[%s10735_s10] ss:$0 sm:$0xff] }
0x1141   :  { %2863 = vadd.xlane.f32.xlu1 %v2862_v22 }
0x1142   :  { %v2855_v17 = vmul.f32 %v9834_v16, %v9834_v16 }
0x1144   :  { %v2865_v59 = vsel %vm308_vm2, %v2855_v17, 0.0 }
0x1145   :  { %2866 = vadd.xlane.f32.xlu0 %v2865_v59 }
0x11c5   :  { %v2861_v57 = vpop.xlane.xlu0 %2860 }
0x11c6   :  { %v2869_v14 = vmul.f32 0.015625, %v2861_v57  ;;  %v2858_v1 = vpop.xlane.xlu1 %2857 }
0x11c7   :  { %v2868_v27 = vmul.f32 0.015625, %v2858_v1 }
0x11c8   :  { %v2873_v11 = vadd.f32 1e-05, %v2869_v14 }
0x11c9   :  { %v2872_v42 = vadd.f32 1e-05, %v2868_v27 }
0x11ca   :  { %8421 = vrsqrt.f32 %v2873_v11 }
0x11cb   :  { %8423 = vrsqrt.f32 %v2872_v42 }
0x11ce   :  { %v2864_v36 = vpop.xlane.xlu1 %2863 }
0x11cf   :  { %v2870_v33 = vmul.f32 0.015625, %v2864_v36 }
0x11d1   :  { %v2874_v26 = vadd.f32 1e-05, %v2870_v33 }
0x11d2   :  { %v2867_v35 = vpop.xlane.xlu0 %2866 }
0x11d3   :  { %8425 = vrsqrt.f32 %v2874_v26  ;;  %v2871_v44 = vmul.f32 0.015625, %v2867_v35 }
0x11d4   :  { %v8422_v43 = vpop.eup %8421 }
0x11d5   :  { %v8424_v0 = vpop.eup %8423  ;;  %v2881_v56 = vmul.f32 %v8422_v43, %v9820_v39  ;;  %v2875_v32 = vadd.f32 1e-05, %v2871_v44 }
0x11d6   :  { %v2880_v54 = vmul.f32 %v8424_v0, %v9822_v41 }
0x11d7   :  { %8427 = vrsqrt.f32 %v2875_v32  ;;  %v2891_v34 = vmul.f32 %v6304_v46, %v2881_v56 }
0x11d8   :  { %v2890_v22 = vmul.f32 %v6304_v46, %v2880_v54 }
0x11d9   :  { %v2901_v59 = vadd.f32 %v6305_v4, %v2891_v34 }
0x11da   :  { %v2900_v17 = vadd.f32 %v6305_v4, %v2890_v22 }
0x11dc   :  { %7104 = vmatprep.mubr.msk.f32.mxu0 %vm308_vm2, %v2900_v17 }
0x11dd   :  { %v8426_v38 = vpop.eup %8425  ;;  %7105 = vmatmul.mubr.msk.f32.vlgmr.msra.gmra.mrb[44].mxu0 %vm308_vm2, %v2901_v59 }
0x11de   :  { %v2882_v5 = vmul.f32 %v8426_v38, %v9830_v6  ;;  %v3035_v6 = vld [vmem:[%s10738_s13 + $0x78] sm:$0xff] }
0x11df   :  { %v7709_v20 = vpack.c.bf16 %v3035_v6, %v3034_v50  ;;  %v6319_v50 = vld [vmem:[%s10730_s5 + $0xa8] sm:$0xff]  ;;  %v6321_v6 = vld [vmem:[%s10730_s5 + $0xb8] sm:$0xff] }
0x11e0   :  { %v2892_v39 = vmul.f32 %v6304_v46, %v2882_v5 }
0x11e1   :  { %v8428_v40 = vpop.eup %8427  ;;  %7710 = vmatprep.subr.bf16.mxu1 %v7709_v20 }
0x11e2   :  { %v2902_v9 = vadd.f32 %v6305_v4, %v2892_v39  ;;  %v2883_v41 = vmul.f32 %v8428_v40, %v9834_v16  ;;  %7712 = vmatpush3.bf16.msra.mxu1 %v7709_v20  ;;  %v6306_v16 = vld [vmem:[%s10737_s12] ss:$0 sm:$0xff]  ;;  %v6315_v39 = vld [vmem:[%s10730_s5 + $0x88] sm:$0xff]  ;;  %v6317_v40 = vld [vmem:[%s10730_s5 + $0x98] sm:$0xff]  ;;  %v7717_v20 = vpack.c.bf16 %v6321_v6, %v6319_v50 }
0x11e4   :  { %7107 = vmatprep.mubr.msk.f32.mxu0 %vm308_vm2, %v2902_v9  ;;  %v2893_v24 = vmul.f32 %v6304_v46, %v2883_v41  ;;  %v6314_v41 = vld [vmem:[%s10730_s5 + $0x80] sm:$0xff] }
0x11e6   :  { %v2903_v23 = vadd.f32 %v6305_v4, %v2893_v24  ;;  %v6316_v24 = vld [vmem:[%s10730_s5 + $0x90] sm:$0xff] }
0x11e8   :  { %7108 = vmatmul.mubr.msk.f32.gmra.mrb[46].mxu0 %vm308_vm2, %v2903_v23 }
0x11e9   :  { %3312 = vmatprep.mubr.f32.mxu0 %v8784_v29 }
0x12b0   :  { %v7106_v47 = vpop.f32.mrb[44].mxu0 }
0x12b1   :  { %v3003_v30 = vadd.f32 %v7106_v47, %v6306_v16  ;;  %v2997_v51 = vpop.f32.mrb[45].mxu0  ;;  %v6320_v47 = vld [vmem:[%s10730_s5 + $0xb0] sm:$0xff] }
0x12b2   :  { %v2998_v45 = vadd.f32 %v6306_v16, %v2997_v51  ;;  %v6323_v51 = vld [vmem:[%s10730_s5 + $0xc8] sm:$0xff] }
0x12b3   :  { %v3017_v2 = vmax.f32 %v3003_v30, 0.0 }
0x12b4   :  { %v3016_v61 = vmax.f32 %v2998_v45, 0.0  ;;  %v6325_v45 = vld [vmem:[%s10730_s5 + $0xd8] sm:$0xff] }
0x12b6   :  { %7142 = vmatprep.mubr.f32.mxu1 %v3016_v61  ;;  %v7721_v61 = vpack.c.bf16 %v6325_v45, %v6323_v51 }
0x12b7   :  { %7143 = vmatmul.mubr.f32.vlgmr.msra.gmra.mrb[36].mxu1 %v3017_v2  ;;  %v6322_v2 = vld [vmem:[%s10730_s5 + $0xc0] sm:$0xff] }
0x12bb   :  { %v7109_v60 = vpop.f32.mrb[46].mxu0 }
0x12bc   :  { %v3013_v58 = vadd.f32 %v7109_v60, %v6306_v16  ;;  %v3007_v8 = vpop.f32.mrb[47].mxu0  ;;  %v6324_v60 = vld [vmem:[%s10730_s5 + $0xd0] sm:$0xff] }
0x12bd   :  { %v3008_v31 = vadd.f32 %v6306_v16, %v3007_v8  ;;  %v6318_v16 = vld [vmem:[%s10730_s5 + $0xa0] sm:$0xff]  ;;  %v6327_v8 = vld [vmem:[%s10730_s5 + $0xe8] sm:$0xff] }
0x12be   :  { %v3019_v55 = vmax.f32 %v3013_v58, 0.0  ;;  %v7719_v30 = vpack.c.bf16 %v6320_v47, %v6318_v16  ;;  %v7723_v58 = vpack.c.bf16 %v6324_v60, %v6322_v2 }
0x12bf   :  { %v3018_v25 = vmax.f32 %v3008_v31, 0.0  ;;  %v6329_v31 = vld [vmem:[%s10730_s5 + $0xf8] sm:$0xff] }
0x12c1   :  { %7145 = vmatprep.mubr.f32.mxu1 %v3018_v25  ;;  %v6326_v25 = vld [vmem:[%s10730_s5 + $0xe0] sm:$0xff] }
0x12c2   :  { %7146 = vmatmul.mubr.f32.gmra.mrb[38].mxu1 %v3019_v55  ;;  %v7725_v55 = vpack.c.bf16 %v6329_v31, %v6327_v8 }
0x138a   :  { %v7144_v3 = vpop.f32.mrb[36].mxu1 }
0x138b   :  { %v3115_v7 = vadd.f32 %v7144_v3, %v6311_v10  ;;  %v3109_v12 = vpop.f32.mrb[37].mxu1 }
0x138c   :  { %v3110_v21 = vadd.f32 %v6311_v10, %v3109_v12 }
0x138d   :  { %v3129_v62 = vadd.f32 %v3115_v7, %v2901_v59 }
0x138e   :  { %v3128_v28 = vadd.f32 %v3110_v21, %v2900_v17 }
0x138f   :  { %v3137_v18 = vsel %vm308_vm2, %v3129_v62, 0.0 }
0x1390   :  { %3138 = vadd.xlane.f32.xlu0 %v3137_v18  ;;  %v3134_v63 = vsel %vm308_vm2, %v3128_v28, 0.0 }
0x1391   :  { %3135 = vadd.xlane.f32.xlu1 %v3134_v63 }
0x1395   :  { %v7147_v13 = vpop.f32.mrb[38].mxu1 }
0x1396   :  { %v3125_v15 = vadd.f32 %v7147_v13, %v6311_v10  ;;  %v3119_v37 = vpop.f32.mrb[39].mxu1 }
0x1397   :  { %v3120_v53 = vadd.f32 %v6311_v10, %v3119_v37  ;;  %v6328_v10 = vld [vmem:[%s10730_s5 + $0xf0] sm:$0xff] }
0x1398   :  { %v3131_v57 = vadd.f32 %v3125_v15, %v2903_v23  ;;  %v7715_v23 = vpack.c.bf16 %v6316_v24, %v6314_v41  ;;  %v7727_v3 = vpack.c.bf16 %v6328_v10, %v6326_v25 }
0x1399   :  { %v3130_v14 = vadd.f32 %v3120_v53, %v2902_v9  ;;  %v7713_v9 = vpack.c.bf16 %v6317_v40, %v6315_v39 }
0x139a   :  { %v3143_v1 = vsel %vm308_vm2, %v3131_v57, 0.0 }
0x139b   :  { %3144 = vadd.xlane.f32.xlu0 %v3143_v1  ;;  %v3140_v27 = vsel %vm308_vm2, %v3130_v14, 0.0  ;;  %7714 = vmatprep.subr.bf16.mxu0 %v7713_v9 }
0x139c   :  { %3141 = vadd.xlane.f32.xlu1 %v3140_v27  ;;  %7716 = vmatpush1.bf16.msra.mxu0 %v7715_v23  ;;  %v6312_v27 = vld [vmem:[#allocation10] ss:$0 sm:$0xff] }
0x139d   :  { %7718 = vmatprep.subr.bf16.mxu0 %v7717_v20 }
0x13a0   :  { %7720 = vmatpush1.bf16.msra.mxu0 %v7719_v30 }
0x13a1   :  { %7722 = vmatprep.subr.bf16.mxu0 %v7721_v61 }
0x13a4   :  { %7724 = vmatpush1.bf16.msra.mxu0 %v7723_v58 }
0x13a5   :  { %7726 = vmatprep.subr.bf16.mxu0 %v7725_v55 }
0x13a8   :  { %7728 = vmatpush1.bf16.msra.mxu0 %v7727_v3 }
0x141d   :  { %v3139_v11 = vpop.xlane.xlu0 %3138 }
0x141e   :  { %v3147_v42 = vmul.f32 0.015625, %v3139_v11  ;;  %v3136_v36 = vpop.xlane.xlu1 %3135 }
0x141f   :  { %v3146_v33 = vmul.f32 0.015625, %v3136_v36  ;;  %v6313_v36 = vld [vmem:[#allocation11] ss:$0 sm:$0xff] }
0x1420   :  { %v9910_v26 = vsub.f32 %v3129_v62, %v3147_v42 }
0x1421   :  { %v9912_v35 = vsub.f32 %v3128_v28, %v3146_v33 }
0x1422   :  { %v3155_v44 = vmul.f32 %v9910_v26, %v9910_v26 }
0x1423   :  { %v3154_v43 = vmul.f32 %v9912_v35, %v9912_v35 }
0x1424   :  { %v3161_v46 = vsel %vm308_vm2, %v3155_v44, 0.0 }
0x1425   :  { %3162 = vadd.xlane.f32.xlu0 %v3161_v46  ;;  %v3158_v0 = vsel %vm308_vm2, %v3154_v43, 0.0 }
0x1426   :  { %3159 = vadd.xlane.f32.xlu1 %v3158_v0 }
0x1428   :  { %v3145_v56 = vpop.xlane.xlu0 %3144 }
0x1429   :  { %v3149_v32 = vmul.f32 0.015625, %v3145_v56  ;;  %v3142_v54 = vpop.xlane.xlu1 %3141 }
0x142a   :  { %v3148_v4 = vmul.f32 0.015625, %v3142_v54 }
0x142b   :  { %v9920_v34 = vsub.f32 %v3131_v57, %v3149_v32 }
0x142c   :  { %v9922_v22 = vsub.f32 %v3130_v14, %v3148_v4 }
0x142d   :  { %v3157_v17 = vmul.f32 %v9920_v34, %v9920_v34 }
0x142e   :  { %v3156_v59 = vmul.f32 %v9922_v22, %v9922_v22 }
0x142f   :  { %v3167_v38 = vsel %vm308_vm2, %v3157_v17, 0.0 }
0x1430   :  { %3168 = vadd.xlane.f32.xlu0 %v3167_v38  ;;  %v3164_v5 = vsel %vm308_vm2, %v3156_v59, 0.0 }
0x1431   :  { %3165 = vadd.xlane.f32.xlu1 %v3164_v5 }
0x14b2   :  { %v3163_v7 = vpop.xlane.xlu0 %3162 }
0x14b3   :  { %v3171_v12 = vmul.f32 0.015625, %v3163_v7  ;;  %v3160_v21 = vpop.xlane.xlu1 %3159 }
0x14b4   :  { %v3170_v62 = vmul.f32 0.015625, %v3160_v21 }
0x14b5   :  { %v3175_v28 = vadd.f32 1e-05, %v3171_v12 }
0x14b6   :  { %v3174_v18 = vadd.f32 1e-05, %v3170_v62 }
0x14b7   :  { %8429 = vrsqrt.f32 %v3175_v28 }
0x14b8   :  { %8431 = vrsqrt.f32 %v3174_v18 }
0x14bd   :  { %v3169_v63 = vpop.xlane.xlu0 %3168 }
0x14be   :  { %v3173_v13 = vmul.f32 0.015625, %v3169_v63  ;;  %v3166_v15 = vpop.xlane.xlu1 %3165 }
0x14bf   :  { %v3172_v37 = vmul.f32 0.015625, %v3166_v15 }
0x14c0   :  { %v3177_v53 = vadd.f32 1e-05, %v3173_v13 }
0x14c1   :  { %v8430_v57 = vpop.eup %8429  ;;  %v3176_v14 = vadd.f32 1e-05, %v3172_v37 }
0x14c2   :  { %v8432_v1 = vpop.eup %8431  ;;  %8433 = vrsqrt.f32 %v3177_v53  ;;  %v3183_v42 = vmul.f32 %v8430_v57, %v9910_v26 }
0x14c3   :  { %v3182_v11 = vmul.f32 %v8432_v1, %v9912_v35  ;;  %8435 = vrsqrt.f32 %v3176_v14 }
0x14c4   :  { %v3193_v43 = vmul.f32 %v6312_v27, %v3183_v42 }
0x14c5   :  { %v3192_v33 = vmul.f32 %v6312_v27, %v3182_v11 }
0x14c6   :  { %v9985_v46 = vadd.f32 %v6313_v36, %v3193_v43 }
0x14c7   :  { %v9980_v44 = vadd.f32 %v6313_v36, %v3192_v33  ;;  %v10071_v33 = vld [vmem:[%s10772_s21 + $0x8] sm:$0xff] }
0x14c9   :  { %6331 = vmatmul.mubr.msk.f32.vlgmr.msra.gmra.mrb[48].mxu0 %vm308_vm2, %v9980_v44 }
0x14ca   :  { %3318 = vmatprep.mubr.f32.mxu0 %v8784_v29 }
0x14cc   :  { %v8434_v0 = vpop.eup %8433 }
0x14cd   :  { %v8436_v56 = vpop.eup %8435  ;;  %6332 = vmatmul.mubr.msk.f32.gmra.mrb[50].mxu0 %vm308_vm2, %v9985_v46  ;;  %v3185_v35 = vmul.f32 %v8434_v0, %v9920_v34 }
0x14ce   :  { %3324 = vmatprep.mubr.f32.mxu0 %v8784_v29  ;;  %v3184_v26 = vmul.f32 %v8436_v56, %v9922_v22  ;;  %v6330_v22 = vld [vmem:[%s10731_s6 + $0x2] sm:$0x3] }
0x14cf   :  { %v3195_v4 = vmul.f32 %v6312_v27, %v3185_v35  ;;  %v3229_v34 = vrot.slane %v6330_v22, %v300_v49  ;;  %v3233_v39 = vrot.slane %v6330_v22, %v304_v52  ;;  %v10077_v56 = vld [vmem:[%s10772_s21] sm:$0xff] }
0x14d0   :  { %v3194_v32 = vmul.f32 %v6312_v27, %v3184_v26 }
0x14d1   :  { %v9997_v17 = vadd.f32 %v6313_v36, %v3195_v4 }
0x14d2   :  { %v9992_v54 = vadd.f32 %v6313_v36, %v3194_v32 }
0x14d4   :  { %6333 = vmatmul.mubr.msk.f32.gmra.mrb[52].mxu0 %vm308_vm2, %v9992_v54 }
0x14d5   :  { %3330 = vmatprep.mubr.f32.mxu0 %v8784_v29 }
0x14d8   :  { %6334 = vmatmul.mubr.msk.f32.gmra.mrb[54].mxu0 %vm308_vm2, %v9997_v17 }
0x159c   :  { %v3314_v59 = vpop.f32.mrb[48].mxu0 }
0x159d   :  { %v3315_v38 = vadd.f32 %v3314_v59, %v3229_v34  ;;  %v3316_v5 = vpop.f32.mrb[49].mxu0 }
0x159e   :  { %v3317_v23 = vadd.f32 %v3316_v5, %v3233_v39 }
0x159f   :  { %v10008_v40 = vmul.f32 0.35355338, %v3315_v38 }
0x15a0   :  { %v3320_v9 = vpop.f32.mrb[50].mxu0 }
0x15a1   :  { %v3321_v41 = vadd.f32 %v3320_v9, %v3229_v34  ;;  %v3322_v24 = vpop.f32.mrb[51].mxu0  ;;  %7156 = vmatprep.mubr.msk.f32.mxu0 %vm426_vm3, %v10008_v40 }
0x15a2   :  { %v3323_v50 = vadd.f32 %v3322_v24, %v3233_v39 }
0x15a3   :  { %v10012_v6 = vpack.i.bf16 %v3321_v41, %v3315_v38  ;;  %v10028_v8 = vmul.f32 0.35355338, %v3321_v41  ;;  %v10091_v38 = vld [vmem:[%s10772_s21 + $0x18] sm:$0xff] }
0x15a4   :  { %v7741_v20 = vpack.c.bf16 %v3323_v50, %v3317_v23  ;;  %v10014_v49 = vpack.i.bf16 %v3323_v50, %v3317_v23 }
0x15a5   :  { %8144 = vrot.lane.b32.xlu1 %v10012_v6, %s8785_s1 }
0x15a6   :  { %7742 = vmatprep.subr.bf16.mxu1 %v7741_v20 }
0x15a7   :  { %v3326_v48 = vpop.f32.mrb[52].mxu0  ;;  %7744 = vmatpush3.bf16.msra.mxu1 %v7741_v20 }
0x15a8   :  { %v3328_v52 = vpop.f32.mrb[53].mxu0  ;;  %v3327_v47 = vadd.f32 %v3326_v48, %v3229_v34 }
0x15a9   :  { %8154 = vrot.lane.b32.xlu1 %v10012_v6, %s8786_s16  ;;  %v3329_v45 = vadd.f32 %v3328_v52, %v3233_v39 }
0x15aa   :  { %v10034_v31 = vmul.f32 0.35355338, %v3327_v47 }
0x15ab   :  { %v3332_v16 = vpop.f32.mrb[54].mxu0 }
0x15ac   :  { %v3333_v30 = vadd.f32 %v3332_v16, %v3229_v34  ;;  %v3334_v51 = vpop.f32.mrb[55].mxu0  ;;  %v10085_v34 = vld [vmem:[%s10772_s21 + $0x10] sm:$0xff] }
0x15ad   :  { %v3335_v61 = vadd.f32 %v3334_v51, %v3233_v39 }
0x15ae   :  { %v10020_v2 = vpack.i.bf16 %v3333_v30, %v3327_v47  ;;  %v10036_v25 = vmul.f32 0.35355338, %v3333_v30 }
0x15af   :  { %v7745_v60 = vpack.c.bf16 %v3335_v61, %v3329_v45  ;;  %v10022_v58 = vpack.i.bf16 %v3335_v61, %v3329_v45 }
0x15b0   :  { %8159 = vrot.lane.b32.xlu1 %v10020_v2, %s8786_s16  ;;  %8149 = vrot.lane.b32.xlu0 %v10020_v2, %s8785_s1 }
0x15b1   :  { %7746 = vmatprep.subr.bf16.mxu1 %v7745_v60 }
0x15b2   :  { %7748 = vmatpush3.bf16.msra.mxu1 %v7745_v60 }
0x15b4   :  { %3601 = vrot.lane.b32.xlu1 %v10028_v8, %s8788_s14  ;;  %3599 = vrot.lane.b32.xlu0 %v10008_v40, %s8788_s14 }
0x15b8   :  { %3603 = vrot.lane.b32.xlu0 %v10034_v31, %s8788_s14  ;;  %3605 = vrot.lane.b32.xlu1 %v10036_v25, %s8788_s14 }
0x1617   :  { %v8145_v55 = vpop.permute.xlu1 %8144 }
0x1618   :  { %v8147_v10 = vunpack.i.h.bf16 %v8145_v55  ;;  %v8146_v3 = vunpack.i.l.bf16 %v8145_v55 }
0x161a   :  { %v7729_v7 = vpack.c.bf16 %v8147_v10, %v8146_v3 }
0x161b   :  { %v8155_v12 = vpop.permute.xlu1 %8154 }
0x161c   :  { %7731 = vmatprep.subr.msk.bf16.mxu0 %vm9163_vm4, %v7729_v7  ;;  %v8157_v62 = vunpack.i.h.bf16 %v8155_v12  ;;  %v8156_v28 = vunpack.i.l.bf16 %v8155_v12 }
0x161d   :  { %7734 = vmatpush3.bf16.xpose.msk.msra.mxu0 %vm9163_vm4, %v7729_v7 }
0x161e   :  { %v7749_v15 = vpack.c.bf16 %v8157_v62, %v8156_v28 }
0x1622   :  { %v8150_v21 = vpop.permute.xlu0 %8149  ;;  %v8160_v37 = vpop.permute.xlu1 %8159 }
0x1623   :  { %v8152_v18 = vunpack.i.h.bf16 %v8150_v21  ;;  %v8151_v63 = vunpack.i.l.bf16 %v8150_v21  ;;  %v8162_v53 = vunpack.i.h.bf16 %v8160_v37  ;;  %v8161_v57 = vunpack.i.l.bf16 %v8160_v37 }
0x1625   :  { %v7735_v13 = vpack.c.bf16 %v8152_v18, %v8151_v63  ;;  %v7755_v14 = vpack.c.bf16 %v8162_v53, %v8161_v57 }
0x1626   :  { %v3600_v1 = vpop.permute.xlu0 %3599  ;;  %v3602_v27 = vpop.permute.xlu1 %3601 }
0x1627   :  { %7737 = vmatprep.subr.msk.bf16.mxu0 %vm9163_vm4, %v7735_v13 }
0x1628   :  { %7740 = vmatpush3.bf16.xpose.msk.msra.mxu0 %vm9163_vm4, %v7735_v13 }
0x1629   :  { %7751 = vmatprep.subr.msk.bf16.mxu0 %vm9163_vm4, %v7749_v15 }
0x162a   :  { %v3604_v11 = vpop.permute.xlu0 %3603  ;;  %v3606_v42 = vpop.permute.xlu1 %3605 }
0x162f   :  { %7157 = vmatmul.mubr.msk.f32.vlgmr.msra.gmra.mrb[56].mxu0 %vm426_vm3, %v10028_v8 }
0x1630   :  { %7159 = vmatprep.mubr.msk.f32.mxu0 %vm426_vm3, %v10034_v31  ;;  %7754 = vmatpush3.bf16.xpose.msk.msra.mxu0 %vm9163_vm4, %v7749_v15 }
0x1631   :  { %7757 = vmatprep.subr.msk.bf16.mxu0 %vm9163_vm4, %v7755_v14 }
0x1633   :  { %7160 = vmatmul.mubr.msk.f32.gmra.mrb[58].mxu0 %vm426_vm3, %v10036_v25 }
0x1634   :  { %7184 = vmatprep.mubr.msk.f32.mxu0 %vm426_vm3, %v3600_v1 }
0x1638   :  { %7760 = vmatpush3.bf16.xpose.msk.msra.mxu0 %vm9163_vm4, %v7755_v14 }
0x163f   :  { %7185 = vmatmul.mubr.msk.f32.vlgmr.msra.gmra.mrb[60].mxu0 %vm426_vm3, %v3602_v27 }
0x1640   :  { %7187 = vmatprep.mubr.msk.f32.mxu0 %vm426_vm3, %v3604_v11 }
0x1643   :  { %7188 = vmatmul.mubr.msk.f32.gmra.mrb[62].mxu0 %vm426_vm3, %v3606_v42 }
0x1702   :  { %v7158_v36 = vpop.f32.mrb[56].mxu0 }
0x1703   :  { %v3445_v43 = vadd.f32 %v10071_v33, %v7158_v36  ;;  %v3439_v0 = vpop.f32.mrb[57].mxu0 }
0x1704   :  { %v3440_v26 = vadd.f32 %v10077_v56, %v3439_v0 }
0x1705   :  { %v3461_v35 = vsel %vm532_vm5, %v3445_v43, -inf }
0x1706   :  { %3462 = vmax.xlane.f32.xlu1 %v3461_v35  ;;  %v7161_v32 = vpop.f32.mrb[58].mxu0  ;;  %v3458_v4 = vsel %vm532_vm5, %v3440_v26, -inf }
0x1707   :  { %3459 = vmax.xlane.f32.xlu0 %v3458_v4  ;;  %v3449_v22 = vpop.f32.mrb[59].mxu0  ;;  %v3455_v5 = vadd.f32 %v10091_v38, %v7161_v32 }
0x1708   :  { %v3450_v59 = vadd.f32 %v10085_v34, %v3449_v22 }
0x1709   :  { %v3467_v9 = vsel %vm532_vm5, %v3455_v5, -inf }
0x170a   :  { %v3464_v39 = vsel %vm532_vm5, %v3450_v59, -inf }
0x170b   :  { %3465 = vmax.xlane.f32.xlu0 %v3464_v39 }
0x170f   :  { %3468 = vmax.xlane.f32.xlu0 %v3467_v9 }
0x1712   :  { %v7186_v41 = vpop.f32.mrb[60].mxu0 }
0x1713   :  { %v3703_v24 = vadd.f32 %v10071_v33, %v7186_v41  ;;  %v3697_v23 = vpop.f32.mrb[61].mxu0 }
0x1714   :  { %v3698_v50 = vadd.f32 %v10077_v56, %v3697_v23 }
0x1715   :  { %v3719_v20 = vsel %vm532_vm5, %v3703_v24, -inf }
0x1716   :  { %v7189_v48 = vpop.f32.mrb[62].mxu0  ;;  %3720 = vmax.xlane.f32.xlu0 %v3719_v20  ;;  %v3716_v52 = vsel %vm532_vm5, %v3698_v50, -inf }
0x1717   :  { %v3713_v16 = vadd.f32 %v10091_v38, %v7189_v48  ;;  %v3707_v47 = vpop.f32.mrb[63].mxu0  ;;  %3717 = vmax.xlane.f32.xlu1 %v3716_v52 }
0x1718   :  { %v10105_v51 = vadd.f32 %v10085_v34, %v3707_v47 }
0x1719   :  { %v3725_v30 = vsel %vm532_vm5, %v3713_v16, -inf }
0x171a   :  { %3726 = vmax.xlane.f32.xlu0 %v3725_v30  ;;  %v3722_v45 = vsel %vm532_vm5, %v10105_v51, -inf }
0x1728   :  { %8164 = vrot.lane.b32.xlu1 %v10014_v49, %s8788_s14 }
0x174c   :  { %3723 = vmax.xlane.f32.xlu1 %v3722_v45 }
0x1793   :  { %v3463_v61 = vpop.xlane.xlu1 %3462 }
0x1794   :  { %v3471_v60 = vsub.f32 %v3445_v43, %v3463_v61  ;;  %v3460_v55 = vpop.xlane.xlu0 %3459 }
0x1795   :  { %v3470_v10 = vsub.f32 %v3440_v26, %v3460_v55 }
0x1796   :  { %v3476_v3 = vmul.f32 1.442695, %v3471_v60 }
0x1797   :  { %v3474_v7 = vmul.f32 1.442695, %v3470_v10 }
0x1798   :  { %8437 = vpow2.f32 %v3476_v3  ;;  %v3466_v12 = vpop.xlane.xlu0 %3465 }
0x1799   :  { %8439 = vpow2.f32 %v3474_v7  ;;  %v3472_v21 = vsub.f32 %v3450_v59, %v3466_v12 }
0x179b   :  { %v3478_v62 = vmul.f32 1.442695, %v3472_v21 }
0x179c   :  { %v3469_v28 = vpop.xlane.xlu0 %3468 }
0x179d   :  { %8441 = vpow2.f32 %v3478_v62  ;;  %v3473_v18 = vsub.f32 %v3455_v5, %v3469_v28 }
0x179f   :  { %v3480_v63 = vmul.f32 1.442695, %v3473_v18 }
0x17a1   :  { %8443 = vpow2.f32 %v3480_v63 }
0x17a2   :  { %v10109_v13 = vpop.eup %8437 }
0x17a3   :  { %v8440_v15 = vpop.eup %8439  ;;  %v3721_v37 = vpop.xlane.xlu0 %3720  ;;  %v3485_v53 = vsel %vm532_vm5, %v10109_v13, 0.0 }
0x17a4   :  { %v3729_v57 = vsub.f32 %v3703_v24, %v3721_v37  ;;  %v3718_v14 = vpop.xlane.xlu1 %3717  ;;  %3486 = vadd.xlane.f32.xlu0 %v3485_v53  ;;  %v3482_v1 = vsel %vm532_vm5, %v8440_v15, 0.0 }
0x17a5   :  { %3483 = vadd.xlane.f32.xlu1 %v3482_v1  ;;  %v3728_v59 = vsub.f32 %v3698_v50, %v3718_v14 }
0x17a6   :  { %v3734_v27 = vmul.f32 1.442695, %v3729_v57 }
0x17a7   :  { %v8442_v11 = vpop.eup %8441  ;;  %v3732_v5 = vmul.f32 1.442695, %v3728_v59  ;;  %v3727_v39 = vpop.xlane.xlu0 %3726 }
0x17a8   :  { %8445 = vpow2.f32 %v3734_v27  ;;  %v8165_v42 = vpop.permute.xlu1 %8164  ;;  %v3488_v36 = vsel %vm532_vm5, %v8442_v11, 0.0  ;;  %v3731_v9 = vsub.f32 %v3713_v16, %v3727_v39 }
0x17a9   :  { %v8167_v43 = vunpack.i.h.bf16 %v8165_v42  ;;  %v8166_v0 = vunpack.i.l.bf16 %v8165_v42  ;;  %3489 = vadd.xlane.f32.xlu1 %v3488_v36  ;;  %8447 = vpow2.f32 %v3732_v5 }
0x17aa   :  { %v3738_v41 = vmul.f32 1.442695, %v3731_v9 }
0x17ab   :  { %v8444_v26 = vpop.eup %8443  ;;  %v7761_v35 = vpack.c.bf16 %v8167_v43, %v8166_v0 }
0x17ac   :  { %v3491_v32 = vsel %vm532_vm5, %v8444_v26, 0.0  ;;  %8449 = vpow2.f32 %v3738_v41 }
0x17ad   :  { %7762 = vmatprep.subr.bf16.mxu1 %v7761_v35  ;;  %3492 = vadd.xlane.f32.xlu0 %v3491_v32 }
0x17b2   :  { %v10116_v4 = vpop.eup %8445 }
0x17b3   :  { %v3743_v22 = vsel %vm532_vm5, %v10116_v4, 0.0  ;;  %v8448_v24 = vpop.eup %8447 }
0x17b4   :  { %3744 = vadd.xlane.f32.xlu0 %v3743_v22  ;;  %v3740_v23 = vsel %vm532_vm5, %v8448_v24, 0.0 }
0x17b6   :  { %v10125_v20 = vpop.eup %8449 }
0x17b7   :  { %v3749_v48 = vsel %vm532_vm5, %v10125_v20, 0.0 }
0x17ba   :  { %8174 = vrot.lane.b32.xlu1 %v10012_v6, %s8787_s20 }
0x17ca   :  { %8169 = vrot.lane.b32.xlu0 %v10022_v58, %s8788_s14  ;;  %s10773_s14 = smov 24  }
0x17d9   :  { %v3724_v50 = vpop.xlane.xlu1 %3723 }
0x17da   :  { %v3730_v52 = vsub.f32 %v10105_v51, %v3724_v50 }
0x17dc   :  { %v3736_v16 = vmul.f32 1.442695, %v3730_v52 }
0x17de   :  { %3741 = vadd.xlane.f32.xlu1 %v3740_v23  ;;  %8451 = vpow2.f32 %v3736_v16 }
0x17e8   :  { %v8452_v47 = vpop.eup %8451 }
0x17e9   :  { %3750 = vadd.xlane.f32.xlu0 %v3749_v48  ;;  %v3746_v30 = vsel %vm532_vm5, %v8452_v47, 0.0 }
0x17ef   :  { %8179 = vrot.lane.b32.xlu1 %v10020_v2, %s8787_s20 }
0x17ff   :  { %3873 = vrot.lane.b32.xlu0 %v10008_v40, %s8789_s27 }
0x1803   :  { %3877 = vrot.lane.b32.xlu0 %v10034_v31, %s8789_s27 }
0x1813   :  { %3747 = vadd.xlane.f32.xlu1 %v3746_v30 }
0x1824   :  { %3875 = vrot.lane.b32.xlu1 %v10028_v8, %s8789_s27 }
0x1828   :  { %3879 = vrot.lane.b32.xlu1 %v10036_v25, %s8789_s27 }
0x1831   :  { %v3487_v45 = vpop.xlane.xlu0 %3486 }
0x1832   :  { %8453 = vrcp.f32 %v3487_v45  ;;  %v3484_v51 = vpop.xlane.xlu1 %3483 }
0x1833   :  { %8455 = vrcp.f32 %v3484_v51 }
0x1836   :  { %v3490_v61 = vpop.xlane.xlu1 %3489 }
0x1837   :  { %8457 = vrcp.f32 %v3490_v61 }
0x183a   :  { %v3493_v60 = vpop.xlane.xlu0 %3492  ;;  %v8175_v62 = vpop.permute.xlu1 %8174 }
0x183b   :  { %8459 = vrcp.f32 %v3493_v60  ;;  %v8177_v63 = vunpack.i.h.bf16 %v8175_v62  ;;  %v8176_v53 = vunpack.i.l.bf16 %v8175_v62 }
0x183c   :  { %v8454_v55 = vpop.eup %8453 }
0x183d   :  { %v8456_v10 = vpop.eup %8455  ;;  %v3499_v7 = vmul.f32 %v8454_v55, %v10109_v13  ;;  %v7769_v1 = vpack.c.bf16 %v8177_v63, %v8176_v53 }
0x183e   :  { %v3498_v3 = vmul.f32 %v8456_v10, %v8440_v15 }
0x1840   :  { %7170 = vmatprep.mubr.msk.f32.mxu1 %vm532_vm5, %v3498_v3 }
0x1841   :  { %v8458_v12 = vpop.eup %8457  ;;  %7171 = vmatmul.mubr.msk.f32.vlgmr.msra.gmra.mrb[40].mxu1 %vm532_vm5, %v3499_v7  ;;  %v3745_v21 = vpop.xlane.xlu0 %3744 }
0x1842   :  { %7764 = vmatpush3.bf16.msra.mxu1 %v7761_v35  ;;  %v3500_v28 = vmul.f32 %v8458_v12, %v8442_v11  ;;  %8461 = vrcp.f32 %v3745_v21 }
0x1844   :  { %7173 = vmatprep.mubr.msk.f32.mxu1 %vm532_vm5, %v3500_v28 }
0x1845   :  { %v8460_v18 = vpop.eup %8459  ;;  %v8170_v37 = vpop.permute.xlu0 %8169 }
0x1846   :  { %v8172_v57 = vunpack.i.h.bf16 %v8170_v37  ;;  %v8171_v14 = vunpack.i.l.bf16 %v8170_v37  ;;  %v3501_v15 = vmul.f32 %v8460_v18, %v8444_v26 }
0x1848   :  { %7174 = vmatmul.mubr.msk.f32.gmra.mrb[42].mxu1 %vm532_vm5, %v3501_v15  ;;  %v7765_v13 = vpack.c.bf16 %v8172_v57, %v8171_v14 }
0x184a   :  { %7766 = vmatprep.subr.bf16.mxu1 %v7765_v13 }
0x184b   :  { %7768 = vmatpush3.bf16.msra.mxu1 %v7765_v13 }
0x184c   :  { %7771 = vmatprep.subr.msk.bf16.mxu1 %vm9163_vm4, %v7769_v1  ;;  %v8462_v42 = vpop.eup %8461 }
0x184d   :  { %v3757_v26 = vmul.f32 %v8462_v42, %v10116_v4 }
0x186b   :  { %v3742_v27 = vpop.xlane.xlu1 %3741 }
0x186c   :  { %8463 = vrcp.f32 %v3742_v27 }
0x186f   :  { %v8180_v11 = vpop.permute.xlu1 %8179 }
0x1870   :  { %v8182_v43 = vunpack.i.h.bf16 %v8180_v11  ;;  %v8181_v0 = vunpack.i.l.bf16 %v8180_v11 }
0x1872   :  { %v7775_v32 = vpack.c.bf16 %v8182_v43, %v8181_v0 }
0x1876   :  { %v8464_v36 = vpop.eup %8463  ;;  %v3751_v22 = vpop.xlane.xlu0 %3750 }
0x1877   :  { %v3756_v35 = vmul.f32 %v8464_v36, %v8448_v24  ;;  %8465 = vrcp.f32 %v3751_v22 }
0x1879   :  { %7198 = vmatprep.mubr.msk.f32.mxu1 %vm532_vm5, %v3756_v35 }
0x187a   :  { %7199 = vmatmul.mubr.msk.f32.vlgmr.msra.gmra.mrb[44].mxu1 %vm532_vm5, %v3757_v26  ;;  %v3874_v9 = vpop.permute.xlu0 %3873 }
0x187b   :  { %7774 = vmatpush3.bf16.xpose.msk.msra.mxu1 %vm9163_vm4, %v7769_v1 }
0x187c   :  { %7777 = vmatprep.subr.msk.bf16.mxu1 %vm9163_vm4, %v7775_v32 }
0x187e   :  { %v3878_v23 = vpop.permute.xlu0 %3877 }
0x1881   :  { %v8466_v5 = vpop.eup %8465 }
0x1882   :  { %v3759_v41 = vmul.f32 %v8466_v5, %v10125_v20 }
0x1883   :  { %7780 = vmatpush3.bf16.xpose.msk.msra.mxu1 %vm9163_vm4, %v7775_v32 }
0x18a0   :  { %v3748_v59 = vpop.xlane.xlu1 %3747 }
0x18a1   :  { %8467 = vrcp.f32 %v3748_v59 }
0x18a4   :  { %v3876_v24 = vpop.permute.xlu1 %3875 }
0x18a8   :  { %v3880_v48 = vpop.permute.xlu1 %3879 }
0x18ab   :  { %v8468_v4 = vpop.eup %8467 }
0x18ac   :  { %v3758_v39 = vmul.f32 %v8468_v4, %v8452_v47 }
0x18ae   :  { %7201 = vmatprep.mubr.msk.f32.mxu1 %vm532_vm5, %v3758_v39 }
0x18af   :  { %7202 = vmatmul.mubr.msk.f32.gmra.mrb[46].mxu1 %vm532_vm5, %v3759_v41 }
0x18b0   :  { %7212 = vmatprep.mubr.msk.f32.mxu1 %vm426_vm3, %v3874_v9 }
0x18b3   :  { %7213 = vmatmul.mubr.msk.f32.vlgmr.msra.gmra.mrb[48].mxu1 %vm426_vm3, %v3876_v24 }
0x18b4   :  { %7215 = vmatprep.mubr.msk.f32.mxu1 %vm426_vm3, %v3878_v23 }
0x18b7   :  { %7216 = vmatmul.mubr.msk.f32.gmra.mrb[50].mxu1 %vm426_vm3, %v3880_v48 }
0x1914   :  { %v10164_v50 = vpop.f32.mrb[40].mxu1 }
0x1915   :  { %v10166_v52 = vpop.f32.mrb[41].mxu1 }
0x191b   :  { %v10168_v20 = vpop.f32.mrb[42].mxu1 }
0x191c   :  { %v10170_v16 = vpop.f32.mrb[43].mxu1 }
0x194d   :  { %v10172_v47 = vpop.f32.mrb[44].mxu1 }
0x194e   :  { %v10174_v30 = vpop.f32.mrb[45].mxu1 }
0x1982   :  { %v10176_v45 = vpop.f32.mrb[46].mxu1 }
0x1983   :  { %v10178_v51 = vpop.f32.mrb[47].mxu1 }
0x1986   :  { %v7214_v61 = vpop.f32.mrb[48].mxu1 }
0x1987   :  { %v3977_v60 = vadd.f32 %v10071_v33, %v7214_v61  ;;  %v3971_v55 = vpop.f32.mrb[49].mxu1 }
0x1988   :  { %v3972_v10 = vadd.f32 %v10077_v56, %v3971_v55 }
0x1989   :  { %v3993_v3 = vsel %vm532_vm5, %v3977_v60, -inf }
0x198a   :  { %3994 = vmax.xlane.f32.xlu1 %v3993_v3  ;;  %v7217_v7 = vpop.f32.mrb[50].mxu1  ;;  %v3990_v12 = vsel %vm532_vm5, %v3972_v10, -inf }
0x198b   :  { %v3981_v21 = vpop.f32.mrb[51].mxu1  ;;  %3991 = vmax.xlane.f32.xlu0 %v3990_v12  ;;  %v3987_v28 = vadd.f32 %v10091_v38, %v7217_v7 }
0x198c   :  { %v3982_v62 = vadd.f32 %v10085_v34, %v3981_v21 }
0x198d   :  { %v3999_v63 = vsel %vm532_vm5, %v3987_v28, -inf }
0x198e   :  { %v3996_v18 = vsel %vm532_vm5, %v3982_v62, -inf }
0x198f   :  { %3997 = vmax.xlane.f32.xlu0 %v3996_v18 }
0x1993   :  { %4000 = vmax.xlane.f32.xlu0 %v3999_v63 }
0x199b   :  { %8184 = vrot.lane.b32.xlu1 %v10014_v49, %s8789_s27 }
0x199f   :  { %8194 = vrot.lane.b32.xlu1 %v10012_v6, %s8790_s11 }
0x1a17   :  { %v3995_v37 = vpop.xlane.xlu1 %3994 }
0x1a18   :  { %v4003_v53 = vsub.f32 %v3977_v60, %v3995_v37  ;;  %v3992_v57 = vpop.xlane.xlu0 %3991 }
0x1a19   :  { %v4002_v14 = vsub.f32 %v3972_v10, %v3992_v57 }
0x1a1a   :  { %v4008_v15 = vmul.f32 1.442695, %v4003_v53 }
0x1a1b   :  { %v4006_v13 = vmul.f32 1.442695, %v4002_v14  ;;  %v8185_v1 = vpop.permute.xlu1 %8184 }
0x1a1c   :  { %8469 = vpow2.f32 %v4008_v15  ;;  %v8187_v27 = vunpack.i.h.bf16 %v8185_v1  ;;  %v8186_v11 = vunpack.i.l.bf16 %v8185_v1  ;;  %v3998_v26 = vpop.xlane.xlu0 %3997 }
0x1a1d   :  { %8471 = vpow2.f32 %v4006_v13  ;;  %v4004_v59 = vsub.f32 %v3982_v62, %v3998_v26 }
0x1a1e   :  { %v7781_v42 = vpack.c.bf16 %v8187_v27, %v8186_v11 }
0x1a1f   :  { %v4010_v4 = vmul.f32 1.442695, %v4004_v59  ;;  %v8195_v23 = vpop.permute.xlu1 %8194 }
0x1a20   :  { %7782 = vmatprep.subr.bf16.mxu0 %v7781_v42  ;;  %v4001_v32 = vpop.xlane.xlu0 %4000  ;;  %v8197_v55 = vunpack.i.h.bf16 %v8195_v23  ;;  %v8196_v10 = vunpack.i.l.bf16 %v8195_v23 }
0x1a21   :  { %7784 = vmatpush3.bf16.msra.mxu0 %v7781_v42  ;;  %v4005_v22 = vsub.f32 %v3987_v28, %v4001_v32 }
0x1a22   :  { %v7789_v21 = vpack.c.bf16 %v8197_v55, %v8196_v10 }
0x1a23   :  { %v4012_v5 = vmul.f32 1.442695, %v4005_v22 }
0x1a25   :  { %8473 = vpow2.f32 %v4012_v5 }
0x1a26   :  { %v8470_v36 = vpop.eup %8469  ;;  %8475 = vpow2.f32 %v4010_v4 }
0x1a27   :  { %v8472_v43 = vpop.eup %8471  ;;  %v4017_v0 = vsel %vm532_vm5, %v8470_v36, 0.0 }
0x1a28   :  { %4018 = vadd.xlane.f32.xlu0 %v4017_v0  ;;  %v4014_v35 = vsel %vm532_vm5, %v8472_v43, 0.0 }
0x1a29   :  { %4015 = vadd.xlane.f32.xlu1 %v4014_v35 }
0x1a2f   :  { %v8474_v39 = vpop.eup %8473 }
0x1a30   :  { %v8476_v9 = vpop.eup %8475  ;;  %v4023_v41 = vsel %vm532_vm5, %v8474_v39, 0.0 }
0x1a31   :  { %v4020_v24 = vsel %vm532_vm5, %v8476_v9, 0.0 }
0x1a3a   :  { %8199 = vrot.lane.b32.xlu1 %v10020_v2, %s8790_s11 }
0x1a3e   :  { %8189 = vrot.lane.b32.xlu0 %v10022_v58, %s8789_s27  ;;  %s10774_s27 = smov 88  }
0x1a5d   :  { %4024 = vadd.xlane.f32.xlu0 %v4023_v41 }
0x1a5e   :  { %4021 = vadd.xlane.f32.xlu1 %v4020_v24 }
0x1a6f   :  { %4145 = vrot.lane.b32.xlu1 %v10028_v8, %s8791_s0 }
0x1a73   :  { %4149 = vrot.lane.b32.xlu1 %v10036_v25, %s8791_s0  ;;  %4143 = vrot.lane.b32.xlu0 %v10008_v40, %s8791_s0 }
0x1a77   :  { %4147 = vrot.lane.b32.xlu0 %v10034_v31, %s8791_s0 }
0x1ab5   :  { %v4019_v48 = vpop.xlane.xlu0 %4018 }
0x1ab6   :  { %8477 = vrcp.f32 %v4019_v48  ;;  %v4016_v61 = vpop.xlane.xlu1 %4015 }
0x1ab7   :  { %8479 = vrcp.f32 %v4016_v61 }
0x1ab9   :  { %v8190_v60 = vpop.permute.xlu0 %8189 }
0x1aba   :  { %v8192_v3 = vunpack.i.h.bf16 %v8190_v60  ;;  %v8191_v7 = vunpack.i.l.bf16 %v8190_v60  ;;  %v8200_v28 = vpop.permute.xlu1 %8199 }
0x1abb   :  { %v8202_v53 = vunpack.i.h.bf16 %v8200_v28  ;;  %v8201_v57 = vunpack.i.l.bf16 %v8200_v28 }
0x1abc   :  { %v7785_v12 = vpack.c.bf16 %v8192_v3, %v8191_v7 }
0x1abd   :  { %v7795_v14 = vpack.c.bf16 %v8202_v53, %v8201_v57 }
0x1abe   :  { %7786 = vmatprep.subr.bf16.mxu0 %v7785_v12 }
0x1abf   :  { %7788 = vmatpush3.bf16.msra.mxu0 %v7785_v12 }
0x1ac0   :  { %v8478_v62 = vpop.eup %8477  ;;  %7791 = vmatprep.subr.msk.bf16.mxu0 %vm9163_vm4, %v7789_v21 }
0x1ac1   :  { %v8480_v18 = vpop.eup %8479  ;;  %v4031_v37 = vmul.f32 %v8478_v62, %v8470_v36 }
0x1ac2   :  { %v4030_v63 = vmul.f32 %v8480_v18, %v8472_v43 }
0x1ac4   :  { %7226 = vmatprep.mubr.msk.f32.mxu0 %vm532_vm5, %v4030_v63 }
0x1ac5   :  { %7227 = vmatmul.mubr.msk.f32.vlgmr.msra.gmra.mrb[64].mxu0 %vm532_vm5, %v4031_v37 }
0x1ac8   :  { %7794 = vmatpush3.bf16.xpose.msk.msra.mxu0 %vm9163_vm4, %v7789_v21 }
0x1ac9   :  { %7797 = vmatprep.subr.msk.bf16.mxu0 %vm9163_vm4, %v7795_v14 }
0x1ad0   :  { %7800 = vmatpush3.bf16.xpose.msk.msra.mxu0 %vm9163_vm4, %v7795_v14 }
0x1aea   :  { %v4025_v15 = vpop.xlane.xlu0 %4024 }
0x1aeb   :  { %8481 = vrcp.f32 %v4025_v15  ;;  %v4022_v13 = vpop.xlane.xlu1 %4021 }
0x1aec   :  { %8483 = vrcp.f32 %v4022_v13 }
0x1aee   :  { %v4144_v42 = vpop.permute.xlu0 %4143 }
0x1aef   :  { %v4146_v43 = vpop.permute.xlu1 %4145 }
0x1af2   :  { %v4148_v0 = vpop.permute.xlu0 %4147 }
0x1af3   :  { %v4150_v35 = vpop.permute.xlu1 %4149 }
0x1af5   :  { %v8482_v1 = vpop.eup %8481 }
0x1af6   :  { %v8484_v27 = vpop.eup %8483  ;;  %v4033_v36 = vmul.f32 %v8482_v1, %v8474_v39 }
0x1af7   :  { %v4032_v11 = vmul.f32 %v8484_v27, %v8476_v9 }
0x1af9   :  { %7229 = vmatprep.mubr.msk.f32.mxu0 %vm532_vm5, %v4032_v11 }
0x1afa   :  { %7230 = vmatmul.mubr.msk.f32.gmra.mrb[66].mxu0 %vm532_vm5, %v4033_v36 }
0x1afb   :  { %7240 = vmatprep.mubr.msk.f32.mxu0 %vm426_vm3, %v4144_v42 }
0x1afe   :  { %7241 = vmatmul.mubr.msk.f32.vlgmr.msra.gmra.mrb[68].mxu0 %vm426_vm3, %v4146_v43 }
0x1aff   :  { %7243 = vmatprep.mubr.msk.f32.mxu0 %vm426_vm3, %v4148_v0 }
0x1b02   :  { %7244 = vmatmul.mubr.msk.f32.gmra.mrb[70].mxu0 %vm426_vm3, %v4150_v35 }
0x1b98   :  { %v10224_v26 = vpop.f32.mrb[64].mxu0 }
0x1b99   :  { %v10226_v32 = vpop.f32.mrb[65].mxu0 }
0x1bcd   :  { %v10228_v22 = vpop.f32.mrb[66].mxu0 }
0x1bce   :  { %v10230_v59 = vpop.f32.mrb[67].mxu0 }
0x1bd1   :  { %v7242_v5 = vpop.f32.mrb[68].mxu0 }
0x1bd2   :  { %v4247_v4 = vadd.f32 %v10071_v33, %v7242_v5  ;;  %v4241_v39 = vpop.f32.mrb[69].mxu0 }
0x1bd3   :  { %v4242_v9 = vadd.f32 %v10077_v56, %v4241_v39 }
0x1bd4   :  { %v4263_v41 = vsel %vm532_vm5, %v4247_v4, -inf }
0x1bd5   :  { %4264 = vmax.xlane.f32.xlu1 %v4263_v41  ;;  %v7245_v24 = vpop.f32.mrb[70].mxu0  ;;  %v4260_v23 = vsel %vm532_vm5, %v4242_v9, -inf }
0x1bd6   :  { %v4251_v48 = vpop.f32.mrb[71].mxu0  ;;  %4261 = vmax.xlane.f32.xlu0 %v4260_v23  ;;  %v4257_v60 = vadd.f32 %v10091_v38, %v7245_v24 }
0x1bd7   :  { %v4252_v61 = vadd.f32 %v10085_v34, %v4251_v48 }
0x1bd8   :  { %v4269_v10 = vsel %vm532_vm5, %v4257_v60, -inf }
0x1bd9   :  { %v4266_v55 = vsel %vm532_vm5, %v4252_v61, -inf }
0x1bda   :  { %4267 = vmax.xlane.f32.xlu0 %v4266_v55 }
0x1bde   :  { %4270 = vmax.xlane.f32.xlu0 %v4269_v10 }
0x1be6   :  { %8204 = vrot.lane.b32.xlu1 %v10014_v49, %s8791_s0 }
0x1bea   :  { %8214 = vrot.lane.b32.xlu1 %v10012_v6, %s8792_s24 }
0x1c62   :  { %v4265_v3 = vpop.xlane.xlu1 %4264 }
0x1c63   :  { %v4273_v7 = vsub.f32 %v4247_v4, %v4265_v3  ;;  %v4262_v12 = vpop.xlane.xlu0 %4261 }
0x1c64   :  { %v4272_v21 = vsub.f32 %v4242_v9, %v4262_v12 }
0x1c65   :  { %v4278_v62 = vmul.f32 1.442695, %v4273_v7 }
0x1c66   :  { %v4276_v28 = vmul.f32 1.442695, %v4272_v21  ;;  %v8205_v18 = vpop.permute.xlu1 %8204 }
0x1c67   :  { %8485 = vpow2.f32 %v4278_v62  ;;  %v8207_v63 = vunpack.i.h.bf16 %v8205_v18  ;;  %v8206_v37 = vunpack.i.l.bf16 %v8205_v18  ;;  %v4268_v1 = vpop.xlane.xlu0 %4267 }
0x1c68   :  { %8487 = vpow2.f32 %v4276_v28  ;;  %v4274_v42 = vsub.f32 %v4252_v61, %v4268_v1 }
0x1c69   :  { %v7801_v53 = vpack.c.bf16 %v8207_v63, %v8206_v37 }
0x1c6a   :  { %v4280_v43 = vmul.f32 1.442695, %v4274_v42  ;;  %v8215_v39 = vpop.permute.xlu1 %8214 }
0x1c6b   :  { %7802 = vmatprep.subr.bf16.mxu1 %v7801_v53  ;;  %v4271_v27 = vpop.xlane.xlu0 %4270  ;;  %v8217_v23 = vunpack.i.h.bf16 %v8215_v39  ;;  %v8216_v48 = vunpack.i.l.bf16 %v8215_v39 }
0x1c6c   :  { %7804 = vmatpush3.bf16.msra.mxu1 %v7801_v53  ;;  %v4275_v11 = vsub.f32 %v4257_v60, %v4271_v27 }
0x1c6d   :  { %v7809_v10 = vpack.c.bf16 %v8217_v23, %v8216_v48 }
0x1c6e   :  { %v4282_v36 = vmul.f32 1.442695, %v4275_v11 }
0x1c70   :  { %8489 = vpow2.f32 %v4282_v36 }
0x1c71   :  { %v8486_v57 = vpop.eup %8485  ;;  %8491 = vpow2.f32 %v4280_v43 }
0x1c72   :  { %v8488_v14 = vpop.eup %8487  ;;  %v4287_v15 = vsel %vm532_vm5, %v8486_v57, 0.0 }
0x1c73   :  { %4288 = vadd.xlane.f32.xlu0 %v4287_v15  ;;  %v4284_v13 = vsel %vm532_vm5, %v8488_v14, 0.0 }
0x1c74   :  { %4285 = vadd.xlane.f32.xlu1 %v4284_v13 }
0x1c7a   :  { %v8490_v0 = vpop.eup %8489 }
0x1c7b   :  { %v8492_v35 = vpop.eup %8491  ;;  %v4293_v5 = vsel %vm532_vm5, %v8490_v0, 0.0 }
0x1c7c   :  { %v4290_v4 = vsel %vm532_vm5, %v8492_v35, 0.0 }
0x1c85   :  { %8219 = vrot.lane.b32.xlu1 %v10020_v2, %s8792_s24 }
0x1c89   :  { %8209 = vrot.lane.b32.xlu0 %v10022_v58, %s8791_s0  ;;  %s10775_s0 = smov 16  }
0x1ca8   :  { %4294 = vadd.xlane.f32.xlu0 %v4293_v5 }
0x1ca9   :  { %4291 = vadd.xlane.f32.xlu1 %v4290_v4 }
0x1cba   :  { %4415 = vrot.lane.b32.xlu1 %v10028_v8, %s8793_s25 }
0x1cbe   :  { %4419 = vrot.lane.b32.xlu1 %v10036_v25, %s8793_s25  ;;  %4413 = vrot.lane.b32.xlu0 %v10008_v40, %s8793_s25 }
0x1cc2   :  { %4417 = vrot.lane.b32.xlu0 %v10034_v31, %s8793_s25 }
0x1d00   :  { %v4289_v9 = vpop.xlane.xlu0 %4288 }
0x1d01   :  { %8493 = vrcp.f32 %v4289_v9  ;;  %v4286_v41 = vpop.xlane.xlu1 %4285 }
0x1d02   :  { %8495 = vrcp.f32 %v4286_v41 }
0x1d04   :  { %v8210_v24 = vpop.permute.xlu0 %8209 }
0x1d05   :  { %v8212_v61 = vunpack.i.h.bf16 %v8210_v24  ;;  %v8211_v60 = vunpack.i.l.bf16 %v8210_v24  ;;  %v8220_v7 = vpop.permute.xlu1 %8219 }
0x1d06   :  { %v8222_v28 = vunpack.i.h.bf16 %v8220_v7  ;;  %v8221_v18 = vunpack.i.l.bf16 %v8220_v7 }
0x1d07   :  { %v7805_v55 = vpack.c.bf16 %v8212_v61, %v8211_v60 }
0x1d08   :  { %v7815_v63 = vpack.c.bf16 %v8222_v28, %v8221_v18 }
0x1d09   :  { %7806 = vmatprep.subr.bf16.mxu1 %v7805_v55 }
0x1d0a   :  { %7808 = vmatpush3.bf16.msra.mxu1 %v7805_v55 }
0x1d0b   :  { %v8494_v3 = vpop.eup %8493  ;;  %7811 = vmatprep.subr.msk.bf16.mxu1 %vm9163_vm4, %v7809_v10 }
0x1d0c   :  { %v8496_v12 = vpop.eup %8495  ;;  %v4301_v62 = vmul.f32 %v8494_v3, %v8486_v57 }
0x1d0d   :  { %v4300_v21 = vmul.f32 %v8496_v12, %v8488_v14 }
0x1d0f   :  { %7254 = vmatprep.mubr.msk.f32.mxu1 %vm532_vm5, %v4300_v21 }
0x1d10   :  { %7255 = vmatmul.mubr.msk.f32.vlgmr.msra.gmra.mrb[52].mxu1 %vm532_vm5, %v4301_v62 }
0x1d13   :  { %7814 = vmatpush3.bf16.xpose.msk.msra.mxu1 %vm9163_vm4, %v7809_v10 }
0x1d14   :  { %7817 = vmatprep.subr.msk.bf16.mxu1 %vm9163_vm4, %v7815_v63 }
0x1d1b   :  { %7820 = vmatpush3.bf16.xpose.msk.msra.mxu1 %vm9163_vm4, %v7815_v63 }
0x1d35   :  { %v4295_v37 = vpop.xlane.xlu0 %4294 }
0x1d36   :  { %8497 = vrcp.f32 %v4295_v37  ;;  %v4292_v53 = vpop.xlane.xlu1 %4291 }
0x1d37   :  { %8499 = vrcp.f32 %v4292_v53 }
0x1d39   :  { %v4414_v13 = vpop.permute.xlu0 %4413 }
0x1d3a   :  { %v4416_v27 = vpop.permute.xlu1 %4415 }
0x1d3d   :  { %v4418_v11 = vpop.permute.xlu0 %4417 }
0x1d3e   :  { %v4420_v42 = vpop.permute.xlu1 %4419 }
0x1d40   :  { %v8498_v57 = vpop.eup %8497 }
0x1d41   :  { %v8500_v14 = vpop.eup %8499  ;;  %v4303_v1 = vmul.f32 %v8498_v57, %v8490_v0 }
0x1d42   :  { %v4302_v15 = vmul.f32 %v8500_v14, %v8492_v35 }
0x1d44   :  { %7257 = vmatprep.mubr.msk.f32.mxu1 %vm532_vm5, %v4302_v15 }
0x1d45   :  { %7258 = vmatmul.mubr.msk.f32.gmra.mrb[54].mxu1 %vm532_vm5, %v4303_v1 }
0x1d46   :  { %7268 = vmatprep.mubr.msk.f32.mxu1 %vm426_vm3, %v4414_v13 }
0x1d49   :  { %7269 = vmatmul.mubr.msk.f32.vlgmr.msra.gmra.mrb[56].mxu1 %vm426_vm3, %v4416_v27 }
0x1d4a   :  { %7271 = vmatprep.mubr.msk.f32.mxu1 %vm426_vm3, %v4418_v11 }
0x1d4d   :  { %7272 = vmatmul.mubr.msk.f32.gmra.mrb[58].mxu1 %vm426_vm3, %v4420_v42 }
0x1de3   :  { %v10276_v36 = vpop.f32.mrb[52].mxu1 }
0x1de4   :  { %v10278_v43 = vpop.f32.mrb[53].mxu1 }
0x1e18   :  { %v10280_v0 = vpop.f32.mrb[54].mxu1 }
0x1e19   :  { %v10282_v35 = vpop.f32.mrb[55].mxu1 }
0x1e1c   :  { %v7270_v5 = vpop.f32.mrb[56].mxu1 }
0x1e1d   :  { %v4517_v4 = vadd.f32 %v10071_v33, %v7270_v5  ;;  %v4511_v39 = vpop.f32.mrb[57].mxu1 }
0x1e1e   :  { %v4512_v9 = vadd.f32 %v10077_v56, %v4511_v39 }
0x1e1f   :  { %v4533_v41 = vsel %vm532_vm5, %v4517_v4, -inf }
0x1e20   :  { %4534 = vmax.xlane.f32.xlu1 %v4533_v41  ;;  %v7273_v24 = vpop.f32.mrb[58].mxu1  ;;  %v4530_v23 = vsel %vm532_vm5, %v4512_v9, -inf }
0x1e21   :  { %v4521_v48 = vpop.f32.mrb[59].mxu1  ;;  %4531 = vmax.xlane.f32.xlu0 %v4530_v23  ;;  %v4527_v60 = vadd.f32 %v10091_v38, %v7273_v24 }
0x1e22   :  { %v4522_v61 = vadd.f32 %v10085_v34, %v4521_v48 }
0x1e23   :  { %v4539_v10 = vsel %vm532_vm5, %v4527_v60, -inf }
0x1e24   :  { %v4536_v55 = vsel %vm532_vm5, %v4522_v61, -inf }
0x1e25   :  { %4537 = vmax.xlane.f32.xlu0 %v4536_v55 }
0x1e29   :  { %4540 = vmax.xlane.f32.xlu0 %v4539_v10 }
0x1e31   :  { %8224 = vrot.lane.b32.xlu1 %v10014_v49, %s8793_s25 }
0x1e35   :  { %8234 = vrot.lane.b32.xlu1 %v10012_v6, %s10773_s14 }
0x1ead   :  { %v4535_v3 = vpop.xlane.xlu1 %4534 }
0x1eae   :  { %v4543_v7 = vsub.f32 %v4517_v4, %v4535_v3  ;;  %v4532_v12 = vpop.xlane.xlu0 %4531 }
0x1eaf   :  { %v4542_v21 = vsub.f32 %v4512_v9, %v4532_v12 }
0x1eb0   :  { %v4548_v62 = vmul.f32 1.442695, %v4543_v7 }
0x1eb1   :  { %v4546_v28 = vmul.f32 1.442695, %v4542_v21  ;;  %v8225_v18 = vpop.permute.xlu1 %8224 }
0x1eb2   :  { %8501 = vpow2.f32 %v4548_v62  ;;  %v8227_v63 = vunpack.i.h.bf16 %v8225_v18  ;;  %v8226_v37 = vunpack.i.l.bf16 %v8225_v18  ;;  %v4538_v1 = vpop.xlane.xlu0 %4537 }
0x1eb3   :  { %8503 = vpow2.f32 %v4546_v28  ;;  %v4544_v42 = vsub.f32 %v4522_v61, %v4538_v1 }
0x1eb4   :  { %v7821_v53 = vpack.c.bf16 %v8227_v63, %v8226_v37 }
0x1eb5   :  { %v4550_v4 = vmul.f32 1.442695, %v4544_v42  ;;  %v8235_v23 = vpop.permute.xlu1 %8234 }
0x1eb6   :  { %7822 = vmatprep.subr.bf16.mxu0 %v7821_v53  ;;  %v4541_v27 = vpop.xlane.xlu0 %4540  ;;  %v8237_v55 = vunpack.i.h.bf16 %v8235_v23  ;;  %v8236_v10 = vunpack.i.l.bf16 %v8235_v23 }
0x1eb7   :  { %7824 = vmatpush3.bf16.msra.mxu0 %v7821_v53  ;;  %v4545_v11 = vsub.f32 %v4527_v60, %v4541_v27 }
0x1eb8   :  { %v7829_v21 = vpack.c.bf16 %v8237_v55, %v8236_v10 }
0x1eb9   :  { %v4552_v5 = vmul.f32 1.442695, %v4545_v11 }
0x1ebb   :  { %8505 = vpow2.f32 %v4552_v5 }
0x1ebc   :  { %v8502_v57 = vpop.eup %8501  ;;  %8507 = vpow2.f32 %v4550_v4 }
0x1ebd   :  { %v8504_v14 = vpop.eup %8503  ;;  %v4557_v15 = vsel %vm532_vm5, %v8502_v57, 0.0 }
0x1ebe   :  { %4558 = vadd.xlane.f32.xlu0 %v4557_v15  ;;  %v4554_v13 = vsel %vm532_vm5, %v8504_v14, 0.0 }
0x1ebf   :  { %4555 = vadd.xlane.f32.xlu1 %v4554_v13 }
0x1ec5   :  { %v8506_v39 = vpop.eup %8505 }
0x1ec6   :  { %v8508_v9 = vpop.eup %8507  ;;  %v4563_v41 = vsel %vm532_vm5, %v8506_v39, 0.0 }
0x1ec7   :  { %v4560_v24 = vsel %vm532_vm5, %v8508_v9, 0.0 }
0x1ed0   :  { %8239 = vrot.lane.b32.xlu1 %v10020_v2, %s10773_s14 }
0x1ed4   :  { %8229 = vrot.lane.b32.xlu0 %v10022_v58, %s8793_s25  ;;  %s10776_s25 = smov 80  }
0x1ef3   :  { %4564 = vadd.xlane.f32.xlu0 %v4563_v41 }
0x1ef4   :  { %4561 = vadd.xlane.f32.xlu1 %v4560_v24 }
0x1f05   :  { %4685 = vrot.lane.b32.xlu1 %v10028_v8, %s10774_s27 }
0x1f09   :  { %4689 = vrot.lane.b32.xlu1 %v10036_v25, %s10774_s27  ;;  %4683 = vrot.lane.b32.xlu0 %v10008_v40, %s10774_s27 }
0x1f0d   :  { %4687 = vrot.lane.b32.xlu0 %v10034_v31, %s10774_s27 }
0x1f4b   :  { %v4559_v48 = vpop.xlane.xlu0 %4558 }
0x1f4c   :  { %8509 = vrcp.f32 %v4559_v48  ;;  %v4556_v61 = vpop.xlane.xlu1 %4555 }
0x1f4d   :  { %8511 = vrcp.f32 %v4556_v61 }
0x1f4f   :  { %v8230_v60 = vpop.permute.xlu0 %8229 }
0x1f50   :  { %v8232_v3 = vunpack.i.h.bf16 %v8230_v60  ;;  %v8231_v7 = vunpack.i.l.bf16 %v8230_v60  ;;  %v8240_v28 = vpop.permute.xlu1 %8239 }
0x1f51   :  { %v8242_v53 = vunpack.i.h.bf16 %v8240_v28  ;;  %v8241_v15 = vunpack.i.l.bf16 %v8240_v28 }
0x1f52   :  { %v7825_v12 = vpack.c.bf16 %v8232_v3, %v8231_v7 }
0x1f53   :  { %v7835_v13 = vpack.c.bf16 %v8242_v53, %v8241_v15 }
0x1f54   :  { %7826 = vmatprep.subr.bf16.mxu0 %v7825_v12 }
0x1f55   :  { %7828 = vmatpush3.bf16.msra.mxu0 %v7825_v12 }
0x1f56   :  { %v8510_v62 = vpop.eup %8509  ;;  %7831 = vmatprep.subr.msk.bf16.mxu0 %vm9163_vm4, %v7829_v21 }
0x1f57   :  { %v8512_v18 = vpop.eup %8511  ;;  %v4571_v37 = vmul.f32 %v8510_v62, %v8502_v57 }
0x1f58   :  { %v4570_v63 = vmul.f32 %v8512_v18, %v8504_v14 }
0x1f5a   :  { %7282 = vmatprep.mubr.msk.f32.mxu0 %vm532_vm5, %v4570_v63 }
0x1f5b   :  { %7283 = vmatmul.mubr.msk.f32.vlgmr.msra.gmra.mrb[72].mxu0 %vm532_vm5, %v4571_v37 }
0x1f5e   :  { %7834 = vmatpush3.bf16.xpose.msk.msra.mxu0 %vm9163_vm4, %v7829_v21 }
0x1f5f   :  { %7837 = vmatprep.subr.msk.bf16.mxu0 %vm9163_vm4, %v7835_v13 }
0x1f66   :  { %7840 = vmatpush3.bf16.xpose.msk.msra.mxu0 %vm9163_vm4, %v7835_v13 }
0x1f80   :  { %v4565_v1 = vpop.xlane.xlu0 %4564 }
0x1f81   :  { %8513 = vrcp.f32 %v4565_v1  ;;  %v4562_v14 = vpop.xlane.xlu1 %4561 }
0x1f82   :  { %8515 = vrcp.f32 %v4562_v14 }
0x1f84   :  { %v4684_v42 = vpop.permute.xlu0 %4683 }
0x1f85   :  { %v4686_v4 = vpop.permute.xlu1 %4685 }
0x1f88   :  { %v4688_v41 = vpop.permute.xlu0 %4687 }
0x1f89   :  { %v4690_v24 = vpop.permute.xlu1 %4689 }
0x1f8b   :  { %v8514_v57 = vpop.eup %8513 }
0x1f8c   :  { %v8516_v27 = vpop.eup %8515  ;;  %v4573_v5 = vmul.f32 %v8514_v57, %v8506_v39 }
0x1f8d   :  { %v4572_v11 = vmul.f32 %v8516_v27, %v8508_v9 }
0x1f8f   :  { %7285 = vmatprep.mubr.msk.f32.mxu0 %vm532_vm5, %v4572_v11 }
0x1f90   :  { %7286 = vmatmul.mubr.msk.f32.gmra.mrb[74].mxu0 %vm532_vm5, %v4573_v5 }
0x1f91   :  { %7296 = vmatprep.mubr.msk.f32.mxu0 %vm426_vm3, %v4684_v42 }
0x1f94   :  { %7297 = vmatmul.mubr.msk.f32.vlgmr.msra.gmra.mrb[76].mxu0 %vm426_vm3, %v4686_v4 }
0x1f95   :  { %7299 = vmatprep.mubr.msk.f32.mxu0 %vm426_vm3, %v4688_v41 }
0x1f98   :  { %7300 = vmatmul.mubr.msk.f32.gmra.mrb[78].mxu0 %vm426_vm3, %v4690_v24 }
0x202e   :  { %v10328_v23 = vpop.f32.mrb[72].mxu0 }
0x202f   :  { %v10330_v9 = vpop.f32.mrb[73].mxu0 }
0x2063   :  { %v10332_v39 = vpop.f32.mrb[74].mxu0 }
0x2064   :  { %v10334_v48 = vpop.f32.mrb[75].mxu0 }
0x2067   :  { %v7298_v61 = vpop.f32.mrb[76].mxu0 }
0x2068   :  { %v4787_v60 = vadd.f32 %v10071_v33, %v7298_v61  ;;  %v4781_v55 = vpop.f32.mrb[77].mxu0 }
0x2069   :  { %v4782_v10 = vadd.f32 %v10077_v56, %v4781_v55 }
0x206a   :  { %v4803_v3 = vsel %vm532_vm5, %v4787_v60, -inf }
0x206b   :  { %4804 = vmax.xlane.f32.xlu1 %v4803_v3  ;;  %v7301_v7 = vpop.f32.mrb[78].mxu0  ;;  %v4800_v12 = vsel %vm532_vm5, %v4782_v10, -inf }
0x206c   :  { %v4791_v21 = vpop.f32.mrb[79].mxu0  ;;  %4801 = vmax.xlane.f32.xlu0 %v4800_v12  ;;  %v4797_v28 = vadd.f32 %v10091_v38, %v7301_v7 }
0x206d   :  { %v4792_v62 = vadd.f32 %v10085_v34, %v4791_v21 }
0x206e   :  { %v4809_v33 = vsel %vm532_vm5, %v4797_v28, -inf }
0x206f   :  { %v4806_v18 = vsel %vm532_vm5, %v4792_v62, -inf }
0x2070   :  { %4807 = vmax.xlane.f32.xlu0 %v4806_v18 }
0x2074   :  { %4810 = vmax.xlane.f32.xlu0 %v4809_v33 }
0x207c   :  { %8244 = vrot.lane.b32.xlu1 %v10014_v49, %s10774_s27 }
0x2080   :  { %8254 = vrot.lane.b32.xlu1 %v10012_v6, %s10775_s0 }
0x20f8   :  { %v4805_v56 = vpop.xlane.xlu1 %4804 }
0x20f9   :  { %v4813_v63 = vsub.f32 %v4787_v60, %v4805_v56  ;;  %v4802_v37 = vpop.xlane.xlu0 %4801 }
0x20fa   :  { %v4812_v53 = vsub.f32 %v4782_v10, %v4802_v37 }
0x20fb   :  { %v4818_v15 = vmul.f32 1.442695, %v4813_v63 }
0x20fc   :  { %v4816_v34 = vmul.f32 1.442695, %v4812_v53  ;;  %v8245_v13 = vpop.permute.xlu1 %8244 }
0x20fd   :  { %8517 = vpow2.f32 %v4818_v15  ;;  %v8247_v38 = vunpack.i.h.bf16 %v8245_v13  ;;  %v8246_v1 = vunpack.i.l.bf16 %v8245_v13  ;;  %v4808_v5 = vpop.xlane.xlu0 %4807 }
0x20fe   :  { %8519 = vpow2.f32 %v4816_v34  ;;  %v4814_v24 = vsub.f32 %v4792_v62, %v4808_v5 }
0x20ff   :  { %v7841_v14 = vpack.c.bf16 %v8247_v38, %v8246_v1 }
0x2100   :  { %v4820_v60 = vmul.f32 1.442695, %v4814_v24  ;;  %v8255_v12 = vpop.permute.xlu1 %8254 }
0x2101   :  { %7842 = vmatprep.subr.bf16.mxu1 %v7841_v14  ;;  %v4811_v4 = vpop.xlane.xlu0 %4810  ;;  %v8257_v18 = vunpack.i.h.bf16 %v8255_v12  ;;  %v8256_v33 = vunpack.i.l.bf16 %v8255_v12 }
0x2102   :  { %7844 = vmatpush3.bf16.msra.mxu1 %v7841_v14  ;;  %v4815_v41 = vsub.f32 %v4797_v28, %v4811_v4 }
0x2103   :  { %v7849_v53 = vpack.c.bf16 %v8257_v18, %v8256_v33 }
0x2104   :  { %v4822_v61 = vmul.f32 1.442695, %v4815_v41 }
0x2106   :  { %8521 = vpow2.f32 %v4822_v61 }
0x2107   :  { %v8518_v57 = vpop.eup %8517  ;;  %8523 = vpow2.f32 %v4820_v60 }
0x2108   :  { %v8520_v27 = vpop.eup %8519  ;;  %v4827_v11 = vsel %vm532_vm5, %v8518_v57, 0.0 }
0x2109   :  { %4828 = vadd.xlane.f32.xlu0 %v4827_v11  ;;  %v4824_v42 = vsel %vm532_vm5, %v8520_v27, 0.0 }
0x210a   :  { %4825 = vadd.xlane.f32.xlu1 %v4824_v42 }
0x2110   :  { %v8522_v55 = vpop.eup %8521 }
0x2111   :  { %v8524_v10 = vpop.eup %8523  ;;  %v4833_v3 = vsel %vm532_vm5, %v8522_v55, 0.0 }
0x2112   :  { %v4830_v7 = vsel %vm532_vm5, %v8524_v10, 0.0 }
0x211b   :  { %8259 = vrot.lane.b32.xlu1 %v10020_v2, %s10775_s0 }
0x211f   :  { %8249 = vrot.lane.b32.xlu0 %v10022_v58, %s10774_s27 }
0x213e   :  { %4834 = vadd.xlane.f32.xlu0 %v4833_v3 }
0x213f   :  { %4831 = vadd.xlane.f32.xlu1 %v4830_v7 }
0x2150   :  { %4955 = vrot.lane.b32.xlu1 %v10028_v8, %s10776_s25 }
0x2154   :  { %4959 = vrot.lane.b32.xlu1 %v10036_v25, %s10776_s25  ;;  %4953 = vrot.lane.b32.xlu0 %v10008_v40, %s10776_s25 }
0x2158   :  { %4957 = vrot.lane.b32.xlu0 %v10034_v31, %s10776_s25 }
0x2196   :  { %v4829_v21 = vpop.xlane.xlu0 %4828 }
0x2197   :  { %8525 = vrcp.f32 %v4829_v21  ;;  %v4826_v62 = vpop.xlane.xlu1 %4825 }
0x2198   :  { %8527 = vrcp.f32 %v4826_v62 }
0x219a   :  { %v8250_v28 = vpop.permute.xlu0 %8249 }
0x219b   :  { %v8252_v56 = vunpack.i.h.bf16 %v8250_v28  ;;  %v8251_v63 = vunpack.i.l.bf16 %v8250_v28  ;;  %v8260_v34 = vpop.permute.xlu1 %8259  ;;  %v10391_v28 = vld [vmem:[%s10772_s21 + $0x8] sm:$0xff] }
0x219c   :  { %v8262_v14 = vunpack.i.h.bf16 %v8260_v34  ;;  %v8261_v11 = vunpack.i.l.bf16 %v8260_v34 }
0x219d   :  { %v7845_v37 = vpack.c.bf16 %v8252_v56, %v8251_v63  ;;  %v10397_v56 = vld [vmem:[%s10772_s21] sm:$0xff] }
0x219e   :  { %v7855_v42 = vpack.c.bf16 %v8262_v14, %v8261_v11 }
0x219f   :  { %7846 = vmatprep.subr.bf16.mxu1 %v7845_v37 }
0x21a0   :  { %7848 = vmatpush3.bf16.msra.mxu1 %v7845_v37 }
0x21a1   :  { %v8526_v15 = vpop.eup %8525  ;;  %7851 = vmatprep.subr.msk.bf16.mxu1 %vm9163_vm4, %v7849_v53 }
0x21a2   :  { %v8528_v13 = vpop.eup %8527  ;;  %v4841_v1 = vmul.f32 %v8526_v15, %v8518_v57 }
0x21a3   :  { %v4840_v38 = vmul.f32 %v8528_v13, %v8520_v27  ;;  %v10405_v13 = vld [vmem:[%s10772_s21 + $0x10] sm:$0xff] }
0x21a5   :  { %7310 = vmatprep.mubr.msk.f32.mxu1 %vm532_vm5, %v4840_v38 }
0x21a6   :  { %7311 = vmatmul.mubr.msk.f32.vlgmr.msra.gmra.mrb[60].mxu1 %vm532_vm5, %v4841_v1  ;;  %v10411_v1 = vld [vmem:[%s10772_s21 + $0x18] sm:$0xff]  ;;  %s10777_s21 = smov 72  }
0x21a9   :  { %7854 = vmatpush3.bf16.xpose.msk.msra.mxu1 %vm9163_vm4, %v7849_v53 }
0x21aa   :  { %7857 = vmatprep.subr.msk.bf16.mxu1 %vm9163_vm4, %v7855_v42 }
0x21b1   :  { %7860 = vmatpush3.bf16.xpose.msk.msra.mxu1 %vm9163_vm4, %v7855_v42 }
0x21cb   :  { %v4835_v5 = vpop.xlane.xlu0 %4834 }
0x21cc   :  { %8529 = vrcp.f32 %v4835_v5  ;;  %v4832_v27 = vpop.xlane.xlu1 %4831 }
0x21cd   :  { %8531 = vrcp.f32 %v4832_v27 }
0x21cf   :  { %v4954_v24 = vpop.permute.xlu0 %4953 }
0x21d0   :  { %v4956_v60 = vpop.permute.xlu1 %4955 }
0x21d3   :  { %v4958_v3 = vpop.permute.xlu0 %4957 }
0x21d4   :  { %v4960_v7 = vpop.permute.xlu1 %4959 }
0x21d6   :  { %v8530_v57 = vpop.eup %8529 }
0x21d7   :  { %v8532_v4 = vpop.eup %8531  ;;  %v4843_v61 = vmul.f32 %v8530_v57, %v8522_v55 }
0x21d8   :  { %v4842_v41 = vmul.f32 %v8532_v4, %v8524_v10 }
0x21da   :  { %7313 = vmatprep.mubr.msk.f32.mxu1 %vm532_vm5, %v4842_v41 }
0x21db   :  { %7314 = vmatmul.mubr.msk.f32.gmra.mrb[62].mxu1 %vm532_vm5, %v4843_v61 }
0x21dc   :  { %7324 = vmatprep.mubr.msk.f32.mxu1 %vm426_vm3, %v4954_v24 }
0x21df   :  { %7325 = vmatmul.mubr.msk.f32.vlgmr.msra.gmra.mrb[64].mxu1 %vm426_vm3, %v4956_v60 }
0x21e0   :  { %7327 = vmatprep.mubr.msk.f32.mxu1 %vm426_vm3, %v4958_v3 }
0x21e3   :  { %7328 = vmatmul.mubr.msk.f32.gmra.mrb[66].mxu1 %vm426_vm3, %v4960_v7 }
0x2279   :  { %v10380_v12 = vpop.f32.mrb[60].mxu1 }
0x227a   :  { %v10382_v10 = vpop.f32.mrb[61].mxu1 }
0x22ae   :  { %v10384_v55 = vpop.f32.mrb[62].mxu1 }
0x22af   :  { %v10386_v21 = vpop.f32.mrb[63].mxu1 }
0x22b2   :  { %v7326_v62 = vpop.f32.mrb[64].mxu1 }
0x22b3   :  { %v5057_v18 = vadd.f32 %v10391_v28, %v7326_v62  ;;  %v5051_v33 = vpop.f32.mrb[65].mxu1 }
0x22b4   :  { %v5052_v63 = vadd.f32 %v10397_v56, %v5051_v33 }
0x22b5   :  { %v5073_v37 = vsel %vm532_vm5, %v5057_v18, -inf }
0x22b6   :  { %5074 = vmax.xlane.f32.xlu1 %v5073_v37  ;;  %v7329_v53 = vpop.f32.mrb[66].mxu1  ;;  %v5070_v15 = vsel %vm532_vm5, %v5052_v63, -inf }
0x22b7   :  { %v5061_v34 = vpop.f32.mrb[67].mxu1  ;;  %5071 = vmax.xlane.f32.xlu0 %v5070_v15  ;;  %v5067_v14 = vadd.f32 %v10411_v1, %v7329_v53 }
0x22b8   :  { %v5062_v38 = vadd.f32 %v10405_v13, %v5061_v34 }
0x22b9   :  { %v5079_v42 = vsel %vm532_vm5, %v5067_v14, -inf }
0x22ba   :  { %v5076_v11 = vsel %vm532_vm5, %v5062_v38, -inf }
0x22bb   :  { %5077 = vmax.xlane.f32.xlu0 %v5076_v11 }
0x22bf   :  { %5080 = vmax.xlane.f32.xlu0 %v5079_v42 }
0x22c7   :  { %8264 = vrot.lane.b32.xlu1 %v10014_v49, %s10776_s25 }
0x22cb   :  { %8274 = vrot.lane.b32.xlu1 %v10012_v6, %s10766_s3 }
0x22cf   :  { %8279 = vrot.lane.b32.xlu1 %v10020_v2, %s10766_s3 }
0x2343   :  { %v5075_v5 = vpop.xlane.xlu1 %5074 }
0x2344   :  { %v5083_v27 = vsub.f32 %v5057_v18, %v5075_v5  ;;  %v5072_v57 = vpop.xlane.xlu0 %5071 }
0x2345   :  { %v5082_v4 = vsub.f32 %v5052_v63, %v5072_v57 }
0x2346   :  { %v5088_v41 = vmul.f32 1.442695, %v5083_v27 }
0x2347   :  { %v5086_v24 = vmul.f32 1.442695, %v5082_v4  ;;  %v8265_v61 = vpop.permute.xlu1 %8264 }
0x2348   :  { %8533 = vpow2.f32 %v5088_v41  ;;  %v8267_v60 = vunpack.i.h.bf16 %v8265_v61  ;;  %v8266_v3 = vunpack.i.l.bf16 %v8265_v61  ;;  %v5078_v18 = vpop.xlane.xlu0 %5077 }
0x2349   :  { %8535 = vpow2.f32 %v5086_v24  ;;  %v5084_v53 = vsub.f32 %v5062_v38, %v5078_v18 }
0x234a   :  { %v7861_v7 = vpack.c.bf16 %v8267_v60, %v8266_v3 }
0x234b   :  { %v5090_v34 = vmul.f32 1.442695, %v5084_v53 }
0x234c   :  { %7862 = vmatprep.subr.bf16.mxu0 %v7861_v7  ;;  %v5081_v63 = vpop.xlane.xlu0 %5080 }
0x234d   :  { %7864 = vmatpush3.bf16.msra.mxu0 %v7861_v7  ;;  %v5085_v37 = vsub.f32 %v5067_v14, %v5081_v63 }
0x234f   :  { %v5092_v15 = vmul.f32 1.442695, %v5085_v37 }
0x2351   :  { %8537 = vpow2.f32 %v5092_v15 }
0x2352   :  { %v8534_v62 = vpop.eup %8533  ;;  %8539 = vpow2.f32 %v5090_v34 }
0x2353   :  { %v8536_v33 = vpop.eup %8535  ;;  %v5097_v6 = vsel %vm532_vm5, %v8534_v62, 0.0 }
0x2354   :  { %5098 = vadd.xlane.f32.xlu0 %v5097_v6  ;;  %v5094_v2 = vsel %vm532_vm5, %v8536_v33, 0.0 }
0x2355   :  { %5095 = vadd.xlane.f32.xlu1 %v5094_v2 }
0x235b   :  { %v8538_v11 = vpop.eup %8537 }
0x235c   :  { %v8540_v42 = vpop.eup %8539  ;;  %v5103_v5 = vsel %vm532_vm5, %v8538_v11, 0.0 }
0x235d   :  { %v5100_v27 = vsel %vm532_vm5, %v8540_v42, 0.0 }
0x2366   :  { %5225 = vrot.lane.b32.xlu1 %v10028_v8, %s10777_s21  ;;  %v8275_v8 = vpop.permute.xlu1 %8274 }
0x2367   :  { %v8277_v41 = vunpack.i.h.bf16 %v8275_v8  ;;  %v8276_v24 = vunpack.i.l.bf16 %v8275_v8 }
0x2369   :  { %v7869_v7 = vpack.c.bf16 %v8277_v41, %v8276_v24 }
0x236a   :  { %8269 = vrot.lane.b32.xlu0 %v10022_v58, %s10776_s25  ;;  %v8280_v38 = vpop.permute.xlu1 %8279 }
0x236b   :  { %v8282_v6 = vunpack.i.h.bf16 %v8280_v38  ;;  %v8281_v2 = vunpack.i.l.bf16 %v8280_v38 }
0x236d   :  { %v7875_v63 = vpack.c.bf16 %v8282_v6, %v8281_v2 }
0x2389   :  { %5104 = vadd.xlane.f32.xlu0 %v5103_v5 }
0x238a   :  { %5101 = vadd.xlane.f32.xlu1 %v5100_v27 }
0x239b   :  { %5229 = vrot.lane.b32.xlu1 %v10036_v25, %s10777_s21 }
0x239f   :  { %5223 = vrot.lane.b32.xlu0 %v10008_v40, %s10777_s21 }
0x23a3   :  { %5227 = vrot.lane.b32.xlu0 %v10034_v31, %s10777_s21 }
0x23e1   :  { %v5099_v14 = vpop.xlane.xlu0 %5098 }
0x23e2   :  { %8541 = vrcp.f32 %v5099_v14  ;;  %v5096_v57 = vpop.xlane.xlu1 %5095 }
0x23e3   :  { %8543 = vrcp.f32 %v5096_v57 }
0x23e5   :  { %v8270_v4 = vpop.permute.xlu0 %8269 }
0x23e6   :  { %v8272_v61 = vunpack.i.h.bf16 %v8270_v4  ;;  %v8271_v60 = vunpack.i.l.bf16 %v8270_v4  ;;  %v5226_v37 = vpop.permute.xlu1 %5225 }
0x23e8   :  { %v7865_v3 = vpack.c.bf16 %v8272_v61, %v8271_v60 }
0x23ea   :  { %7866 = vmatprep.subr.bf16.mxu0 %v7865_v3 }
0x23eb   :  { %7868 = vmatpush3.bf16.msra.mxu0 %v7865_v3 }
0x23ec   :  { %v8542_v25 = vpop.eup %8541  ;;  %7871 = vmatprep.subr.msk.bf16.mxu0 %vm9163_vm4, %v7869_v7 }
0x23ed   :  { %v8544_v40 = vpop.eup %8543  ;;  %v5111_v18 = vmul.f32 %v8542_v25, %v8534_v62 }
0x23ee   :  { %v5110_v31 = vmul.f32 %v8544_v40, %v8536_v33 }
0x23f0   :  { %7338 = vmatprep.mubr.msk.f32.mxu0 %vm532_vm5, %v5110_v31 }
0x23f1   :  { %7339 = vmatmul.mubr.msk.f32.vlgmr.msra.gmra.mrb[80].mxu0 %vm532_vm5, %v5111_v18 }
0x23f4   :  { %7874 = vmatpush3.bf16.xpose.msk.msra.mxu0 %vm9163_vm4, %v7869_v7 }
0x23f5   :  { %7877 = vmatprep.subr.msk.bf16.mxu0 %vm9163_vm4, %v7875_v63 }
0x23fc   :  { %7880 = vmatpush3.bf16.xpose.msk.msra.mxu0 %vm9163_vm4, %v7875_v63 }
0x2416   :  { %v5105_v53 = vpop.xlane.xlu0 %5104 }
0x2417   :  { %8545 = vrcp.f32 %v5105_v53  ;;  %v5102_v33 = vpop.xlane.xlu1 %5101 }
0x2418   :  { %8547 = vrcp.f32 %v5102_v33 }
0x241a   :  { %v5224_v5 = vpop.permute.xlu0 %5223 }
0x241b   :  { %v5230_v19 = vpop.permute.xlu1 %5229 }
0x241e   :  { %v5228_v8 = vpop.permute.xlu0 %5227 }
0x2421   :  { %v8546_v62 = vpop.eup %8545 }
0x2422   :  { %v8548_v15 = vpop.eup %8547  ;;  %v5113_v27 = vmul.f32 %v8546_v62, %v8538_v11 }
0x2423   :  { %v5112_v34 = vmul.f32 %v8548_v15, %v8540_v42 }
0x2425   :  { %7341 = vmatprep.mubr.msk.f32.mxu0 %vm532_vm5, %v5112_v34 }
0x2426   :  { %7342 = vmatmul.mubr.msk.f32.gmra.mrb[82].mxu0 %vm532_vm5, %v5113_v27 }
0x2427   :  { %7352 = vmatprep.mubr.msk.f32.mxu0 %vm426_vm3, %v5224_v5 }
0x242a   :  { %7353 = vmatmul.mubr.msk.f32.vlgmr.msra.gmra.mrb[84].mxu0 %vm426_vm3, %v5226_v37 }
0x242b   :  { %7355 = vmatprep.mubr.msk.f32.mxu0 %vm426_vm3, %v5228_v8 }
0x242e   :  { %7356 = vmatmul.mubr.msk.f32.gmra.mrb[86].mxu0 %vm426_vm3, %v5230_v19 }
0x24c4   :  { %v10452_v38 = vpop.f32.mrb[80].mxu0 }
0x24c5   :  { %v5204_v14 = vpop.f32.mrb[81].mxu0 }
0x24f9   :  { %v10454_v42 = vpop.f32.mrb[82].mxu0 }
0x24fa   :  { %v10456_v11 = vpop.f32.mrb[83].mxu0 }
0x24fd   :  { %v7354_v57 = vpop.f32.mrb[84].mxu0 }
0x24fe   :  { %v5327_v4 = vadd.f32 %v10391_v28, %v7354_v57  ;;  %v5321_v41 = vpop.f32.mrb[85].mxu0 }
0x24ff   :  { %v5322_v24 = vadd.f32 %v10397_v56, %v5321_v41 }
0x2500   :  { %v5343_v61 = vsel %vm532_vm5, %v5327_v4, -inf }
0x2501   :  { %5344 = vmax.xlane.f32.xlu1 %v5343_v61  ;;  %v7357_v60 = vpop.f32.mrb[86].mxu0  ;;  %v5340_v3 = vsel %vm532_vm5, %v5322_v24, -inf  ;;  %v6435_v61 = vld [vmem:[%s10732_s7 + $0x60] sm:$0xff] }
0x2502   :  { %v5331_v7 = vpop.f32.mrb[87].mxu0  ;;  %5341 = vmax.xlane.f32.xlu0 %v5340_v3  ;;  %v5337_v40 = vadd.f32 %v10411_v1, %v7357_v60  ;;  %v6436_v60 = vld [vmem:[%s10732_s7 + $0x68] sm:$0xff] }
0x2503   :  { %v5332_v25 = vadd.f32 %v10405_v13, %v5331_v7  ;;  %v7897_v3 = vpack.c.bf16 %v6436_v60, %v6435_v61  ;;  %v6437_v7 = vld [vmem:[%s10732_s7 + $0x70] sm:$0xff] }
0x2504   :  { %v5349_v28 = vsel %vm532_vm5, %v5337_v40, -inf }
0x2505   :  { %v5346_v31 = vsel %vm532_vm5, %v5332_v25, -inf }
0x2506   :  { %5347 = vmax.xlane.f32.xlu0 %v5346_v31 }
0x250a   :  { %5350 = vmax.xlane.f32.xlu0 %v5349_v28 }
0x258e   :  { %v5345_v6 = vpop.xlane.xlu1 %5344 }
0x258f   :  { %v5353_v56 = vsub.f32 %v5327_v4, %v5345_v6  ;;  %v5342_v2 = vpop.xlane.xlu0 %5341 }
0x2590   :  { %v5352_v18 = vsub.f32 %v5322_v24, %v5342_v2 }
0x2591   :  { %v5358_v63 = vmul.f32 1.442695, %v5353_v56 }
0x2592   :  { %v5356_v37 = vmul.f32 1.442695, %v5352_v18 }
0x2593   :  { %8549 = vpow2.f32 %v5358_v63  ;;  %v5348_v53 = vpop.xlane.xlu0 %5347 }
0x2594   :  { %8551 = vpow2.f32 %v5356_v37  ;;  %v5354_v33 = vsub.f32 %v5332_v25, %v5348_v53  ;;  %v6438_v25 = vld [vmem:[%s10732_s7 + $0x78] sm:$0xff] }
0x2596   :  { %v5360_v62 = vmul.f32 1.442695, %v5354_v33 }
0x2597   :  { %v5351_v13 = vpop.xlane.xlu0 %5350 }
0x2598   :  { %8553 = vpow2.f32 %v5360_v62  ;;  %v5355_v1 = vsub.f32 %v5337_v40, %v5351_v13  ;;  %v7901_v40 = vpack.c.bf16 %v6438_v25, %v6437_v7 }
0x259a   :  { %v5362_v15 = vmul.f32 1.442695, %v5355_v1 }
0x259c   :  { %8555 = vpow2.f32 %v5362_v15 }
0x259d   :  { %v8550_v34 = vpop.eup %8549 }
0x259e   :  { %v8552_v5 = vpop.eup %8551  ;;  %v5367_v27 = vsel %vm532_vm5, %v8550_v34, 0.0 }
0x259f   :  { %5368 = vadd.xlane.f32.xlu0 %v5367_v27  ;;  %v5364_v8 = vsel %vm532_vm5, %v8552_v5, 0.0 }
0x25a0   :  { %5365 = vadd.xlane.f32.xlu1 %v5364_v8 }
0x25a2   :  { %v8554_v19 = vpop.eup %8553 }
0x25a3   :  { %v5370_v57 = vsel %vm532_vm5, %v8554_v19, 0.0 }
0x25a4   :  { %5371 = vadd.xlane.f32.xlu1 %v5370_v57 }
0x25a6   :  { %v8556_v4 = vpop.eup %8555 }
0x25a7   :  { %v5373_v41 = vsel %vm532_vm5, %v8556_v4, 0.0 }
0x25a8   :  { %5374 = vadd.xlane.f32.xlu0 %v5373_v41 }
0x25b5   :  { %8284 = vrot.lane.b32.xlu1 %v10014_v49, %s10777_s21 }
0x25b9   :  { %5497 = vrot.lane.b32.xlu1 %v10174_v30, %s10766_s3 }
0x25bd   :  { %5499 = vrot.lane.b32.xlu1 %v10172_v47, %s10766_s3 }
0x25be   :  { %8289 = vrot.lane.b32.xlu0 %v10022_v58, %s10777_s21 }
0x25c1   :  { %5515 = vrot.lane.b32.xlu1 %v10224_v26, %s10775_s0 }
0x25c2   :  { %5513 = vrot.lane.b32.xlu0 %v10226_v32, %s10775_s0 }
0x25c5   :  { %5531 = vrot.lane.b32.xlu1 %v10276_v36, %s10773_s14 }
0x25c6   :  { %5529 = vrot.lane.b32.xlu0 %v10278_v43, %s10773_s14 }
0x25c9   :  { %5501 = vrot.lane.b32.xlu1 %v10178_v51, %s10766_s3 }
0x25ca   :  { %5545 = vrot.lane.b32.xlu0 %v10330_v9, %s8792_s24 }
0x25cd   :  { %5561 = vrot.lane.b32.xlu1 %v10382_v10, %s8790_s11 }
0x25ce   :  { %5547 = vrot.lane.b32.xlu0 %v10328_v23, %s8792_s24 }
0x25d1   :  { %5517 = vrot.lane.b32.xlu1 %v10230_v59, %s10775_s0 }
0x25d2   :  { %5503 = vrot.lane.b32.xlu0 %v10176_v45, %s10766_s3 }
0x25d5   :  { %5577 = vrot.lane.b32.xlu1 %v5204_v14, %s8787_s20 }
0x25d6   :  { %5563 = vrot.lane.b32.xlu0 %v10380_v12, %s8790_s11 }
0x25d9   :  { %5533 = vrot.lane.b32.xlu1 %v10282_v35, %s10773_s14 }
0x25da   :  { %5519 = vrot.lane.b32.xlu0 %v10228_v22, %s10775_s0 }
0x25dd   :  { %5549 = vrot.lane.b32.xlu1 %v10334_v48, %s8792_s24 }
0x25de   :  { %5579 = vrot.lane.b32.xlu0 %v10452_v38, %s8787_s20  ;;  %v6433_v38 = vld [vmem:[%s10732_s7 + $0x50] sm:$0xff] }
0x25e1   :  { %5551 = vrot.lane.b32.xlu1 %v10332_v39, %s8792_s24 }
0x25e2   :  { %5535 = vrot.lane.b32.xlu0 %v10280_v0, %s10773_s14 }
0x25e5   :  { %5567 = vrot.lane.b32.xlu1 %v10384_v55, %s8790_s11  ;;  %v6431_v55 = vld [vmem:[%s10732_s7 + $0x40] sm:$0xff] }
0x25e6   :  { %5565 = vrot.lane.b32.xlu0 %v10386_v21, %s8790_s11  ;;  %v6432_v21 = vld [vmem:[%s10732_s7 + $0x48] sm:$0xff] }
0x25e7   :  { %v7889_v14 = vpack.c.bf16 %v6432_v21, %v6431_v55 }
0x25ea   :  { %5581 = vrot.lane.b32.xlu0 %v10456_v11, %s8787_s20  ;;  %v6434_v11 = vld [vmem:[%s10732_s7 + $0x58] sm:$0xff] }
0x25eb   :  { %v7893_v24 = vpack.c.bf16 %v6434_v11, %v6433_v38 }
0x262c   :  { %v5369_v58 = vpop.xlane.xlu0 %5368 }
0x262d   :  { %v5366_v49 = vpop.xlane.xlu1 %5365 }
0x262e   :  { %8557 = vrcp.f32 %v5366_v49 }
0x262f   :  { %8559 = vrcp.f32 %v5369_v58 }
0x2631   :  { %v5372_v47 = vpop.xlane.xlu1 %5371 }
0x2632   :  { %8561 = vrcp.f32 %v5372_v47 }
0x2635   :  { %v8285_v30 = vpop.permute.xlu1 %8284  ;;  %v5375_v45 = vpop.xlane.xlu0 %5374 }
0x2636   :  { %v8287_v51 = vunpack.i.h.bf16 %v8285_v30  ;;  %v8286_v26 = vunpack.i.l.bf16 %v8285_v30  ;;  %8563 = vrcp.f32 %v5375_v45 }
0x2638   :  { %v8558_v32 = vpop.eup %8557  ;;  %v7881_v22 = vpack.c.bf16 %v8287_v51, %v8286_v26 }
0x2639   :  { %v8290_v59 = vpop.permute.xlu0 %8289  ;;  %v5380_v36 = vmul.f32 %v8558_v32, %v8552_v5  ;;  %v8560_v23 = vpop.eup %8559 }
0x263a   :  { %v8292_v43 = vunpack.i.h.bf16 %v8290_v59  ;;  %v8291_v0 = vunpack.i.l.bf16 %v8290_v59  ;;  %7882 = vmatprep.subr.bf16.mxu1 %v7881_v22  ;;  %v5381_v39 = vmul.f32 %v8560_v23, %v8550_v34  ;;  %v5498_v2 = vpop.permute.xlu1 %5497 }
0x263b   :  { %7884 = vmatpush3.bf16.msra.mxu1 %v7881_v22  ;;  %7366 = vmatprep.mubr.msk.f32.mxu1 %vm532_vm5, %v5380_v36  ;;  %v5605_v47 = vsel %vm426_vm3, %v10166_v52, %v5498_v2 }
0x263c   :  { %v7885_v35 = vpack.c.bf16 %v8292_v43, %v8291_v0  ;;  %v8562_v9 = vpop.eup %8561 }
0x263d   :  { %v5382_v12 = vmul.f32 %v8562_v9, %v8554_v19  ;;  %v5514_v18 = vpop.permute.xlu0 %5513 }
0x263e   :  { %7886 = vmatprep.subr.bf16.mxu1 %v7885_v35  ;;  %v5500_v63 = vpop.permute.xlu1 %5499  ;;  %v5609_v51 = vsel %vm2684_vm6, %v5605_v47, %v5514_v18 }
0x263f   :  { %7888 = vmatpush3.bf16.msra.mxu1 %v7885_v35  ;;  %v5606_v45 = vsel %vm426_vm3, %v10164_v50, %v5500_v63 }
0x2640   :  { %v8564_v48 = vpop.eup %8563  ;;  %7890 = vmatprep.subr.bf16.mxu1 %v7889_v14 }
0x2641   :  { %v5383_v10 = vmul.f32 %v8564_v48, %v8556_v4  ;;  %v5530_v37 = vpop.permute.xlu0 %5529 }
0x2642   :  { %7367 = vmatmul.mubr.msk.f32.vlgmr.msra.gmra.mrb[68].mxu1 %vm532_vm5, %v5381_v39  ;;  %v5516_v53 = vpop.permute.xlu1 %5515  ;;  %v5613_v22 = vsel %vm2689_vm7, %v5609_v51, %v5530_v37 }
0x2643   :  { %7369 = vmatprep.mubr.msk.f32.mxu1 %vm532_vm5, %v5382_v12  ;;  %7892 = vmatpush3.bf16.msra.mxu1 %v7889_v14  ;;  %v5610_v32 = vsel %vm2684_vm6, %v5606_v45, %v5516_v53 }
0x2644   :  { %7894 = vmatprep.subr.bf16.mxu1 %v7893_v24 }
0x2645   :  { %v5546_v33 = vpop.permute.xlu0 %5545 }
0x2646   :  { %7370 = vmatmul.mubr.msk.f32.gmra.mrb[70].mxu1 %vm532_vm5, %v5383_v10  ;;  %v5532_v62 = vpop.permute.xlu1 %5531  ;;  %v5617_v36 = vsel %vm532_vm5, %v5613_v22, %v5546_v33 }
0x2647   :  { %7896 = vmatpush3.bf16.msra.mxu1 %v7893_v24  ;;  %v5614_v59 = vsel %vm2689_vm7, %v5610_v32, %v5532_v62 }
0x2648   :  { %7898 = vmatprep.subr.bf16.mxu1 %v7897_v3 }
0x2649   :  { %v5548_v13 = vpop.permute.xlu0 %5547 }
0x264a   :  { %v5502_v1 = vpop.permute.xlu1 %5501  ;;  %v5618_v52 = vsel %vm532_vm5, %v5614_v59, %v5548_v13 }
0x264b   :  { %7900 = vmatpush3.bf16.msra.mxu1 %v7897_v3  ;;  %v5607_v43 = vsel %vm426_vm3, %v10170_v16, %v5502_v1 }
0x264c   :  { %7902 = vmatprep.subr.bf16.mxu1 %v7901_v40 }
0x264d   :  { %v5504_v15 = vpop.permute.xlu0 %5503 }
0x264e   :  { %v5562_v34 = vpop.permute.xlu1 %5561  ;;  %v5608_v21 = vsel %vm426_vm3, %v10168_v20, %v5504_v15 }
0x264f   :  { %7904 = vmatpush3.bf16.msra.mxu1 %v7901_v40  ;;  %v5621_v0 = vsel %vm2698_vm8, %v5617_v36, %v5562_v34 }
0x2651   :  { %v5564_v5 = vpop.permute.xlu0 %5563 }
0x2652   :  { %v5518_v27 = vpop.permute.xlu1 %5517  ;;  %v5622_v23 = vsel %vm2698_vm8, %v5618_v52, %v5564_v5  ;;  %v5829_v52 = vld [vmem:[#allocation7 + $0x48] sm:$0xff] }
0x2653   :  { %v5611_v50 = vsel %vm2684_vm6, %v5607_v43, %v5518_v27  ;;  %v5828_v43 = vld [vmem:[#allocation7 + $0x40] sm:$0xff] }
0x2655   :  { %v5520_v8 = vpop.permute.xlu0 %5519 }
0x2656   :  { %v5578_v19 = vpop.permute.xlu1 %5577  ;;  %v5612_v14 = vsel %vm2684_vm6, %v5608_v21, %v5520_v8  ;;  %v6456_v21 = vld [vmem:[%s10738_s13 + $0x88] sm:$0xff] }
0x2657   :  { %v5625_v9 = vsel %vm2703_vm9, %v5621_v0, %v5578_v19  ;;  %v7905_v0 = vpack.c.bf16 %v5829_v52, %v5828_v43 }
0x2659   :  { %7906 = vmatprep.subr.bf16.mxu0 %v7905_v0 }
0x265a   :  { %v5534_v57 = vpop.permute.xlu1 %5533  ;;  %7908 = vmatpush3.bf16.msra.mxu0 %v7905_v0  ;;  %v6469_v0 = vld [vmem:[%s10738_s13 + $0xf0] sm:$0xff] }
0x265b   :  { %v5615_v48 = vsel %vm2689_vm7, %v5611_v50, %v5534_v57  ;;  %v5831_v50 = vld [vmem:[#allocation7 + $0x58] sm:$0xff] }
0x265e   :  { %v5550_v41 = vpop.permute.xlu1 %5549 }
0x265f   :  { %v5619_v16 = vsel %vm532_vm5, %v5615_v48, %v5550_v41 }
0x2662   :  { %v5552_v58 = vpop.permute.xlu1 %5551 }
0x2666   :  { %v5568_v26 = vpop.permute.xlu1 %5567 }
0x2715   :  { %v7368_v31 = vpop.f32.mrb[68].mxu1 }
0x2716   :  { %5595 = vrot.lane.b32.xlu0 %v7368_v31, %s8786_s16  ;;  %v5474_v28 = vpop.f32.mrb[69].mxu1 }
0x2717   :  { %5593 = vrot.lane.b32.xlu1 %v5474_v28, %s8786_s16  ;;  %v6440_v28 = vld [vmem:[%s10733_s8 + $0x1] ss:$0 sm:$0xff] }
0x2719   :  { %v7371_v6 = vpop.f32.mrb[70].mxu1 }
0x271a   :  { %v5484_v56 = vpop.f32.mrb[71].mxu1 }
0x271b   :  { %5583 = vrot.lane.b32.xlu1 %v10454_v42, %s8787_s20  ;;  %5597 = vrot.lane.b32.xlu0 %v5484_v56, %s8786_s16  ;;  %v5580_v42 = vpop.permute.xlu0 %5579 }
0x271c   :  { %v5626_v12 = vsel %vm2703_vm9, %v5622_v23, %v5580_v42 }
0x271f   :  { %5599 = vrot.lane.b32.xlu1 %v7371_v6, %s8786_s16  ;;  %v5536_v4 = vpop.permute.xlu0 %5535 }
0x2720   :  { %v5616_v60 = vsel %vm2689_vm7, %v5612_v14, %v5536_v4 }
0x2721   :  { %v5620_v7 = vsel %vm532_vm5, %v5616_v60, %v5552_v58  ;;  %v6460_v60 = vld [vmem:[%s10738_s13 + $0xa8] sm:$0xff] }
0x2722   :  { %v5624_v20 = vsel %vm2698_vm8, %v5620_v7, %v5568_v26  ;;  %v6461_v7 = vld [vmem:[%s10738_s13 + $0xb0] sm:$0xff] }
0x2723   :  { %v5566_v49 = vpop.permute.xlu0 %5565 }
0x2724   :  { %v5623_v38 = vsel %vm2698_vm8, %v5619_v16, %v5566_v49 }
0x2727   :  { %v5582_v30 = vpop.permute.xlu0 %5581 }
0x2728   :  { %v5627_v11 = vsel %vm2703_vm9, %v5623_v38, %v5582_v30  ;;  %v6457_v38 = vld [vmem:[%s10738_s13 + $0x90] sm:$0xff] }
0x2788   :  { %v5596_v35 = vpop.permute.xlu0 %5595 }
0x2789   :  { %v5594_v39 = vpop.permute.xlu1 %5593  ;;  %v5630_v55 = vsel %vm2708_vm10, %v5626_v12, %v5596_v35  ;;  %v5830_v35 = vld [vmem:[#allocation7 + $0x50] sm:$0xff] }
0x278a   :  { %v5629_v10 = vsel %vm2708_vm10, %v5625_v9, %v5594_v39  ;;  %v7909_v23 = vpack.c.bf16 %v5831_v50, %v5830_v35  ;;  %v5832_v9 = vld [vmem:[#allocation7 + $0x60] sm:$0xff]  ;;  %v5833_v39 = vld [vmem:[#allocation7 + $0x68] sm:$0xff]  ;;  %v5834_v12 = vld [vmem:[#allocation7 + $0x70] sm:$0xff] }
0x278b   :  { %7388 = vmatprep.mubr.msk.f32.mxu1 %vm308_vm2, %v5629_v10  ;;  %v7913_v48 = vpack.c.bf16 %v5833_v39, %v5832_v9  ;;  %v5835_v10 = vld [vmem:[#allocation7 + $0x78] sm:$0xff] }
0x278c   :  { %7389 = vmatmul.mubr.msk.f32.vlgmr.msra.gmra.mrb[72].mxu1 %vm308_vm2, %v5630_v55  ;;  %7910 = vmatprep.subr.bf16.mxu0 %v7909_v23  ;;  %v7917_v16 = vpack.c.bf16 %v5835_v10, %v5834_v12  ;;  %v6455_v55 = vld [vmem:[%s10738_s13 + $0x80] sm:$0xff]  ;;  %v6470_v35 = vld [vmem:[%s10738_s13 + $0xf8] sm:$0xff] }
0x278d   :  { %v5584_v24 = vpop.permute.xlu1 %5583  ;;  %v5598_v61 = vpop.permute.xlu0 %5597  ;;  %7912 = vmatpush3.bf16.msra.mxu0 %v7909_v23  ;;  %v7921_v14 = vpack.c.bf16 %v6456_v21, %v6455_v55 }
0x278e   :  { %v5631_v3 = vsel %vm2708_vm10, %v5627_v11, %v5598_v61  ;;  %v5628_v25 = vsel %vm2703_vm9, %v5624_v20, %v5584_v24  ;;  %7914 = vmatprep.subr.bf16.mxu0 %v7913_v48  ;;  %v6458_v11 = vld [vmem:[%s10738_s13 + $0x98] sm:$0xff]  ;;  %v6459_v61 = vld [vmem:[%s10738_s13 + $0xa0] sm:$0xff] }
0x278f   :  { %7391 = vmatprep.mubr.msk.f32.mxu1 %vm308_vm2, %v5631_v3  ;;  %v7925_v24 = vpack.c.bf16 %v6458_v11, %v6457_v38  ;;  %7922 = vmatprep.subr.bf16.mxu1 %v7921_v14  ;;  %v7929_v3 = vpack.c.bf16 %v6460_v60, %v6459_v61  ;;  %v6462_v20 = vld [vmem:[%s10738_s13 + $0xb8] sm:$0xff]  ;;  %v6471_v61 = vld [vmem:[#allocation8 + $0x1] ss:$0 sm:$0xff] }
0x2790   :  { %7924 = vmatpush3.bf16.msra.mxu1 %v7921_v14 }
0x2791   :  { %v5600_v40 = vpop.permute.xlu1 %5599  ;;  %7916 = vmatpush3.bf16.msra.mxu0 %v7913_v48  ;;  %7926 = vmatprep.subr.bf16.mxu1 %v7925_v24 }
0x2792   :  { %v5632_v31 = vsel %vm2708_vm10, %v5628_v25, %v5600_v40  ;;  %7918 = vmatprep.subr.bf16.mxu0 %v7917_v16  ;;  %v7933_v25 = vpack.c.bf16 %v6462_v20, %v6461_v7  ;;  %v6463_v40 = vld [vmem:[%s10738_s13 + $0xc0] sm:$0xff] }
0x2793   :  { %7392 = vmatmul.mubr.msk.f32.gmra.mrb[74].mxu1 %vm308_vm2, %v5632_v31  ;;  %v6464_v31 = vld [vmem:[%s10738_s13 + $0xc8] sm:$0xff] }
0x2794   :  { %7928 = vmatpush3.bf16.msra.mxu1 %v7925_v24 }
0x2795   :  { %7920 = vmatpush3.bf16.msra.mxu0 %v7917_v16  ;;  %7930 = vmatprep.subr.bf16.mxu1 %v7929_v3 }
0x2798   :  { %7932 = vmatpush3.bf16.msra.mxu1 %v7929_v3 }
0x2799   :  { %7934 = vmatprep.subr.bf16.mxu1 %v7933_v25 }
0x279c   :  { %7936 = vmatpush3.bf16.msra.mxu1 %v7933_v25 }
0x285f   :  { %v7390_v6 = vpop.f32.mrb[72].mxu1 }
0x2860   :  { %v5734_v56 = vadd.f32 %v7390_v6, %v6440_v28  ;;  %v5728_v2 = vpop.f32.mrb[73].mxu1  ;;  %v6465_v6 = vld [vmem:[%s10738_s13 + $0xd0] sm:$0xff] }
0x2861   :  { %v5729_v18 = vadd.f32 %v6440_v28, %v5728_v2 }
0x2862   :  { %v5748_v63 = vadd.f32 %v5734_v56, %v9985_v46  ;;  %v6466_v56 = vld [vmem:[%s10738_s13 + $0xd8] sm:$0xff] }
0x2863   :  { %v5747_v37 = vadd.f32 %v5729_v18, %v9980_v44  ;;  %v7941_v2 = vpack.c.bf16 %v6466_v56, %v6465_v6  ;;  %v6467_v18 = vld [vmem:[%s10738_s13 + $0xe0] sm:$0xff] }
0x2864   :  { %v5758_v53 = vsel %vm308_vm2, %v5748_v63, 0.0 }
0x2865   :  { %5759 = vadd.xlane.f32.xlu1 %v5758_v53  ;;  %v5755_v33 = vsel %vm308_vm2, %v5747_v37, 0.0 }
0x2866   :  { %v7393_v62 = vpop.f32.mrb[74].mxu1  ;;  %5756 = vadd.xlane.f32.xlu0 %v5755_v33 }
0x2867   :  { %v5738_v13 = vpop.f32.mrb[75].mxu1  ;;  %v5744_v1 = vadd.f32 %v7393_v62, %v6440_v28 }
0x2868   :  { %v5739_v15 = vadd.f32 %v6440_v28, %v5738_v13  ;;  %v7937_v28 = vpack.c.bf16 %v6464_v31, %v6463_v40 }
0x2869   :  { %v5750_v5 = vadd.f32 %v5744_v1, %v9997_v17 }
0x286a   :  { %v5749_v34 = vadd.f32 %v5739_v15, %v9992_v54  ;;  %7938 = vmatprep.subr.bf16.mxu1 %v7937_v28 }
0x286b   :  { %v5764_v46 = vsel %vm308_vm2, %v5750_v5, 0.0  ;;  %7940 = vmatpush3.bf16.msra.mxu1 %v7937_v28 }
0x286c   :  { %v5761_v27 = vsel %vm308_vm2, %v5749_v34, 0.0  ;;  %7942 = vmatprep.subr.bf16.mxu1 %v7941_v2 }
0x286d   :  { %5762 = vadd.xlane.f32.xlu0 %v5761_v27 }
0x286f   :  { %7944 = vmatpush3.bf16.msra.mxu1 %v7941_v2  ;;  %v6084_v2 = vld [vmem:[%s10742_s17] sm:$0xff] }
0x2871   :  { %5765 = vadd.xlane.f32.xlu0 %v5764_v46 }
0x28f2   :  { %v5760_v44 = vpop.xlane.xlu1 %5759 }
0x28f3   :  { %v5768_v8 = vmul.f32 0.015625, %v5760_v44  ;;  %v5757_v19 = vpop.xlane.xlu0 %5756 }
0x28f4   :  { %v5767_v42 = vmul.f32 0.015625, %v5757_v19 }
0x28f5   :  { %v10600_v57 = vsub.f32 %v5748_v63, %v5768_v8  ;;  %v6468_v63 = vld [vmem:[%s10738_s13 + $0xe8] sm:$0xff] }
0x28f6   :  { %v10602_v4 = vsub.f32 %v5747_v37, %v5767_v42  ;;  %v7945_v37 = vpack.c.bf16 %v6468_v63, %v6467_v18  ;;  %v6447_v42 = vld [vmem:[%s10734_s9 + $0x1] ss:$0 sm:$0xff]  ;;  %v6085_v18 = vld [vmem:[%s10742_s17 + $0x8] sm:$0xff] }
0x28f7   :  { %v5776_v41 = vmul.f32 %v10600_v57, %v10600_v57  ;;  %v7954_v63 = vpack.c.bf16 %v6085_v18, %v6084_v2 }
0x28f8   :  { %v5775_v54 = vmul.f32 %v10602_v4, %v10602_v4  ;;  %7946 = vmatprep.subr.bf16.mxu1 %v7945_v37 }
0x28f9   :  { %v5782_v17 = vsel %vm308_vm2, %v5776_v41, 0.0  ;;  %7948 = vmatpush3.bf16.msra.mxu1 %v7945_v37  ;;  %v8798_v37 = vmov 0.0|0.0  }
0x28fa   :  { %5783 = vadd.xlane.f32.xlu0 %v5782_v17  ;;  %v5763_v49 = vpop.xlane.xlu0 %5762  ;;  %v5779_v58 = vsel %vm308_vm2, %v5775_v54, 0.0  ;;  %7953 = vmatprep.subr.bf16.mxu0 %v8798_v37 }
0x28fb   :  { %v5769_v47 = vmul.f32 0.015625, %v5763_v49  ;;  %5780 = vadd.xlane.f32.xlu1 %v5779_v58  ;;  %v6448_v49 = vld [vmem:[%s10735_s10 + $0x1] ss:$0 sm:$0xff] }
0x28fd   :  { %v10610_v30 = vsub.f32 %v5749_v34, %v5769_v47 }
0x28fe   :  { %v5766_v45 = vpop.xlane.xlu0 %5765 }
0x28ff   :  { %v5770_v51 = vmul.f32 0.015625, %v5766_v45  ;;  %v5777_v26 = vmul.f32 %v10610_v30, %v10610_v30 }
0x2901   :  { %v10614_v32 = vsub.f32 %v5750_v5, %v5770_v51  ;;  %v5785_v22 = vsel %vm308_vm2, %v5777_v26, 0.0 }
0x2902   :  { %5786 = vadd.xlane.f32.xlu1 %v5785_v22 }
0x2903   :  { %v5778_v59 = vmul.f32 %v10614_v32, %v10614_v32 }
0x2905   :  { %v5788_v36 = vsel %vm308_vm2, %v5778_v59, 0.0 }
0x2906   :  { %5789 = vadd.xlane.f32.xlu0 %v5788_v36 }
0x2987   :  { %v5784_v53 = vpop.xlane.xlu0 %5783 }
0x2988   :  { %v5792_v33 = vmul.f32 0.015625, %v5784_v53  ;;  %v5781_v62 = vpop.xlane.xlu1 %5780  ;;  %v6086_v53 = vld [vmem:[%s10742_s17 + $0x10] sm:$0xff] }
0x2989   :  { %v5791_v13 = vmul.f32 0.015625, %v5781_v62 }
0x298a   :  { %v5796_v1 = vadd.f32 1e-05, %v5792_v33  ;;  %v6087_v33 = vld [vmem:[%s10742_s17 + $0x18] sm:$0xff] }
0x298b   :  { %v5795_v15 = vadd.f32 1e-05, %v5791_v13  ;;  %v7957_v62 = vpack.c.bf16 %v6087_v33, %v6086_v53  ;;  %v6088_v13 = vld [vmem:[%s10742_s17 + $0x20] sm:$0xff] }
0x298c   :  { %8565 = vrsqrt.f32 %v5796_v1  ;;  %v6089_v1 = vld [vmem:[%s10742_s17 + $0x28] sm:$0xff] }
0x298d   :  { %8567 = vrsqrt.f32 %v5795_v15  ;;  %v7960_v15 = vpack.c.bf16 %v6089_v1, %v6088_v13 }
0x298f   :  { %v5787_v34 = vpop.xlane.xlu1 %5786 }
0x2990   :  { %v5793_v5 = vmul.f32 0.015625, %v5787_v34  ;;  %v6090_v34 = vld [vmem:[%s10742_s17 + $0x30] sm:$0xff] }
0x2992   :  { %v5797_v27 = vadd.f32 1e-05, %v5793_v5  ;;  %v6091_v5 = vld [vmem:[%s10742_s17 + $0x38] sm:$0xff]  ;;  %s8800_s17 = smov [#allocation14]  }
0x2993   :  { %v5790_v46 = vpop.xlane.xlu0 %5789  ;;  %s6181_s8 = sshll.u32 %s8800_s17, 4  ;;  %s6182_s8 = int_to_ptr.vmem [resolvable:$true] %s6181_s8 }
0x2994   :  { %8569 = vrsqrt.f32 %v5797_v27  ;;  %v5794_v44 = vmul.f32 0.015625, %v5790_v46  ;;  %v7963_v27 = vpack.c.bf16 %v6091_v5, %v6090_v34  ;;  %s8741_s20 = scalar_lea.vmem %s6182_s8, 64  ;;  %p8746_p1 = scmp.lt.s32.totalorder %s6182_s8, %s6182_s8 }
0x2995   :  { %p8742_p0 = scmp.ne.s32.totalorder %s6182_s8, %s8741_s20  ;;  %p8747_p2 = scmp.lt.s32.totalorder %s8741_s20, %s8741_s20 }
0x2996   :  { %v8566_v8 = vpop.eup %8565  ;;  %v5798_v19 = vadd.f32 1e-05, %v5794_v44 }
0x2997   :  { %v8568_v41 = vpop.eup %8567  ;;  %v5804_v54 = vmul.f32 %v8566_v8, %v10600_v57  ;;  %p8748_p3 = por %p8747_p2, %p8746_p1 }
0x2998   :  { %8571 = vrsqrt.f32 %v5798_v19  ;;  %v5803_v17 = vmul.f32 %v8568_v41, %v10602_v4 }
0x2999   :  { %v5814_v58 = vmul.f32 %v6447_v42, %v5804_v54  ;;  %v6473_v54 = vld [vmem:[#allocation11 + $0x1] ss:$0 sm:$0xff]  ;;  %p8749_p4 = pnand %p8748_p3, %p8742_p0 }
0x299a   :  { %v5813_v47 = vmul.f32 %v6447_v42, %v5803_v17 }
0x299b   :  { %v5824_v51 = vadd.f32 %v6448_v49, %v5814_v58 }
0x299c   :  { %v5823_v45 = vadd.f32 %v6448_v49, %v5813_v47  ;;  %v6474_v47 = vld [vmem:[#allocation13] ss:$0 sm:$0xff] }
0x299e   :  { %v8570_v26 = vpop.eup %8569  ;;  %7410 = vmatprep.mubr.msk.f32.mxu0 %vm308_vm2, %v5823_v45 }
0x299f   :  { %7411 = vmatmul.mubr.msk.f32.vlgmr.msra.gmra.mrb[88].mxu0 %vm308_vm2, %v5824_v51  ;;  %v5805_v22 = vmul.f32 %v8570_v26, %v10610_v30  ;;  %v7949_v30 = vpack.c.bf16 %v6470_v35, %v6469_v0 }
0x29a0   :  { %7955 = vmatpush3.bf16.msra.mxu0 %v7954_v63 }
0x29a1   :  { %v5815_v59 = vmul.f32 %v6447_v42, %v5805_v22  ;;  %7950 = vmatprep.subr.bf16.mxu1 %v7949_v30  ;;  %7956 = vmatprep.subr.bf16.mxu0 %v8798_v37 }
0x29a2   :  { %v8572_v57 = vpop.eup %8571  ;;  %7952 = vmatpush3.bf16.msra.mxu1 %v7949_v30 }
0x29a3   :  { %v5825_v36 = vadd.f32 %v6448_v49, %v5815_v59  ;;  %v5806_v4 = vmul.f32 %v8572_v57, %v10614_v32  ;;  %v6450_v32 = vld [vmem:[%s10737_s12 + $0x1] ss:$0 sm:$0xff] }
0x29a4   :  { %7958 = vmatpush3.bf16.msra.mxu0 %v7957_v62 }
0x29a5   :  { %7413 = vmatprep.mubr.msk.f32.mxu0 %vm308_vm2, %v5825_v36  ;;  %v5816_v43 = vmul.f32 %v6447_v42, %v5806_v4  ;;  %7959 = vmatprep.subr.bf16.mxu0 %v8798_v37  ;;  %v6472_v42 = vld [vmem:[#allocation10 + $0x1] ss:$0 sm:$0xff] }
0x29a7   :  { %v5826_v52 = vadd.f32 %v6448_v49, %v5816_v43 }
0x29a8   :  { %7961 = vmatpush3.bf16.msra.mxu0 %v7960_v15 }
0x29a9   :  { %7414 = vmatmul.mubr.msk.f32.gmra.mrb[90].mxu0 %vm308_vm2, %v5826_v52  ;;  %7962 = vmatprep.subr.bf16.mxu0 %v8798_v37 }
0x29aa   :  { %7470 = vmatprep.mubr.msk.f32.mxu0 %vm8799_vm11, %v8784_v29 }
0x29ac   :  { %7964 = vmatpush3.bf16.msra.mxu0 %v7963_v27 }
0x2a72   :  { %v7412_v50 = vpop.f32.mrb[88].mxu0 }
0x2a73   :  { %v5928_v23 = vadd.f32 %v7412_v50, %v6450_v32  ;;  %v5922_v9 = vpop.f32.mrb[89].mxu0 }
0x2a74   :  { %v5923_v39 = vadd.f32 %v6450_v32, %v5922_v9 }
0x2a75   :  { %v5942_v12 = vmax.f32 %v5928_v23, 0.0 }
0x2a76   :  { %v5941_v48 = vmax.f32 %v5923_v39, 0.0 }
0x2a78   :  { %7448 = vmatprep.mubr.f32.mxu1 %v5941_v48 }
0x2a79   :  { %7449 = vmatmul.mubr.f32.vlgmr.msra.gmra.mrb[76].mxu1 %v5942_v12 }
0x2a7c   :  { %v7415_v10 = vpop.f32.mrb[90].mxu0 }
0x2a7d   :  { %v5938_v16 = vadd.f32 %v7415_v10, %v6450_v32  ;;  %v5932_v55 = vpop.f32.mrb[91].mxu0 }
0x2a7e   :  { %v5933_v21 = vadd.f32 %v6450_v32, %v5932_v55 }
0x2a7f   :  { %v5944_v14 = vmax.f32 %v5938_v16, 0.0 }
0x2a80   :  { %v5943_v38 = vmax.f32 %v5933_v21, 0.0 }
0x2a82   :  { %7451 = vmatprep.mubr.f32.mxu1 %v5943_v38 }
0x2a83   :  { %7452 = vmatmul.mubr.f32.gmra.mrb[78].mxu1 %v5944_v14 }
0x2b4c   :  { %v7450_v11 = vpop.f32.mrb[76].mxu1 }
0x2b4d   :  { %v6036_v24 = vpop.f32.mrb[77].mxu1 }
0x2b56   :  { %v7453_v60 = vpop.f32.mrb[78].mxu1 }
0x2b57   :  { %v6049_v3 = vadd.f32 %v7453_v60, %v6471_v61  ;;  %v6044_v7 = vpop.f32.mrb[79].mxu1 }
0x2b59   :  { %v6052_v20 = vadd.f32 %v6049_v3, %v5826_v52 }
0x2b5b   :  { %v6057_v25 = vsel %vm308_vm2, %v6052_v20, 0.0 }
0x2b5c   :  { %6058 = vadd.xlane.f32.xlu1 %v6057_v25 }
0x2be9   :  { %v6059_v40 = vpop.xlane.xlu1 %6058 }
0x2bea   :  { %v6060_v31 = vmul.f32 0.015625, %v6059_v40 }
0x2bec   :  { %v6061_v28 = vsub.f32 %v6052_v20, %v6060_v31 }
0x2bee   :  { %v6062_v6 = vmul.f32 %v6061_v28, %v6061_v28 }
0x2bf0   :  { %v6063_v56 = vsel %vm308_vm2, %v6062_v6, 0.0 }
0x2bf1   :  { %6064 = vadd.xlane.f32.xlu0 %v6063_v56 }
0x2c7e   :  { %v6065_v46 = vpop.xlane.xlu0 %6064 }
0x2c7f   :  { %v6066_v44 = vmul.f32 0.015625, %v6065_v46 }
0x2c81   :  { %v6067_v8 = vadd.f32 1e-05, %v6066_v44 }
0x2c83   :  { %8573 = vrsqrt.f32 %v6067_v8 }
0x2c8d   :  { %v8574_v19 = vpop.eup %8573 }
0x2c8e   :  { %v6069_v41 = vmul.f32 %v8574_v19, %v6061_v28 }
0x2c90   :  { %v6076_v17 = vmul.f32 %v6472_v42, %v6069_v41 }
0x2c92   :  { %v6083_v49 = vadd.f32 %v6473_v54, %v6076_v17 }
0x2c94   :  { %v6100_v58 = vrot.slane %v6083_v49, 4 }
0x2c96   :  { %7471 = vmatmul.mubr.msk.f32.vlgmr.msra.gmra.mrb[92].mxu0 %vm308_vm2, %v6100_v58 }
0x2d69   :  { %v6169_v45 = vpop.f32.mrb[92].mxu0 }
0x2d6a   :  { %v6170_v29 = vadd.f32 %v6474_v47, %v6169_v45  ;;  %v7472_v51 = vpop.f32.mrb[93].mxu0 }
0x2d6c   :  { %6174 = vst.msk [vmem:[#allocation14] sm:$0xf] %vm6173_vm12, %v6170_v29 }
0x2d6d   :  { %8752 = shalt.err (!%p8749_p4)
}
0x2d6e   :  { %s8753_s1 = scalar_lea.hbm %s10744_s19, 64 }
0x2d6f   :  { %p8754_p5 = scmp.ne.s32.totalorder %s10744_s19, %s8753_s1  ;;  %p8757_p6 = scmp.lt.u32.totalorder %s8753_s1, %s10744_s19 }
0x2d71   :  { %p8759_p7 = pnand %p8757_p6, %p8754_p5 }
0x2d73   :  { %8762 = shalt.err (!%p8759_p7)
}
0x2d74   :  { %6184 = dma.vmem_to_hbm [thread:$0]  %s6182_s8, 64, %s10744_s19, [#allocation4]  }
0x2d75   :  { %8771 = dma.done.wait [#allocation4], 64  }
0x2d76   :  { %8772 = vsyncadd [#allocation4], 4294967232 }
0x2d77   :  { %6188 = vsyncpa [#allocation3], 1 }
0x2d78   :  { %6189 = vsyncpa [#allocation6], 1 }
0x2d79   :  { %6190 = vsyncpa [#allocation9], 1 }
0x2d7a   :  { %6191 = vsyncpa [#allocation12], 1 }
0x2d7b   :  { %6192 = vsyncpa [#allocation4], 1 }

</bundles_post_ra>
